<compile_context>
chip_gen: v7x
topology: tpu7x:2x2x1
jax: 0.10.0
libtpu: 0.0.40
codegen_flags: <defaults>
</compile_context>

<pallas_src>
import functools

import jax
import jax.numpy as jnp
from jax.experimental import pallas as pl
from jax.experimental.pallas import tpu as pltpu


def _matmul_t(a, w):
    """a @ w.T on the MXU without materializing a transpose (contract dim 1)."""
    return jax.lax.dot_general(
        a, w, (((1,), (1,)), ((), ())),
        preferred_element_type=jnp.float32,
        precision=jax.lax.Precision.HIGHEST)


def lstm_encoder_kernel(tok_ref, emb_ref, wih_ref, whh_ref, b_ref, out_ref,
                        *, seq_len, batch, hidden):
    """Fused embedding gather + hoisted input projection + unrolled LSTM.

    tok_ref : (B, S)   int32 token ids, SMEM (scalar reads only)
    emb_ref : (V, E)   embedding table, VMEM
    wih_ref : (4H, E)  W_ih in PyTorch layout
    whh_ref : (4H, H)  W_hh in PyTorch layout
    b_ref   : (1, 4H)  b_ih + b_hh
    out_ref : (B, S*H + 128) lane-dense slab:
              [h_1 .. h_S | h_n | c_n | zero pad]
    """
    H = hidden

    # ---- Phase 0: fused embedding gather (time-major rows: row = s*B + b). --
    rows = []
    for s in range(seq_len):
        for b in range(batch):
            tok = tok_ref[b, s]                        # scalar read from SMEM
            rows.append(emb_ref[pl.ds(tok, 1), :])     # (1, E) dynamic row
    x = jnp.concatenate(rows, axis=0)                  # (S*B, E)

    # ---- Phase 1: one MXU matmul covering every step's input projection. ---
    gx = _matmul_t(x, wih_ref[...]) + b_ref[...]       # (S*B, 4H)

    # Per-lane affine so ONE tanh covers all four gates:
    #   sigmoid(x) = 0.5 * tanh(0.5 * x) + 0.5     (i, f, o lane blocks)
    #   tanh(x)    = 1.0 * tanh(1.0 * x) + 0.0     (g lane block)
    lane = jax.lax.broadcasted_iota(jnp.int32, (1, 4 * H), 1)
    is_g = (lane >= 2 * H) & (lane < 3 * H)
    scale = jnp.where(is_g, 1.0, 0.5).astype(jnp.float32)   # hoisted
    shift = jnp.where(is_g, 0.0, 0.5).astype(jnp.float32)   # hoisted

    whh = whh_ref[...]                                 # load once, reuse
    h = jnp.zeros((batch, H), jnp.float32)
    c = jnp.zeros((batch, H), jnp.float32)

    hs = []
    # ---- Phase 2: recurrence, fully unrolled (seq_len small & static). -----
    for s in range(seq_len):
        gates = gx[s * batch:(s + 1) * batch, :] + _matmul_t(h, whh)  # (B,4H)
        act = scale * jnp.tanh(gates * scale) + shift  # one EUP push, 4 gates
        i_g = act[:, 0 * H:1 * H]
        f_g = act[:, 1 * H:2 * H]
        g_g = act[:, 2 * H:3 * H]
        o_g = act[:, 3 * H:4 * H]
        c = f_g * c + i_g * g_g
        h = o_g * jnp.tanh(c)
        hs.append(h)

    # ---- Phase 3: single lane-dense store of everything. -------------------
    tail_pad = (-(2 * H)) % 128
    pieces = hs + [h, c]
    if tail_pad:
        pieces.append(jnp.zeros((batch, tail_pad), jnp.float32))
    out_ref[...] = jnp.concatenate(pieces, axis=-1).astype(out_ref.dtype)


def encoder_forward(tokens, emb_w, w_ih, w_hh, b_ih, b_hh):
    """tokens: (B, S) int32 -> (outputs (B,S,H), (h_n, c_n)), nn.LSTM batch_first."""
    B, S = tokens.shape
    H = w_hh.shape[1]
    tail_pad = (-(2 * H)) % 128
    out_lanes = S * H + 2 * H + tail_pad

    # Only remaining wrapper prep: fold the two bias vectors (loop-invariant).
    b = (b_ih + b_hh).reshape(1, 4 * H)

    out = pl.pallas_call(
        functools.partial(lstm_encoder_kernel, seq_len=S, batch=B, hidden=H),
        out_shape=jax.ShapeDtypeStruct((B, out_lanes), jnp.float32),
        # Whole problem resident: no grid, full-array blocks.
        in_specs=[
            pl.BlockSpec(memory_space=pltpu.MemorySpace.SMEM),   # tokens
            pl.BlockSpec(memory_space=pltpu.MemorySpace.VMEM),   # emb_w
            pl.BlockSpec(memory_space=pltpu.MemorySpace.VMEM),   # W_ih
            pl.BlockSpec(memory_space=pltpu.MemorySpace.VMEM),   # W_hh
            pl.BlockSpec(memory_space=pltpu.MemorySpace.VMEM),   # bias
        ],
        out_specs=pl.BlockSpec(memory_space=pltpu.MemorySpace.VMEM),
    )(tokens, emb_w, w_ih, w_hh, b)

    outputs = out[:, :S * H].reshape(B, S, H)                  # batch_first
    h_n = out[:, S * H:S * H + H][None, :, :]                  # (1, B, H)
    c_n = out[:, S * H + H:S * H + 2 * H][None, :, :]          # (1, B, H)
    return outputs, (h_n, c_n)


def encoder_reference(tokens, emb_w, w_ih, w_hh, b_ih, b_hh):
    """Pure-JAX reference matching nn.Embedding(padding_idx) + nn.LSTM(batch_first)."""
    B, S = tokens.shape
    H = w_hh.shape[1]
    HIGHEST = jax.lax.Precision.HIGHEST
    emb = jnp.take(emb_w, tokens, axis=0)                      # (B, S, E)
    h = jnp.zeros((B, H), jnp.float32)
    c = jnp.zeros((B, H), jnp.float32)
    outs = []
    for s in range(S):
        gates = (jnp.dot(emb[:, s, :], w_ih.T, precision=HIGHEST)
                 + jnp.dot(h, w_hh.T, precision=HIGHEST) + b_ih + b_hh)
        i_g = jax.nn.sigmoid(gates[:, 0 * H:1 * H])
        f_g = jax.nn.sigmoid(gates[:, 1 * H:2 * H])
        g_g = jnp.tanh(gates[:, 2 * H:3 * H])
        o_g = jax.nn.sigmoid(gates[:, 3 * H:4 * H])
        c = f_g * c + i_g * g_g
        h = o_g * jnp.tanh(c)
        outs.append(h)
    return jnp.stack(outs, axis=1), (h[None], c[None])


def make_params(key, input_dim, emb_dim, hidden_dim, pad_idx=0):
    """Deterministic synthetic parameters matching nn.Embedding + nn.LSTM shapes."""
    k_emb, k_wih, k_whh, k_bih, k_bhh = jax.random.split(key, 5)
    bound = 1.0 / jnp.sqrt(jnp.float32(hidden_dim))

    emb_w = jax.random.normal(k_emb, (input_dim, emb_dim), jnp.float32)
    emb_w = emb_w.at[pad_idx].set(0.0)                         # padding_idx behaviour

    w_ih = jax.random.uniform(k_wih, (4 * hidden_dim, emb_dim), jnp.float32,
                              -bound, bound)
    w_hh = jax.random.uniform(k_whh, (4 * hidden_dim, hidden_dim), jnp.float32,
                              -bound, bound)
    b_ih = jax.random.uniform(k_bih, (4 * hidden_dim,), jnp.float32, -bound, bound)
    b_hh = jax.random.uniform(k_bhh, (4 * hidden_dim,), jnp.float32, -bound, bound)
    return emb_w, w_ih, w_hh, b_ih, b_hh


if __name__ == "__main__":
    # Small shapes consistent with the module: vocab=16, emb=32, hidden=32,
    # batch=2, seq=8, num_layers=1, rnn_type='lstm', dropout=0.0.
    INPUT_DIM, EMB_DIM, HIDDEN_DIM = 16, 32, 32
    B, S = 2, 8

    key = jax.random.PRNGKey(0)
    k_params, k_tokens = jax.random.split(key)
    params = make_params(k_params, INPUT_DIM, EMB_DIM, HIDDEN_DIM, pad_idx=0)
    tokens = jax.random.randint(k_tokens, (B, S), 0, INPUT_DIM, dtype=jnp.int32)

    outputs, (h_n, c_n) = jax.jit(encoder_forward)(tokens, *params)
    jax.block_until_ready((outputs, h_n, c_n))

    assert outputs.shape == (B, S, HIDDEN_DIM)
    assert h_n.shape == (1, B, HIDDEN_DIM)
    assert c_n.shape == (1, B, HIDDEN_DIM)

    # Numerical check against a pure-JAX reference of the same LSTM semantics.
    ref_out, (ref_h, ref_c) = jax.jit(encoder_reference)(tokens, *params)
    assert bool(jnp.allclose(outputs, ref_out, rtol=1e-3, atol=1e-3))
    assert bool(jnp.allclose(h_n, ref_h, rtol=1e-3, atol=1e-3))
    assert bool(jnp.allclose(c_n, ref_c, rtol=1e-3, atol=1e-3))

    print("KERNEL_OK")
</pallas_src>

<mosaic_0001>
module attributes {stable_mosaic.version = 11 : i64} {
  func.func @lstm_encoder_kernel(%arg0: memref<2x8xi32, #tpu.memory_space<smem>>, %arg1: memref<16x32xf32, #tpu.memory_space<vmem>>, %arg2: memref<128x32xf32, #tpu.memory_space<vmem>>, %arg3: memref<128x32xf32, #tpu.memory_space<vmem>>, %arg4: memref<1x128xf32, #tpu.memory_space<vmem>>, %arg5: memref<2x384xf32, #tpu.memory_space<vmem>>) attributes {dimension_semantics = [], scalar_prefetch = 0 : i64, scratch_operands = 0 : i64, tpu.core_type = #tpu.core_type<tc>} {
    %c0 = arith.constant 0 : index
    %c0_0 = arith.constant 0 : index
    %0 = memref.load %arg0[%c0, %c0_0] : memref<2x8xi32, #tpu.memory_space<smem>>
    %1 = arith.index_cast %0 : i32 to index
    %c0_1 = arith.constant 0 : index
    %2 = vector.load %arg1[%1, %c0_1] : memref<16x32xf32, #tpu.memory_space<vmem>>, vector<1x32xf32>
    %c1 = arith.constant 1 : index
    %c0_2 = arith.constant 0 : index
    %3 = memref.load %arg0[%c1, %c0_2] : memref<2x8xi32, #tpu.memory_space<smem>>
    %4 = arith.index_cast %3 : i32 to index
    %c0_3 = arith.constant 0 : index
    %5 = vector.load %arg1[%4, %c0_3] : memref<16x32xf32, #tpu.memory_space<vmem>>, vector<1x32xf32>
    %c0_4 = arith.constant 0 : index
    %c1_5 = arith.constant 1 : index
    %6 = memref.load %arg0[%c0_4, %c1_5] : memref<2x8xi32, #tpu.memory_space<smem>>
    %7 = arith.index_cast %6 : i32 to index
    %c0_6 = arith.constant 0 : index
    %8 = vector.load %arg1[%7, %c0_6] : memref<16x32xf32, #tpu.memory_space<vmem>>, vector<1x32xf32>
    %c1_7 = arith.constant 1 : index
    %c1_8 = arith.constant 1 : index
    %9 = memref.load %arg0[%c1_7, %c1_8] : memref<2x8xi32, #tpu.memory_space<smem>>
    %10 = arith.index_cast %9 : i32 to index
    %c0_9 = arith.constant 0 : index
    %11 = vector.load %arg1[%10, %c0_9] : memref<16x32xf32, #tpu.memory_space<vmem>>, vector<1x32xf32>
    %c0_10 = arith.constant 0 : index
    %c2 = arith.constant 2 : index
    %12 = memref.load %arg0[%c0_10, %c2] : memref<2x8xi32, #tpu.memory_space<smem>>
    %13 = arith.index_cast %12 : i32 to index
    %c0_11 = arith.constant 0 : index
    %14 = vector.load %arg1[%13, %c0_11] : memref<16x32xf32, #tpu.memory_space<vmem>>, vector<1x32xf32>
    %c1_12 = arith.constant 1 : index
    %c2_13 = arith.constant 2 : index
    %15 = memref.load %arg0[%c1_12, %c2_13] : memref<2x8xi32, #tpu.memory_space<smem>>
    %16 = arith.index_cast %15 : i32 to index
    %c0_14 = arith.constant 0 : index
    %17 = vector.load %arg1[%16, %c0_14] : memref<16x32xf32, #tpu.memory_space<vmem>>, vector<1x32xf32>
    %c0_15 = arith.constant 0 : index
    %c3 = arith.constant 3 : index
    %18 = memref.load %arg0[%c0_15, %c3] : memref<2x8xi32, #tpu.memory_space<smem>>
    %19 = arith.index_cast %18 : i32 to index
    %c0_16 = arith.constant 0 : index
    %20 = vector.load %arg1[%19, %c0_16] : memref<16x32xf32, #tpu.memory_space<vmem>>, vector<1x32xf32>
    %c1_17 = arith.constant 1 : index
    %c3_18 = arith.constant 3 : index
    %21 = memref.load %arg0[%c1_17, %c3_18] : memref<2x8xi32, #tpu.memory_space<smem>>
    %22 = arith.index_cast %21 : i32 to index
    %c0_19 = arith.constant 0 : index
    %23 = vector.load %arg1[%22, %c0_19] : memref<16x32xf32, #tpu.memory_space<vmem>>, vector<1x32xf32>
    %c0_20 = arith.constant 0 : index
    %c4 = arith.constant 4 : index
    %24 = memref.load %arg0[%c0_20, %c4] : memref<2x8xi32, #tpu.memory_space<smem>>
    %25 = arith.index_cast %24 : i32 to index
    %c0_21 = arith.constant 0 : index
    %26 = vector.load %arg1[%25, %c0_21] : memref<16x32xf32, #tpu.memory_space<vmem>>, vector<1x32xf32>
    %c1_22 = arith.constant 1 : index
    %c4_23 = arith.constant 4 : index
    %27 = memref.load %arg0[%c1_22, %c4_23] : memref<2x8xi32, #tpu.memory_space<smem>>
    %28 = arith.index_cast %27 : i32 to index
    %c0_24 = arith.constant 0 : index
    %29 = vector.load %arg1[%28, %c0_24] : memref<16x32xf32, #tpu.memory_space<vmem>>, vector<1x32xf32>
    %c0_25 = arith.constant 0 : index
    %c5 = arith.constant 5 : index
    %30 = memref.load %arg0[%c0_25, %c5] : memref<2x8xi32, #tpu.memory_space<smem>>
    %31 = arith.index_cast %30 : i32 to index
    %c0_26 = arith.constant 0 : index
    %32 = vector.load %arg1[%31, %c0_26] : memref<16x32xf32, #tpu.memory_space<vmem>>, vector<1x32xf32>
    %c1_27 = arith.constant 1 : index
    %c5_28 = arith.constant 5 : index
    %33 = memref.load %arg0[%c1_27, %c5_28] : memref<2x8xi32, #tpu.memory_space<smem>>
    %34 = arith.index_cast %33 : i32 to index
    %c0_29 = arith.constant 0 : index
    %35 = vector.load %arg1[%34, %c0_29] : memref<16x32xf32, #tpu.memory_space<vmem>>, vector<1x32xf32>
    %c0_30 = arith.constant 0 : index
    %c6 = arith.constant 6 : index
    %36 = memref.load %arg0[%c0_30, %c6] : memref<2x8xi32, #tpu.memory_space<smem>>
    %37 = arith.index_cast %36 : i32 to index
    %c0_31 = arith.constant 0 : index
    %38 = vector.load %arg1[%37, %c0_31] : memref<16x32xf32, #tpu.memory_space<vmem>>, vector<1x32xf32>
    %c1_32 = arith.constant 1 : index
    %c6_33 = arith.constant 6 : index
    %39 = memref.load %arg0[%c1_32, %c6_33] : memref<2x8xi32, #tpu.memory_space<smem>>
    %40 = arith.index_cast %39 : i32 to index
    %c0_34 = arith.constant 0 : index
    %41 = vector.load %arg1[%40, %c0_34] : memref<16x32xf32, #tpu.memory_space<vmem>>, vector<1x32xf32>
    %c0_35 = arith.constant 0 : index
    %c7 = arith.constant 7 : index
    %42 = memref.load %arg0[%c0_35, %c7] : memref<2x8xi32, #tpu.memory_space<smem>>
    %43 = arith.index_cast %42 : i32 to index
    %c0_36 = arith.constant 0 : index
    %44 = vector.load %arg1[%43, %c0_36] : memref<16x32xf32, #tpu.memory_space<vmem>>, vector<1x32xf32>
    %c1_37 = arith.constant 1 : index
    %c7_38 = arith.constant 7 : index
    %45 = memref.load %arg0[%c1_37, %c7_38] : memref<2x8xi32, #tpu.memory_space<smem>>
    %46 = arith.index_cast %45 : i32 to index
    %c0_39 = arith.constant 0 : index
    %47 = vector.load %arg1[%46, %c0_39] : memref<16x32xf32, #tpu.memory_space<vmem>>, vector<1x32xf32>
    %48 = tpu.concatenate %2, %5, %8, %11, %14, %17, %20, %23, %26, %29, %32, %35, %38, %41, %44, %47 in 0 : vector<1x32xf32>, vector<1x32xf32>, vector<1x32xf32>, vector<1x32xf32>, vector<1x32xf32>, vector<1x32xf32>, vector<1x32xf32>, vector<1x32xf32>, vector<1x32xf32>, vector<1x32xf32>, vector<1x32xf32>, vector<1x32xf32>, vector<1x32xf32>, vector<1x32xf32>, vector<1x32xf32>, vector<1x32xf32> -> vector<16x32xf32>
    %c0_40 = arith.constant 0 : index
    %c0_41 = arith.constant 0 : index
    %49 = vector.load %arg2[%c0_40, %c0_41] : memref<128x32xf32, #tpu.memory_space<vmem>>, vector<128x32xf32>
    %cst = arith.constant dense<0.000000e+00> : vector<16x128xf32>
    %50 = tpu.matmul %48, %49, %cst {dimension_numbers = #tpu.dot_dimension_numbers<[1], [1], [0], [0], [0, 0, 1, 0], [], []>, precision = #tpu.contract_precision<fp32>} : vector<16x32xf32>, vector<128x32xf32>, vector<16x128xf32> -> vector<16x128xf32>
    %c0_42 = arith.constant 0 : index
    %c0_43 = arith.constant 0 : index
    %51 = vector.load %arg4[%c0_42, %c0_43] : memref<1x128xf32, #tpu.memory_space<vmem>>, vector<1x128xf32>
    %52 = vector.broadcast %51 : vector<1x128xf32> to vector<16x128xf32>
    %53 = arith.addf %50, %52 : vector<16x128xf32>
    %54 = tpu.iota {dimensions = array<i32: 1>} : vector<1x128xi32>
    %c64_i32 = arith.constant 64 : i32
    %55 = vector.broadcast %c64_i32 : i32 to vector<1x128xi32>
    %56 = arith.cmpi sge, %54, %55 : vector<1x128xi32>
    %c96_i32 = arith.constant 96 : i32
    %57 = vector.broadcast %c96_i32 : i32 to vector<1x128xi32>
    %58 = arith.cmpi slt, %54, %57 : vector<1x128xi32>
    %59 = arith.andi %56, %58 : vector<1x128xi1>
    %cst_44 = arith.constant 1.000000e+00 : f32
    %cst_45 = arith.constant 5.000000e-01 : f32
    %60 = vector.broadcast %cst_44 : f32 to vector<1x128xf32>
    %61 = vector.broadcast %cst_45 : f32 to vector<1x128xf32>
    %62 = arith.select %59, %60, %61 : vector<1x128xi1>, vector<1x128xf32>
    %cst_46 = arith.constant 0.000000e+00 : f32
    %cst_47 = arith.constant 5.000000e-01 : f32
    %63 = vector.broadcast %cst_46 : f32 to vector<1x128xf32>
    %64 = vector.broadcast %cst_47 : f32 to vector<1x128xf32>
    %65 = arith.select %59, %63, %64 : vector<1x128xi1>, vector<1x128xf32>
    %c0_48 = arith.constant 0 : index
    %c0_49 = arith.constant 0 : index
    %66 = vector.load %arg3[%c0_48, %c0_49] : memref<128x32xf32, #tpu.memory_space<vmem>>, vector<128x32xf32>
    %cst_50 = arith.constant 0.000000e+00 : f32
    %67 = vector.broadcast %cst_50 : f32 to vector<2x32xf32>
    %cst_51 = arith.constant 0.000000e+00 : f32
    %68 = vector.broadcast %cst_51 : f32 to vector<2x32xf32>
    %69 = vector.extract_strided_slice %53 {offsets = [0, 0], sizes = [2, 128], strides = [1, 1]} : vector<16x128xf32> to vector<2x128xf32>
    %cst_52 = arith.constant dense<0.000000e+00> : vector<2x128xf32>
    %70 = tpu.matmul %67, %66, %cst_52 {dimension_numbers = #tpu.dot_dimension_numbers<[1], [1], [0], [0], [0, 0, 1, 0], [], []>, precision = #tpu.contract_precision<fp32>} : vector<2x32xf32>, vector<128x32xf32>, vector<2x128xf32> -> vector<2x128xf32>
    %71 = arith.addf %69, %70 : vector<2x128xf32>
    %72 = vector.broadcast %62 : vector<1x128xf32> to vector<2x128xf32>
    %73 = arith.mulf %71, %72 : vector<2x128xf32>
    %74 = math.tanh %73 : vector<2x128xf32>
    %75 = vector.broadcast %62 : vector<1x128xf32> to vector<2x128xf32>
    %76 = arith.mulf %75, %74 : vector<2x128xf32>
    %77 = vector.broadcast %65 : vector<1x128xf32> to vector<2x128xf32>
    %78 = arith.addf %76, %77 : vector<2x128xf32>
    %79 = vector.extract_strided_slice %78 {offsets = [0, 0], sizes = [2, 32], strides = [1, 1]} : vector<2x128xf32> to vector<2x32xf32>
    %80 = vector.extract_strided_slice %78 {offsets = [0, 32], sizes = [2, 32], strides = [1, 1]} : vector<2x128xf32> to vector<2x32xf32>
    %81 = vector.extract_strided_slice %78 {offsets = [0, 64], sizes = [2, 32], strides = [1, 1]} : vector<2x128xf32> to vector<2x32xf32>
    %82 = vector.extract_strided_slice %78 {offsets = [0, 96], sizes = [2, 32], strides = [1, 1]} : vector<2x128xf32> to vector<2x32xf32>
    %83 = arith.mulf %80, %68 : vector<2x32xf32>
    %84 = arith.mulf %79, %81 : vector<2x32xf32>
    %85 = arith.addf %83, %84 : vector<2x32xf32>
    %86 = math.tanh %85 : vector<2x32xf32>
    %87 = arith.mulf %82, %86 : vector<2x32xf32>
    %88 = vector.extract_strided_slice %53 {offsets = [2, 0], sizes = [2, 128], strides = [1, 1]} : vector<16x128xf32> to vector<2x128xf32>
    %cst_53 = arith.constant dense<0.000000e+00> : vector<2x128xf32>
    %89 = tpu.matmul %87, %66, %cst_53 {dimension_numbers = #tpu.dot_dimension_numbers<[1], [1], [0], [0], [0, 0, 1, 0], [], []>, precision = #tpu.contract_precision<fp32>} : vector<2x32xf32>, vector<128x32xf32>, vector<2x128xf32> -> vector<2x128xf32>
    %90 = arith.addf %88, %89 : vector<2x128xf32>
    %91 = vector.broadcast %62 : vector<1x128xf32> to vector<2x128xf32>
    %92 = arith.mulf %90, %91 : vector<2x128xf32>
    %93 = math.tanh %92 : vector<2x128xf32>
    %94 = vector.broadcast %62 : vector<1x128xf32> to vector<2x128xf32>
    %95 = arith.mulf %94, %93 : vector<2x128xf32>
    %96 = vector.broadcast %65 : vector<1x128xf32> to vector<2x128xf32>
    %97 = arith.addf %95, %96 : vector<2x128xf32>
    %98 = vector.extract_strided_slice %97 {offsets = [0, 0], sizes = [2, 32], strides = [1, 1]} : vector<2x128xf32> to vector<2x32xf32>
    %99 = vector.extract_strided_slice %97 {offsets = [0, 32], sizes = [2, 32], strides = [1, 1]} : vector<2x128xf32> to vector<2x32xf32>
    %100 = vector.extract_strided_slice %97 {offsets = [0, 64], sizes = [2, 32], strides = [1, 1]} : vector<2x128xf32> to vector<2x32xf32>
    %101 = vector.extract_strided_slice %97 {offsets = [0, 96], sizes = [2, 32], strides = [1, 1]} : vector<2x128xf32> to vector<2x32xf32>
    %102 = arith.mulf %99, %85 : vector<2x32xf32>
    %103 = arith.mulf %98, %100 : vector<2x32xf32>
    %104 = arith.addf %102, %103 : vector<2x32xf32>
    %105 = math.tanh %104 : vector<2x32xf32>
    %106 = arith.mulf %101, %105 : vector<2x32xf32>
    %107 = vector.extract_strided_slice %53 {offsets = [4, 0], sizes = [2, 128], strides = [1, 1]} : vector<16x128xf32> to vector<2x128xf32>
    %cst_54 = arith.constant dense<0.000000e+00> : vector<2x128xf32>
    %108 = tpu.matmul %106, %66, %cst_54 {dimension_numbers = #tpu.dot_dimension_numbers<[1], [1], [0], [0], [0, 0, 1, 0], [], []>, precision = #tpu.contract_precision<fp32>} : vector<2x32xf32>, vector<128x32xf32>, vector<2x128xf32> -> vector<2x128xf32>
    %109 = arith.addf %107, %108 : vector<2x128xf32>
    %110 = vector.broadcast %62 : vector<1x128xf32> to vector<2x128xf32>
    %111 = arith.mulf %109, %110 : vector<2x128xf32>
    %112 = math.tanh %111 : vector<2x128xf32>
    %113 = vector.broadcast %62 : vector<1x128xf32> to vector<2x128xf32>
    %114 = arith.mulf %113, %112 : vector<2x128xf32>
    %115 = vector.broadcast %65 : vector<1x128xf32> to vector<2x128xf32>
    %116 = arith.addf %114, %115 : vector<2x128xf32>
    %117 = vector.extract_strided_slice %116 {offsets = [0, 0], sizes = [2, 32], strides = [1, 1]} : vector<2x128xf32> to vector<2x32xf32>
    %118 = vector.extract_strided_slice %116 {offsets = [0, 32], sizes = [2, 32], strides = [1, 1]} : vector<2x128xf32> to vector<2x32xf32>
    %119 = vector.extract_strided_slice %116 {offsets = [0, 64], sizes = [2, 32], strides = [1, 1]} : vector<2x128xf32> to vector<2x32xf32>
    %120 = vector.extract_strided_slice %116 {offsets = [0, 96], sizes = [2, 32], strides = [1, 1]} : vector<2x128xf32> to vector<2x32xf32>
    %121 = arith.mulf %118, %104 : vector<2x32xf32>
    %122 = arith.mulf %117, %119 : vector<2x32xf32>
    %123 = arith.addf %121, %122 : vector<2x32xf32>
    %124 = math.tanh %123 : vector<2x32xf32>
    %125 = arith.mulf %120, %124 : vector<2x32xf32>
    %126 = vector.extract_strided_slice %53 {offsets = [6, 0], sizes = [2, 128], strides = [1, 1]} : vector<16x128xf32> to vector<2x128xf32>
    %cst_55 = arith.constant dense<0.000000e+00> : vector<2x128xf32>
    %127 = tpu.matmul %125, %66, %cst_55 {dimension_numbers = #tpu.dot_dimension_numbers<[1], [1], [0], [0], [0, 0, 1, 0], [], []>, precision = #tpu.contract_precision<fp32>} : vector<2x32xf32>, vector<128x32xf32>, vector<2x128xf32> -> vector<2x128xf32>
    %128 = arith.addf %126, %127 : vector<2x128xf32>
    %129 = vector.broadcast %62 : vector<1x128xf32> to vector<2x128xf32>
    %130 = arith.mulf %128, %129 : vector<2x128xf32>
    %131 = math.tanh %130 : vector<2x128xf32>
    %132 = vector.broadcast %62 : vector<1x128xf32> to vector<2x128xf32>
    %133 = arith.mulf %132, %131 : vector<2x128xf32>
    %134 = vector.broadcast %65 : vector<1x128xf32> to vector<2x128xf32>
    %135 = arith.addf %133, %134 : vector<2x128xf32>
    %136 = vector.extract_strided_slice %135 {offsets = [0, 0], sizes = [2, 32], strides = [1, 1]} : vector<2x128xf32> to vector<2x32xf32>
    %137 = vector.extract_strided_slice %135 {offsets = [0, 32], sizes = [2, 32], strides = [1, 1]} : vector<2x128xf32> to vector<2x32xf32>
    %138 = vector.extract_strided_slice %135 {offsets = [0, 64], sizes = [2, 32], strides = [1, 1]} : vector<2x128xf32> to vector<2x32xf32>
    %139 = vector.extract_strided_slice %135 {offsets = [0, 96], sizes = [2, 32], strides = [1, 1]} : vector<2x128xf32> to vector<2x32xf32>
    %140 = arith.mulf %137, %123 : vector<2x32xf32>
    %141 = arith.mulf %136, %138 : vector<2x32xf32>
    %142 = arith.addf %140, %141 : vector<2x32xf32>
    %143 = math.tanh %142 : vector<2x32xf32>
    %144 = arith.mulf %139, %143 : vector<2x32xf32>
    %145 = vector.extract_strided_slice %53 {offsets = [8, 0], sizes = [2, 128], strides = [1, 1]} : vector<16x128xf32> to vector<2x128xf32>
    %cst_56 = arith.constant dense<0.000000e+00> : vector<2x128xf32>
    %146 = tpu.matmul %144, %66, %cst_56 {dimension_numbers = #tpu.dot_dimension_numbers<[1], [1], [0], [0], [0, 0, 1, 0], [], []>, precision = #tpu.contract_precision<fp32>} : vector<2x32xf32>, vector<128x32xf32>, vector<2x128xf32> -> vector<2x128xf32>
    %147 = arith.addf %145, %146 : vector<2x128xf32>
    %148 = vector.broadcast %62 : vector<1x128xf32> to vector<2x128xf32>
    %149 = arith.mulf %147, %148 : vector<2x128xf32>
    %150 = math.tanh %149 : vector<2x128xf32>
    %151 = vector.broadcast %62 : vector<1x128xf32> to vector<2x128xf32>
    %152 = arith.mulf %151, %150 : vector<2x128xf32>
    %153 = vector.broadcast %65 : vector<1x128xf32> to vector<2x128xf32>
    %154 = arith.addf %152, %153 : vector<2x128xf32>
    %155 = vector.extract_strided_slice %154 {offsets = [0, 0], sizes = [2, 32], strides = [1, 1]} : vector<2x128xf32> to vector<2x32xf32>
    %156 = vector.extract_strided_slice %154 {offsets = [0, 32], sizes = [2, 32], strides = [1, 1]} : vector<2x128xf32> to vector<2x32xf32>
    %157 = vector.extract_strided_slice %154 {offsets = [0, 64], sizes = [2, 32], strides = [1, 1]} : vector<2x128xf32> to vector<2x32xf32>
    %158 = vector.extract_strided_slice %154 {offsets = [0, 96], sizes = [2, 32], strides = [1, 1]} : vector<2x128xf32> to vector<2x32xf32>
    %159 = arith.mulf %156, %142 : vector<2x32xf32>
    %160 = arith.mulf %155, %157 : vector<2x32xf32>
    %161 = arith.addf %159, %160 : vector<2x32xf32>
    %162 = math.tanh %161 : vector<2x32xf32>
    %163 = arith.mulf %158, %162 : vector<2x32xf32>
    %164 = vector.extract_strided_slice %53 {offsets = [10, 0], sizes = [2, 128], strides = [1, 1]} : vector<16x128xf32> to vector<2x128xf32>
    %cst_57 = arith.constant dense<0.000000e+00> : vector<2x128xf32>
    %165 = tpu.matmul %163, %66, %cst_57 {dimension_numbers = #tpu.dot_dimension_numbers<[1], [1], [0], [0], [0, 0, 1, 0], [], []>, precision = #tpu.contract_precision<fp32>} : vector<2x32xf32>, vector<128x32xf32>, vector<2x128xf32> -> vector<2x128xf32>
    %166 = arith.addf %164, %165 : vector<2x128xf32>
    %167 = vector.broadcast %62 : vector<1x128xf32> to vector<2x128xf32>
    %168 = arith.mulf %166, %167 : vector<2x128xf32>
    %169 = math.tanh %168 : vector<2x128xf32>
    %170 = vector.broadcast %62 : vector<1x128xf32> to vector<2x128xf32>
    %171 = arith.mulf %170, %169 : vector<2x128xf32>
    %172 = vector.broadcast %65 : vector<1x128xf32> to vector<2x128xf32>
    %173 = arith.addf %171, %172 : vector<2x128xf32>
    %174 = vector.extract_strided_slice %173 {offsets = [0, 0], sizes = [2, 32], strides = [1, 1]} : vector<2x128xf32> to vector<2x32xf32>
    %175 = vector.extract_strided_slice %173 {offsets = [0, 32], sizes = [2, 32], strides = [1, 1]} : vector<2x128xf32> to vector<2x32xf32>
    %176 = vector.extract_strided_slice %173 {offsets = [0, 64], sizes = [2, 32], strides = [1, 1]} : vector<2x128xf32> to vector<2x32xf32>
    %177 = vector.extract_strided_slice %173 {offsets = [0, 96], sizes = [2, 32], strides = [1, 1]} : vector<2x128xf32> to vector<2x32xf32>
    %178 = arith.mulf %175, %161 : vector<2x32xf32>
    %179 = arith.mulf %174, %176 : vector<2x32xf32>
    %180 = arith.addf %178, %179 : vector<2x32xf32>
    %181 = math.tanh %180 : vector<2x32xf32>
    %182 = arith.mulf %177, %181 : vector<2x32xf32>
    %183 = vector.extract_strided_slice %53 {offsets = [12, 0], sizes = [2, 128], strides = [1, 1]} : vector<16x128xf32> to vector<2x128xf32>
    %cst_58 = arith.constant dense<0.000000e+00> : vector<2x128xf32>
    %184 = tpu.matmul %182, %66, %cst_58 {dimension_numbers = #tpu.dot_dimension_numbers<[1], [1], [0], [0], [0, 0, 1, 0], [], []>, precision = #tpu.contract_precision<fp32>} : vector<2x32xf32>, vector<128x32xf32>, vector<2x128xf32> -> vector<2x128xf32>
    %185 = arith.addf %183, %184 : vector<2x128xf32>
    %186 = vector.broadcast %62 : vector<1x128xf32> to vector<2x128xf32>
    %187 = arith.mulf %185, %186 : vector<2x128xf32>
    %188 = math.tanh %187 : vector<2x128xf32>
    %189 = vector.broadcast %62 : vector<1x128xf32> to vector<2x128xf32>
    %190 = arith.mulf %189, %188 : vector<2x128xf32>
    %191 = vector.broadcast %65 : vector<1x128xf32> to vector<2x128xf32>
    %192 = arith.addf %190, %191 : vector<2x128xf32>
    %193 = vector.extract_strided_slice %192 {offsets = [0, 0], sizes = [2, 32], strides = [1, 1]} : vector<2x128xf32> to vector<2x32xf32>
    %194 = vector.extract_strided_slice %192 {offsets = [0, 32], sizes = [2, 32], strides = [1, 1]} : vector<2x128xf32> to vector<2x32xf32>
    %195 = vector.extract_strided_slice %192 {offsets = [0, 64], sizes = [2, 32], strides = [1, 1]} : vector<2x128xf32> to vector<2x32xf32>
    %196 = vector.extract_strided_slice %192 {offsets = [0, 96], sizes = [2, 32], strides = [1, 1]} : vector<2x128xf32> to vector<2x32xf32>
    %197 = arith.mulf %194, %180 : vector<2x32xf32>
    %198 = arith.mulf %193, %195 : vector<2x32xf32>
    %199 = arith.addf %197, %198 : vector<2x32xf32>
    %200 = math.tanh %199 : vector<2x32xf32>
    %201 = arith.mulf %196, %200 : vector<2x32xf32>
    %202 = vector.extract_strided_slice %53 {offsets = [14, 0], sizes = [2, 128], strides = [1, 1]} : vector<16x128xf32> to vector<2x128xf32>
    %cst_59 = arith.constant dense<0.000000e+00> : vector<2x128xf32>
    %203 = tpu.matmul %201, %66, %cst_59 {dimension_numbers = #tpu.dot_dimension_numbers<[1], [1], [0], [0], [0, 0, 1, 0], [], []>, precision = #tpu.contract_precision<fp32>} : vector<2x32xf32>, vector<128x32xf32>, vector<2x128xf32> -> vector<2x128xf32>
    %204 = arith.addf %202, %203 : vector<2x128xf32>
    %205 = vector.broadcast %62 : vector<1x128xf32> to vector<2x128xf32>
    %206 = arith.mulf %204, %205 : vector<2x128xf32>
    %207 = math.tanh %206 : vector<2x128xf32>
    %208 = vector.broadcast %62 : vector<1x128xf32> to vector<2x128xf32>
    %209 = arith.mulf %208, %207 : vector<2x128xf32>
    %210 = vector.broadcast %65 : vector<1x128xf32> to vector<2x128xf32>
    %211 = arith.addf %209, %210 : vector<2x128xf32>
    %212 = vector.extract_strided_slice %211 {offsets = [0, 0], sizes = [2, 32], strides = [1, 1]} : vector<2x128xf32> to vector<2x32xf32>
    %213 = vector.extract_strided_slice %211 {offsets = [0, 32], sizes = [2, 32], strides = [1, 1]} : vector<2x128xf32> to vector<2x32xf32>
    %214 = vector.extract_strided_slice %211 {offsets = [0, 64], sizes = [2, 32], strides = [1, 1]} : vector<2x128xf32> to vector<2x32xf32>
    %215 = vector.extract_strided_slice %211 {offsets = [0, 96], sizes = [2, 32], strides = [1, 1]} : vector<2x128xf32> to vector<2x32xf32>
    %216 = arith.mulf %213, %199 : vector<2x32xf32>
    %217 = arith.mulf %212, %214 : vector<2x32xf32>
    %218 = arith.addf %216, %217 : vector<2x32xf32>
    %219 = math.tanh %218 : vector<2x32xf32>
    %220 = arith.mulf %215, %219 : vector<2x32xf32>
    %cst_60 = arith.constant 0.000000e+00 : f32
    %221 = vector.broadcast %cst_60 : f32 to vector<2x64xf32>
    %222 = tpu.concatenate %87, %106, %125, %144, %163, %182, %201, %220, %220, %218, %221 in 1 : vector<2x32xf32>, vector<2x32xf32>, vector<2x32xf32>, vector<2x32xf32>, vector<2x32xf32>, vector<2x32xf32>, vector<2x32xf32>, vector<2x32xf32>, vector<2x32xf32>, vector<2x32xf32>, vector<2x64xf32> -> vector<2x384xf32>
    %c0_61 = arith.constant 0 : index
    %c0_62 = arith.constant 0 : index
    %223 = vector.load %arg5[%c0_61, %c0_62] : memref<2x384xf32, #tpu.memory_space<vmem>>, vector<2x384xf32>
    tpu.vector_store %arg5[%c0_61, %c0_62], %222 {strides = array<i32>} : memref<2x384xf32, #tpu.memory_space<vmem>>, vector<2x384xf32>,
    return
  }
}

</mosaic_0001>

<bundles_post_ra>
// kernel: encoder_forward.1
= control target key start
LH: loop header
LB: loop body
LE: loop exit
PB: predicated region body
PF: predicated region fallthrough
CT: control target
= control target key end

     0   :  { %10 = vsyncpa [#allocation3], 0  ;;  %s12702_s0 = inlined_call_operand.vmem [shape: s32[2,8], index: 0, kind: input, shape index: {}]   ;;  %s12703_s1 = inlined_call_operand.vmem [shape: f32[16,32], index: 1, kind: input, shape index: {}]   ;;  %s12704_s2 = inlined_call_operand.vmem [shape: f32[128,32], index: 2, kind: input, shape index: {}]   ;;  %s12705_s3 = inlined_call_operand.vmem [shape: f32[128,32], index: 3, kind: input, shape index: {}]   ;;  %s12706_s4 = inlined_call_operand.vmem [shape: f32[1,128], index: 4, kind: input, shape index: {}]   ;;  %s12707_s5 = inlined_call_operand.vmem [shape: f32[2,384], index: 5, kind: output, shape index: {}]  }
   0x1   :  { %s17_s20 = sshll.u32 %s12702_s0, 4  ;;  %s18_s20 = int_to_ptr.vmem [resolvable:$true] %s17_s20 }
   0x2   :  { %s10726_s21 = scalar_lea.vmem %s18_s20, 32  ;;  %p10731_p1 = scmp.lt.s32.totalorder %s18_s20, %s18_s20 }
   0x3   :  { %p10727_p0 = scmp.ne.s32.totalorder %s18_s20, %s10726_s21  ;;  %p10732_p2 = scmp.lt.s32.totalorder %s10726_s21, %s10726_s21 }
   0x5   :  { %p10733_p3 = por %p10732_p2, %p10731_p1 }
   0x7   :  { %p10734_p4 = pnand %p10733_p3, %p10727_p0 }
   0x9   :  { %10737 = shalt.err (!%p10734_p4)
}
   0xa   :  { %s10740_s22 = smov [#allocation2]  }
   0xb   :  { %20 = dma.vmem_to_smem %s18_s20, 32, %s10740_s22, [#allocation3]  }
   0xc   :  { %10738 = dma.done.wait [#allocation3], 32  }
   0xd   :  { %10739 = vsyncadd [#allocation3], 4294967264 }
   0xe   :  { %32 = sfence }
   0xf   :  { %v144_v0 = vld [vmem:[%s12704_s2] sm:$0xff]  ;;  %v145_v1 = vld [vmem:[%s12704_s2 + $0x8] sm:$0xff]  ;;  %vm167_vm0 = vcmask 261120   ;;  %v146_v2 = vld [vmem:[%s12704_s2 + $0x10] sm:$0xff]  ;;  %s10803_s30 = sld [smem:[#allocation2]]  ;;  %s6440_s15 = sld [smem:[#allocation2 + $0x1]] }
  0x10   :  { %v10792_v3 = vsel %vm167_vm0, %v144_v0, 0  ;;  %v10795_v4 = vsel %vm167_vm0, %v145_v1, 0  ;;  %v147_v5 = vld [vmem:[%s12704_s2 + $0x18] sm:$0xff]  ;;  %v10801_v6 = vsel %vm167_vm0, %v146_v2, 0  ;;  %v148_v11 = vld [vmem:[%s12704_s2 + $0x20] sm:$0xff]  ;;  %v149_v12 = vld [vmem:[%s12704_s2 + $0x28] sm:$0xff] }
  0x11   :  { %v223_v7 = vand.u32 4294901760, %v10792_v3  ;;  %v226_v8 = vand.u32 4294901760, %v10795_v4  ;;  %v10808_v9 = vsel %vm167_vm0, %v147_v5, 0  ;;  %v229_v10 = vand.u32 4294901760, %v10801_v6  ;;  %s6439_s10 = sld [smem:[#allocation2 + $0x80]]  ;;  %v150_v20 = vld [vmem:[%s12704_s2 + $0x30] sm:$0xff] }
  0x12   :  { %v232_v13 = vand.u32 4294901760, %v10808_v9  ;;  %v10831_v16 = vsel %vm167_vm0, %v148_v11, 0  ;;  %v10834_v17 = vsel %vm167_vm0, %v149_v12, 0  ;;  %v151_v21 = vld [vmem:[%s12704_s2 + $0x38] sm:$0xff]  ;;  %s10854_s19 = sld [smem:[#allocation2 + $0x81]]  ;;  %s10856_s20 = sld [smem:[#allocation2 + $0x2]] }
  0x13   :  { %v10822_v14 = vpack.c.bf16 %v226_v8, %v223_v7  ;;  %v235_v18 = vand.u32 4294901760, %v10831_v16  ;;  %v238_v19 = vand.u32 4294901760, %v10834_v17  ;;  %s10858_s21 = sld [smem:[#allocation2 + $0x82]]  ;;  %v10861_v22 = vsel %vm167_vm0, %v150_v20, 0  ;;  %s10866_s22 = sld [smem:[#allocation2 + $0x3]]  ;;  %v152_v25 = vld [vmem:[%s12704_s2 + $0x40] sm:$0xff] }
  0x14   :  { %v10828_v15 = vpack.c.bf16 %v232_v13, %v229_v10  ;;  %v10864_v23 = vsel %vm167_vm0, %v151_v21, 0  ;;  %s10868_s23 = sld [smem:[#allocation2 + $0x83]]  ;;  %s10882_s28 = sld [smem:[#allocation2 + $0x4]]  ;;  %vm123_vm1 = vcmask 1040384   ;;  %v241_v28 = vand.u32 4294901760, %v10861_v22  ;;  %v153_v33 = vld [vmem:[%s12704_s2 + $0x48] sm:$0xff] }
  0x15   :  { %9270 = vmatprep.subr.bf16.mxu1 %v10822_v14  ;;  %9366 = vmatprep.subr.bf16.mxu0 %v10822_v14  ;;  %s34_s18 = scalar_lea.vmem %s12703_s1, %s10803_s30  ;;  %v10874_v24 = vpack.c.bf16 %v238_v19, %v235_v18  ;;  %v244_v29 = vand.u32 4294901760, %v10864_v23  ;;  %s40_s6 = scalar_lea.vmem %s12703_s1, %s6440_s15  ;;  %v10894_v31 = vsel %vm167_vm0, %v152_v25, 0  ;;  %vm125_vm2 = vcmask 1041408   ;;  %v154_v0 = vld [vmem:[%s12704_s2 + $0x50] sm:$0xff]  ;;  %v155_v1 = vld [vmem:[%s12704_s2 + $0x58] sm:$0xff] }
  0x16   :  { %9272 = vmatpush3.bf16.xpose.msra.mxu1 %v10822_v14  ;;  %9368 = vmatpush3.bf16.xpose.msra.mxu0 %v10822_v14  ;;  %v35_v26 = vld [vmem:[%s34_s18] sm:$0x1]  ;;  %s10889_s7 = sld [smem:[#allocation2 + $0x84]]  ;;  %s10900_s11 = sld [smem:[#allocation2 + $0x5]]  ;;  %vm127_vm3 = vcmask 1042432   ;;  %vm129_vm4 = vcmask 1043456  }
  0x17   :  { %9274 = vmatprep.subr.bf16.mxu1 %v10828_v15  ;;  %9370 = vmatprep.subr.bf16.mxu0 %v10828_v15  ;;  %s37_s27 = scalar_lea.vmem %s12703_s1, %s6439_s10  ;;  %v41_v32 = vld [vmem:[%s40_s6] sm:$0x1]  ;;  %vm131_vm5 = vcmask 1044480   ;;  %vm133_vm6 = vcmask 1045504   ;;  %v10934_v48 = vpack.c.bf16 %v244_v29, %v241_v28  ;;  %v10937_v49 = vsel %vm167_vm0, %v153_v33, 0  ;;  %s6449_s6 = sld [smem:[#allocation2 + $0x85]] }
  0x18   :  { %v38_v27 = vld [vmem:[%s37_s27] sm:$0x1]  ;;  %s43_s10 = scalar_lea.vmem %s12703_s1, %s10854_s19  ;;  %s46_s16 = scalar_lea.vmem %s12703_s1, %s10856_s20  ;;  %v85_v35 = vrot.slane %v41_v32, 6  ;;  %vm135_vm7 = vcmask 1046528   ;;  %v247_v58 = vand.u32 4294901760, %v10894_v31  ;;  %v250_v59 = vand.u32 4294901760, %v10937_v49 }
  0x19   :  { %v82_v30 = vrot.slane %v38_v27, 7  ;;  %v44_v34 = vld [vmem:[%s43_s10] sm:$0x1]  ;;  %s49_s19 = scalar_lea.vmem %s12703_s1, %s10858_s21  ;;  %s52_s26 = scalar_lea.vmem %s12703_s1, %s10866_s22  ;;  %v205_v25 = vsel %vm167_vm0, %v154_v0, 0  ;;  %vm10742_vm8 = vmmov 0   ;;  %vm6388_vm12 = vcmask 523264  }
  0x1a   :  { %v47_v37 = vld [vmem:[%s46_s16] sm:$0x1]  ;;  %s55_s20 = scalar_lea.vmem %s12703_s1, %s10868_s23  ;;  %v88_v39 = vrot.slane %v44_v34, 5  ;;  %s58_s30 = scalar_lea.vmem %s12703_s1, %s10882_s28  ;;  %v10986_v11 = vpack.c.bf16 %v250_v59, %v247_v58  ;;  %vm6390_vm13 = vcmask 785408  }
  0x1b   :  { %v124_v36 = vsel %vm123_vm1, %v35_v26, %v82_v30  ;;  %v50_v38 = vld [vmem:[%s49_s19] sm:$0x1]  ;;  %v91_v42 = vrot.slane %v47_v37, 4  ;;  %s6450_s12 = sld [smem:[#allocation2 + $0x6]]  ;;  %s10952_s14 = sld [smem:[#allocation2 + $0x7]]  ;;  %v208_v26 = vsel %vm167_vm0, %v155_v1, 0 }
  0x1c   :  { %v53_v40 = vld [vmem:[%s52_s26] sm:$0x1]  ;;  %v94_v43 = vrot.slane %v50_v38, 3  ;;  %v126_v44 = vsel %vm125_vm2, %v124_v36, %v85_v35  ;;  %s61_s28 = scalar_lea.vmem %s12703_s1, %s10889_s7  ;;  %s64_s10 = scalar_lea.vmem %s12703_s1, %s10900_s11  ;;  %v253_v35 = vand.u32 4294901760, %v205_v25  ;;  %v256_v36 = vand.u32 4294901760, %v208_v26  ;;  %v157_v38 = vld [vmem:[%s12704_s2 + $0x68] sm:$0xff] }
  0x1d   :  { %v56_v41 = vld [vmem:[%s55_s20] sm:$0x1]  ;;  %v97_v45 = vrot.slane %v53_v40, 2  ;;  %v128_v47 = vsel %vm127_vm3, %v126_v44, %v88_v39  ;;  %s10950_s13 = sld [smem:[#allocation2 + $0x86]]  ;;  %s67_s19 = scalar_lea.vmem %s12703_s1, %s6449_s6  ;;  %v11021_v44 = vsub.f32 %v10792_v3, %v223_v7  ;;  %v11039_v3 = vsub.f32 %v10801_v6, %v229_v10 }
  0x1e   :  { %9276 = vmatpush3.bf16.xpose.msra.mxu1 %v10828_v15  ;;  %9372 = vmatpush3.bf16.xpose.msra.mxu0 %v10828_v15  ;;  %v100_v46 = vrot.slane %v56_v41, 1  ;;  %v130_v50 = vsel %vm129_vm4, %v128_v47, %v91_v42  ;;  %v59_v52 = vld [vmem:[%s58_s30] sm:$0x1]  ;;  %s10974_s24 = sld [smem:[#allocation2 + $0x87]]  ;;  %v214_v47 = vsel %vm167_vm0, %v157_v38, 0  ;;  %v11049_v7 = vsub.f32 %v10831_v16, %v235_v18  ;;  %s10746_s18 = smov 32  }
  0x1f   :  { %9278 = vmatprep.subr.bf16.mxu1 %v10874_v24  ;;  %9374 = vmatprep.subr.bf16.mxu0 %v10874_v24  ;;  %v132_v51 = vsel %vm131_vm5, %v130_v50, %v94_v43  ;;  %v62_v53 = vld [vmem:[%s61_s28] sm:$0x1]  ;;  %v11056_v6 = vsub.f32 %v10834_v17, %v238_v19  ;;  %v11066_v10 = vsub.f32 %v10864_v23, %v244_v29  ;;  %v158_v29 = vld [vmem:[%s12704_s2 + $0x70] sm:$0xff]  ;;  %v340_v38 = vand.u32 4294901760, %v11039_v3 }
  0x20   :  { %v134_v54 = vsel %vm133_vm6, %v132_v51, %v97_v45  ;;  %v65_v55 = vld [vmem:[%s64_s10] sm:$0x1]  ;;  %v103_v57 = vrot.slane %v62_v53, 7  ;;  %v11026_v45 = vsub.f32 %v10795_v4, %v226_v8  ;;  %v11044_v4 = vsub.f32 %v10808_v9, %v232_v13 }
  0x21   :  { %v136_v56 = vsel %vm135_vm7, %v134_v54, %v100_v46  ;;  %v106_v61 = vrot.slane %v65_v55, 6  ;;  %v68_v5 = vld [vmem:[%s67_s19] sm:$0x1]  ;;  %s70_s0 = scalar_lea.vmem %s12703_s1, %s6450_s12  ;;  %s76_s22 = scalar_lea.vmem %s12703_s1, %s10952_s14  ;;  %v11028_v46 = vpack.c.bf16 %v256_v36, %v253_v35  ;;  %v262_v8 = vand.u32 4294901760, %v214_v47 }
  0x22   :  { %v169_v60 = vsel %vm167_vm0, %v136_v56, 0  ;;  %v137_v63 = vsel %vm123_vm1, %v59_v52, %v103_v57  ;;  %v71_v12 = vld [vmem:[%s70_s0] sm:$0x1]  ;;  %v109_v20 = vrot.slane %v68_v5, 5  ;;  %v11034_v53 = vpack.c.bf16 %v11026_v45, %v11021_v44  ;;  %s10747_s19 = smov 96  }
  0x23   :  { %v10962_v62 = vand.u32 4294901760, %v169_v60  ;;  %s73_s21 = scalar_lea.vmem %s12703_s1, %s10950_s13  ;;  %v138_v21 = vsel %vm125_vm2, %v137_v63, %v106_v61  ;;  %v112_v32 = vrot.slane %v71_v12, 4  ;;  %v156_v37 = vld [vmem:[%s12704_s2 + $0x60] sm:$0xff]  ;;  %v11061_v9 = vsub.f32 %v10861_v22, %v241_v28 }
  0x24   :  { %v74_v30 = vld [vmem:[%s73_s21] sm:$0x1]  ;;  %v139_v34 = vsel %vm127_vm3, %v138_v21, %v109_v20  ;;  %s79_s12 = scalar_lea.vmem %s12703_s1, %s10974_s24  ;;  %v211_v43 = vsel %vm167_vm0, %v156_v37, 0  ;;  %v11074_v17 = vsub.f32 %v10894_v31, %v247_v58  ;;  %v11079_v18 = vsub.f32 %v10937_v49, %v250_v59  ;;  %v159_v31 = vld [vmem:[%s12704_s2 + $0x78] sm:$0xff] }
  0x25   :  { %v10977_v2 = vsub.f32 %v169_v60, %v10962_v62  ;;  %v77_v40 = vld [vmem:[%s76_s22] sm:$0x1]  ;;  %v115_v41 = vrot.slane %v74_v30, 3  ;;  %v140_v42 = vsel %vm129_vm4, %v139_v34, %v112_v32  ;;  %v259_v54 = vand.u32 4294901760, %v211_v43 }
  0x26   :  { %9280 = vmatpush3.bf16.xpose.msra.mxu1 %v10874_v24  ;;  %9376 = vmatpush3.bf16.xpose.msra.mxu0 %v10874_v24  ;;  %v118_v50 = vrot.slane %v77_v40, 2  ;;  %v80_v51 = vld [vmem:[%s79_s12] sm:$0x1]  ;;  %v11081_v19 = vsub.f32 %v205_v25, %v253_v35  ;;  %v11083_v22 = vsub.f32 %v208_v26, %v256_v36  ;;  %v11087_v23 = vpack.c.bf16 %v11044_v4, %v11039_v3 }
  0x27   :  { %9282 = vmatprep.subr.bf16.mxu1 %v10934_v48  ;;  %9378 = vmatprep.subr.bf16.mxu0 %v10934_v48  ;;  %v305_v27 = vand.u32 4294901760, %v10977_v2  ;;  %v141_v52 = vsel %vm131_vm5, %v140_v42, %v115_v41  ;;  %v121_v13 = vrot.slane %v80_v51, 1  ;;  %v11091_v28 = vpack.c.bf16 %v11056_v6, %v11049_v7 }
  0x28   :  { %v142_v16 = vsel %vm133_vm6, %v141_v52, %v118_v50  ;;  %v11101_v49 = vpack.c.bf16 %v11066_v10, %v11061_v9  ;;  %v11105_v55 = vpack.c.bf16 %v11079_v18, %v11074_v17  ;;  %v11109_v56 = vpack.c.bf16 %v11083_v22, %v11081_v19 }
  0x29   :  { %v306_v33 = vsub.f32 %v10977_v2, %v305_v27  ;;  %7516 = vmatprep.mubr.f32.mxu0 %v305_v27  ;;  %v11111_v57 = vpack.c.bf16 %v262_v8, %v259_v54  ;;  %v143_v58 = vsel %vm135_vm7, %v142_v16, %v121_v13  ;;  %v217_v59 = vsel %vm167_vm0, %v158_v29, 0 }
  0x2a   :  { %v220_v60 = vsel %vm167_vm0, %v159_v31, 0  ;;  %v11116_v61 = vsub.f32 %v211_v43, %v259_v54  ;;  %v11118_v63 = vsub.f32 %v214_v47, %v262_v8  ;;  %v172_v0 = vsel %vm167_vm0, %v143_v58, 0 }
  0x2b   :  { %v307_v39 = vand.u32 4294901760, %v306_v33  ;;  %v265_v5 = vand.u32 4294901760, %v217_v59  ;;  %v268_v12 = vand.u32 4294901760, %v220_v60  ;;  %v326_v20 = vand.u32 4294901760, %v11021_v44 }
  0x2c   :  { %v11125_v1 = vpack.c.bf16 %v11118_v63, %v11116_v61  ;;  %v333_v21 = vand.u32 4294901760, %v11026_v45  ;;  %v11131_v25 = vand.u32 4294901760, %v172_v0  ;;  %v341_v43 = vsub.f32 %v11039_v3, %v340_v38 }
  0x2d   :  { %7411 = vmatprep.mubr.f32.mxu1 %v307_v39  ;;  %v11133_v26 = vpack.c.bf16 %v268_v12, %v265_v5  ;;  %v327_v27 = vsub.f32 %v11021_v44, %v326_v20  ;;  %v11137_v32 = vsub.f32 %v217_v59, %v265_v5  ;;  %v11139_v33 = vsub.f32 %v220_v60, %v268_v12 }
  0x2e   :  { %9284 = vmatpush3.bf16.xpose.msra.mxu1 %v10934_v48  ;;  %9380 = vmatpush3.bf16.xpose.msra.mxu0 %v10934_v48  ;;  %v334_v30 = vsub.f32 %v11026_v45, %v333_v21  ;;  %v11142_v34 = vsub.f32 %v172_v0, %v11131_v25  ;;  %v347_v39 = vand.u32 4294901760, %v11044_v4  ;;  %v9397_v42 = vpack.c.bf16 %v333_v21, %v326_v20 }
  0x2f   :  { %9286 = vmatprep.subr.bf16.mxu1 %v10986_v11  ;;  %9382 = vmatprep.subr.bf16.mxu0 %v10986_v11  ;;  %v11148_v35 = vpack.c.bf16 %v11139_v33, %v11137_v32  ;;  %v328_v36 = vand.u32 4294901760, %v327_v27  ;;  %v342_v47 = vand.u32 4294901760, %v341_v43  ;;  %v354_v51 = vand.u32 4294901760, %v11049_v7 }
  0x30   :  { %v335_v37 = vand.u32 4294901760, %v334_v30  ;;  %v315_v40 = vand.u32 4294901760, %v11142_v34  ;;  %v348_v44 = vsub.f32 %v11044_v4, %v347_v39  ;;  %v361_v52 = vand.u32 4294901760, %v11056_v6 }
  0x31   :  { %v9401_v13 = vpack.c.bf16 %v347_v39, %v340_v38  ;;  %v355_v3 = vsub.f32 %v11049_v7, %v354_v51  ;;  %v368_v31 = vand.u32 4294901760, %v11061_v9  ;;  %v375_v58 = vand.u32 4294901760, %v11066_v10 }
  0x32   :  { %v9301_v41 = vpack.c.bf16 %v335_v37, %v328_v36  ;;  %v316_v45 = vsub.f32 %v11142_v34, %v315_v40  ;;  %v349_v50 = vand.u32 4294901760, %v348_v44  ;;  %v362_v4 = vsub.f32 %v11056_v6, %v361_v52 }
  0x33   :  { %v356_v16 = vand.u32 4294901760, %v355_v3  ;;  %v9405_v7 = vpack.c.bf16 %v361_v52, %v354_v51  ;;  %v369_v6 = vsub.f32 %v11061_v9, %v368_v31  ;;  %v376_v60 = vsub.f32 %v11066_v10, %v375_v58 }
  0x34   :  { %v317_v54 = vand.u32 4294901760, %v316_v45  ;;  %v9305_v8 = vpack.c.bf16 %v349_v50, %v342_v47  ;;  %v363_v29 = vand.u32 4294901760, %v362_v4  ;;  %v382_v12 = vand.u32 4294901760, %v11074_v17 }
  0x35   :  { %v370_v0 = vand.u32 4294901760, %v369_v6  ;;  %v377_v5 = vand.u32 4294901760, %v376_v60  ;;  %v389_v20 = vand.u32 4294901760, %v11079_v18  ;;  %v9409_v27 = vpack.c.bf16 %v375_v58, %v368_v31  ;;  %v919_v31 = vld [vmem:[%s12705_s3 + $0x30] sm:$0xff]  ;;  %v920_v58 = vld [vmem:[%s12705_s3 + $0x38] sm:$0xff] }
  0x36   :  { %9288 = vmatpush3.bf16.xpose.msra.mxu1 %v10986_v11  ;;  %9384 = vmatpush3.bf16.xpose.msra.mxu0 %v10986_v11  ;;  %v9309_v59 = vpack.c.bf16 %v363_v29, %v356_v16  ;;  %v383_v30 = vsub.f32 %v11074_v17, %v382_v12  ;;  %v396_v37 = vand.u32 4294901760, %v11081_v19  ;;  %v403_v38 = vand.u32 4294901760, %v11083_v22 }
  0x37   :  { %9290 = vmatprep.subr.bf16.mxu1 %v11028_v46  ;;  %9386 = vmatprep.subr.bf16.mxu0 %v11028_v46  ;;  %v9313_v21 = vpack.c.bf16 %v377_v5, %v370_v0  ;;  %v390_v36 = vsub.f32 %v11079_v18, %v389_v20  ;;  %v410_v43 = vand.u32 4294901760, %v11116_v61  ;;  %v417_v44 = vand.u32 4294901760, %v11118_v63  ;;  %v921_v5 = vld [vmem:[%s12705_s3 + $0x40] sm:$0xff] }
  0x38   :  { %v384_v9 = vand.u32 4294901760, %v383_v30  ;;  %v9417_v47 = vpack.c.bf16 %v403_v38, %v396_v37  ;;  %v424_v52 = vand.u32 4294901760, %v11137_v32  ;;  %v11308_v6 = vsel %vm167_vm0, %v920_v58, 0 }
  0x39   :  { %v391_v10 = vand.u32 4294901760, %v390_v36  ;;  %v411_v50 = vsub.f32 %v11116_v61, %v410_v43  ;;  %v418_v51 = vsub.f32 %v11118_v63, %v417_v44  ;;  %v1002_v0 = vand.u32 4294901760, %v11308_v6 }
  0x3a   :  { %v425_v3 = vsub.f32 %v11137_v32, %v424_v52 }
  0x3b   :  { %v9317_v39 = vpack.c.bf16 %v391_v10, %v384_v9  ;;  %v923_v9 = vld [vmem:[%s12705_s3 + $0x50] sm:$0xff]  ;;  %v924_v10 = vld [vmem:[%s12705_s3 + $0x58] sm:$0xff]  ;;  %v11493_v58 = vsub.f32 %v11308_v6, %v1002_v0 }
  0x3c   :  { %v426_v61 = vand.u32 4294901760, %v425_v3 }
  0x3e   :  { %9292 = vmatpush3.bf16.xpose.msra.mxu1 %v11028_v46  ;;  %9388 = vmatpush3.bf16.xpose.msra.mxu0 %v11028_v46 }
  0x3f   :  { %9294 = vmatprep.subr.bf16.mxu1 %v11111_v57  ;;  %9390 = vmatprep.subr.bf16.mxu0 %v11111_v57 }
  0x46   :  { %9296 = vmatpush3.bf16.xpose.msra.mxu1 %v11111_v57  ;;  %9392 = vmatpush3.bf16.xpose.msra.mxu0 %v11111_v57 }
  0x47   :  { %9298 = vmatprep.subr.bf16.mxu1 %v11133_v26  ;;  %9394 = vmatprep.subr.bf16.mxu0 %v11133_v26 }
  0x4e   :  { %9300 = vmatpush3.bf16.xpose.msra.mxu1 %v11133_v26  ;;  %9396 = vmatpush3.bf16.xpose.msra.mxu0 %v11133_v26 }
  0x4f   :  { %9302 = vmatprep.subr.bf16.mxu1 %v9301_v41  ;;  %9398 = vmatprep.subr.bf16.mxu0 %v9397_v42 }
  0x55   :  { %7412 = vmatmul.mubr.f32.vlgmr.msra.gmra.mrb[0].mxu1 %v317_v54  ;;  %7517 = vmatmul.mubr.f32.vlgmr.msra.gmra.mrb[0].mxu0 %v315_v40  ;;  %v9413_v40 = vpack.c.bf16 %v389_v20, %v382_v12  ;;  %v431_v54 = vand.u32 4294901760, %v11139_v33  ;;  %v922_v12 = vld [vmem:[%s12705_s3 + $0x48] sm:$0xff] }
  0x56   :  { %9304 = vmatpush3.bf16.xpose.msra.mxu1 %v9301_v41  ;;  %9400 = vmatpush3.bf16.xpose.msra.mxu0 %v9397_v42  ;;  %v397_v41 = vsub.f32 %v11081_v19, %v396_v37  ;;  %v404_v42 = vsub.f32 %v11083_v22, %v403_v38  ;;  %v412_v19 = vand.u32 4294901760, %v411_v50  ;;  %v419_v22 = vand.u32 4294901760, %v418_v51  ;;  %v927_v50 = vld [vmem:[%s12705_s3 + $0x70] sm:$0xff]  ;;  %v928_v51 = vld [vmem:[%s12705_s3 + $0x78] sm:$0xff] }
  0x57   :  { %9306 = vmatprep.subr.bf16.mxu1 %v9305_v8  ;;  %9402 = vmatprep.subr.bf16.mxu0 %v9401_v13  ;;  %v432_v4 = vsub.f32 %v11139_v33, %v431_v54  ;;  %v9425_v29 = vpack.c.bf16 %v431_v54, %v424_v52  ;;  %v11353_v38 = vsel %vm167_vm0, %v923_v9, 0  ;;  %v11404_v52 = vsel %vm167_vm0, %v928_v51, 0 }
  0x58   :  { %7446 = vmatprep.mubr.f32.mxu1 %v10962_v62  ;;  %7551 = vmatprep.mubr.f32.mxu0 %v10962_v62  ;;  %v398_v17 = vand.u32 4294901760, %v397_v41  ;;  %v405_v18 = vand.u32 4294901760, %v404_v42  ;;  %v925_v42 = vld [vmem:[%s12705_s3 + $0x60] sm:$0xff]  ;;  %v1026_v3 = vand.u32 4294901760, %v11404_v52 }
  0x59   :  { %v433_v63 = vand.u32 4294901760, %v432_v4 }
  0x5a   :  { %v9321_v45 = vpack.c.bf16 %v405_v18, %v398_v17  ;;  %v926_v17 = vld [vmem:[%s12705_s3 + $0x68] sm:$0xff] }
  0x5b   :  { %v9329_v16 = vpack.c.bf16 %v433_v63, %v426_v61 }
  0x5e   :  { %9308 = vmatpush3.bf16.xpose.msra.mxu1 %v9305_v8  ;;  %9404 = vmatpush3.bf16.xpose.msra.mxu0 %v9401_v13  ;;  %v9325_v8 = vpack.c.bf16 %v419_v22, %v412_v19  ;;  %v9421_v13 = vpack.c.bf16 %v417_v44, %v410_v43  ;;  %v11377_v43 = vsel %vm167_vm0, %v925_v42, 0  ;;  %v11380_v44 = vsel %vm167_vm0, %v926_v17, 0 }
  0x5f   :  { %9310 = vmatprep.subr.bf16.mxu1 %v9309_v59  ;;  %9406 = vmatprep.subr.bf16.mxu0 %v9405_v7  ;;  %v11401_v22 = vsel %vm167_vm0, %v927_v50, 0 }
  0x66   :  { %9312 = vmatpush3.bf16.xpose.msra.mxu1 %v9309_v59  ;;  %9408 = vmatpush3.bf16.xpose.msra.mxu0 %v9405_v7  ;;  %v11305_v7 = vsel %vm167_vm0, %v919_v31, 0 }
  0x67   :  { %9314 = vmatprep.subr.bf16.mxu1 %v9313_v21  ;;  %9410 = vmatprep.subr.bf16.mxu0 %v9409_v27  ;;  %v999_v60 = vand.u32 4294901760, %v11305_v7 }
  0x69   :  { %v11326_v20 = vpack.c.bf16 %v1002_v0, %v999_v60  ;;  %v11488_v31 = vsub.f32 %v11305_v7, %v999_v60 }
  0x6b   :  { %v1116_v9 = vand.u32 4294901760, %v11488_v31 }
  0x6d   :  { %v1117_v7 = vsub.f32 %v11488_v31, %v1116_v9 }
  0x6e   :  { %9316 = vmatpush3.bf16.xpose.msra.mxu1 %v9313_v21  ;;  %9412 = vmatpush3.bf16.xpose.msra.mxu0 %v9409_v27  ;;  %v11329_v21 = vsel %vm167_vm0, %v921_v5, 0  ;;  %v11332_v27 = vsel %vm167_vm0, %v922_v12, 0 }
  0x6f   :  { %9318 = vmatprep.subr.bf16.mxu1 %v9317_v39  ;;  %9414 = vmatprep.subr.bf16.mxu0 %v9413_v40  ;;  %v1005_v30 = vand.u32 4294901760, %v11329_v21  ;;  %v1008_v36 = vand.u32 4294901760, %v11332_v27  ;;  %v1118_v17 = vand.u32 4294901760, %v1117_v7 }
  0x71   :  { %v11350_v37 = vpack.c.bf16 %v1008_v36, %v1005_v30  ;;  %v11510_v60 = vsub.f32 %v11329_v21, %v1005_v30  ;;  %v11515_v0 = vsub.f32 %v11332_v27, %v1008_v36 }
  0x73   :  { %v1130_v51 = vand.u32 4294901760, %v11510_v60 }
  0x75   :  { %v1131_v36 = vsub.f32 %v11510_v60, %v1130_v51 }
  0x76   :  { %9320 = vmatpush3.bf16.xpose.msra.mxu1 %v9317_v39  ;;  %9416 = vmatpush3.bf16.xpose.msra.mxu0 %v9413_v40  ;;  %v11356_v39 = vsel %vm167_vm0, %v924_v10, 0  ;;  %v1011_v40 = vand.u32 4294901760, %v11353_v38  ;;  %v1123_v10 = vand.u32 4294901760, %v11493_v58 }
  0x77   :  { %9322 = vmatprep.subr.bf16.mxu1 %v9321_v45  ;;  %9418 = vmatprep.subr.bf16.mxu0 %v9417_v47  ;;  %v1014_v41 = vand.u32 4294901760, %v11356_v39 }
  0x78   :  { %v1124_v6 = vsub.f32 %v11493_v58, %v1123_v10  ;;  %v11524_v21 = vsub.f32 %v11353_v38, %v1011_v40 }
  0x79   :  { %v11374_v18 = vpack.c.bf16 %v1014_v41, %v1011_v40  ;;  %v11529_v27 = vsub.f32 %v11356_v39, %v1014_v41  ;;  %v1132_v40 = vand.u32 4294901760, %v1131_v36 }
  0x7a   :  { %v1125_v50 = vand.u32 4294901760, %v1124_v6 }
  0x7b   :  { %v1151_v38 = vand.u32 4294901760, %v11529_v27 }
  0x7c   :  { %v11531_v30 = vpack.c.bf16 %v1125_v50, %v1118_v17 }
  0x7d   :  { %v1152_v41 = vsub.f32 %v11529_v27, %v1151_v38 }
  0x7e   :  { %9324 = vmatpush3.bf16.xpose.msra.mxu1 %v9321_v45  ;;  %9420 = vmatpush3.bf16.xpose.msra.mxu0 %v9417_v47  ;;  %v1017_v45 = vand.u32 4294901760, %v11377_v43  ;;  %v1020_v47 = vand.u32 4294901760, %v11380_v44 }
  0x7f   :  { %9326 = vmatprep.subr.bf16.mxu1 %v9325_v8  ;;  %9422 = vmatprep.subr.bf16.mxu0 %v9421_v13 }
  0x80   :  { %v11398_v19 = vpack.c.bf16 %v1020_v47, %v1017_v45 }
  0x86   :  { %9328 = vmatpush3.bf16.xpose.msra.mxu1 %v9325_v8  ;;  %9424 = vmatpush3.bf16.xpose.msra.mxu0 %v9421_v13  ;;  %v1023_v13 = vand.u32 4294901760, %v11401_v22 }
  0x87   :  { %9330 = vmatprep.subr.bf16.mxu1 %v9329_v16  ;;  %9426 = vmatprep.subr.bf16.mxu0 %v9425_v29 }
  0x88   :  { %v11428_v63 = vpack.c.bf16 %v1026_v3, %v1023_v13 }
  0x8e   :  { %9332 = vmatpush3.bf16.xpose.msra.mxu1 %v9329_v16  ;;  %9428 = vmatpush3.bf16.xpose.msra.mxu0 %v9425_v29 }
  0x8f   :  { %9334 = vmatprep.subr.bf16.mxu1 %v11034_v53  ;;  %9430 = vmatprep.subr.bf16.mxu0 %v10822_v14 }
  0x95   :  { %7447 = vmatmul.mubr.f32.vlgmr.msra.gmra.mrb[0].mxu1 %v11131_v25  ;;  %7552 = vmatmul.mubr.f32.vlgmr.msra.gmra.mrb[0].mxu0 %v11131_v25 }
  0x96   :  { %9336 = vmatpush3.bf16.xpose.msra.mxu1 %v11034_v53  ;;  %9432 = vmatpush3.bf16.xpose.msra.mxu0 %v10822_v14  ;;  %v913_v14 = vld [vmem:[%s12705_s3] sm:$0xff]  ;;  %v916_v53 = vld [vmem:[%s12705_s3 + $0x18] sm:$0xff] }
  0x97   :  { %9338 = vmatprep.subr.bf16.mxu1 %v11087_v23  ;;  %9434 = vmatprep.subr.bf16.mxu0 %v10828_v15 }
  0x98   :  { %7481 = vmatprep.mubr.f32.mxu1 %v10977_v2  ;;  %7586 = vmatprep.mubr.f32.mxu0 %v10962_v62 }
  0x9e   :  { %9340 = vmatpush3.bf16.xpose.msra.mxu1 %v11087_v23  ;;  %9436 = vmatpush3.bf16.xpose.msra.mxu0 %v10828_v15  ;;  %v914_v15 = vld [vmem:[%s12705_s3 + $0x8] sm:$0xff] }
  0x9f   :  { %9342 = vmatprep.subr.bf16.mxu1 %v11091_v28  ;;  %9438 = vmatprep.subr.bf16.mxu0 %v10874_v24 }
  0xa6   :  { %9344 = vmatpush3.bf16.xpose.msra.mxu1 %v11091_v28  ;;  %9440 = vmatpush3.bf16.xpose.msra.mxu0 %v10874_v24  ;;  %v11227_v24 = vsel %vm167_vm0, %v913_v14, 0 }
  0xa7   :  { %9346 = vmatprep.subr.bf16.mxu1 %v11101_v49  ;;  %9442 = vmatprep.subr.bf16.mxu0 %v10934_v48  ;;  %v981_v62 = vand.u32 4294901760, %v11227_v24 }
  0xa9   :  { %v11409_v54 = vsub.f32 %v11227_v24, %v981_v62 }
  0xab   :  { %v1074_v4 = vand.u32 4294901760, %v11409_v54 }
  0xad   :  { %v1075_v16 = vsub.f32 %v11409_v54, %v1074_v4 }
  0xae   :  { %9348 = vmatpush3.bf16.xpose.msra.mxu1 %v11101_v49  ;;  %9444 = vmatpush3.bf16.xpose.msra.mxu0 %v10934_v48  ;;  %v11230_v48 = vsel %vm167_vm0, %v914_v15, 0  ;;  %v11254_v49 = vsel %vm167_vm0, %v916_v53, 0 }
  0xaf   :  { %9350 = vmatprep.subr.bf16.mxu1 %v11105_v55  ;;  %9446 = vmatprep.subr.bf16.mxu0 %v10986_v11  ;;  %v984_v2 = vand.u32 4294901760, %v11230_v48  ;;  %v1076_v24 = vand.u32 4294901760, %v1075_v16  ;;  %v1137_v16 = vand.u32 4294901760, %v11515_v0 }
  0xb1   :  { %v11248_v23 = vpack.c.bf16 %v984_v2, %v981_v62  ;;  %v11414_v8 = vsub.f32 %v11230_v48, %v984_v2 }
  0xb3   :  { %v1081_v61 = vand.u32 4294901760, %v11414_v8 }
  0xb5   :  { %v1082_v29 = vsub.f32 %v11414_v8, %v1081_v61 }
  0xb6   :  { %9352 = vmatpush3.bf16.xpose.msra.mxu1 %v11105_v55  ;;  %9448 = vmatpush3.bf16.xpose.msra.mxu0 %v10986_v11  ;;  %v10741_v11 = vmov 0.0|0.0  }
  0xb7   :  { %9354 = vmatprep.subr.bf16.mxu1 %v11109_v56  ;;  %9450 = vmatprep.subr.bf16.mxu0 %v11028_v46  ;;  %v1083_v48 = vand.u32 4294901760, %v1082_v29  ;;  %v1138_v29 = vsub.f32 %v11515_v0, %v1137_v16 }
  0xbe   :  { %9356 = vmatpush3.bf16.xpose.msra.mxu1 %v11109_v56  ;;  %9452 = vmatpush3.bf16.xpose.msra.mxu0 %v11028_v46  ;;  %v915_v46 = vld [vmem:[%s12705_s3 + $0x10] sm:$0xff]  ;;  %v990_v56 = vand.u32 4294901760, %v11254_v49 }
  0xbf   :  { %9358 = vmatprep.subr.bf16.mxu1 %v11125_v1  ;;  %9454 = vmatprep.subr.bf16.mxu0 %v11111_v57  ;;  %v11251_v28 = vsel %vm167_vm0, %v915_v46, 0 }
  0xc0   :  { %v987_v55 = vand.u32 4294901760, %v11251_v28  ;;  %v11444_v15 = vsub.f32 %v11254_v49, %v990_v56 }
  0xc2   :  { %v11439_v14 = vsub.f32 %v11251_v28, %v987_v55  ;;  %v1095_v2 = vand.u32 4294901760, %v11444_v15  ;;  %v11462_v28 = vpack.c.bf16 %v1083_v48, %v1076_v24  ;;  %v1144_v24 = vand.u32 4294901760, %v11524_v21 }
  0xc3   :  { %v1139_v48 = vand.u32 4294901760, %v1138_v29 }
  0xc4   :  { %v1088_v62 = vand.u32 4294901760, %v11439_v14  ;;  %v1145_v39 = vsub.f32 %v11524_v21, %v1144_v24 }
  0xc6   :  { %9360 = vmatpush3.bf16.xpose.msra.mxu1 %v11125_v1  ;;  %9456 = vmatpush3.bf16.xpose.msra.mxu0 %v11111_v57  ;;  %v10743_v57 = vmov 0.0   ;;  %v917_v1 = vld [vmem:[%s12705_s3 + $0x20] sm:$0xff]  ;;  %v1089_v49 = vsub.f32 %v11439_v14, %v1088_v62 }
  0xc7   :  { %9362 = vmatprep.subr.bf16.mxu1 %v11148_v35  ;;  %9458 = vmatprep.subr.bf16.mxu0 %v11133_v26  ;;  %v11281_v32 = vsel %vm167_vm0, %v917_v1, 0 }
  0xce   :  { %9364 = vmatpush3.bf16.xpose.msra.mxu1 %v11148_v35  ;;  %9460 = vmatpush3.bf16.xpose.msra.mxu0 %v11133_v26  ;;  %v11278_v26 = vpack.c.bf16 %v990_v56, %v987_v55  ;;  %v1096_v55 = vsub.f32 %v11444_v15, %v1095_v2 }
  0xcf   :  { %9461 = vmatprep.subr.bf16.mxu1 %v10741_v11  ;;  %9605 = vmatprep.subr.bf16.mxu0 %v10741_v11 }
  0xd5   :  { %7482 = vmatmul.mubr.f32.vlgmr.msra.gmra.mrb[0].mxu1 %v11142_v34  ;;  %7587 = vmatmul.mubr.f32.vlgmr.msra.gmra.mrb[0].mxu0 %v11131_v25  ;;  %v918_v25 = vld [vmem:[%s12705_s3 + $0x28] sm:$0xff]  ;;  %v993_v34 = vand.u32 4294901760, %v11281_v32 }
  0xd6   :  { %9463 = vmatpush3.bf16.xpose.msra.mxu1 %v11248_v23  ;;  %7621 = vmatprep.mubr.msk.f32.mxu1 %vm10742_vm8, %v10743_v57  ;;  %v11284_v33 = vsel %vm167_vm0, %v918_v25, 0  ;;  %v1090_v25 = vand.u32 4294901760, %v1089_v49  ;;  %v11549_v49 = vpack.c.bf16 %v1139_v48, %v1132_v40  ;;  %v11603_v40 = vpack.c.bf16 %v11414_v8, %v11409_v54 }
  0xd7   :  { %9464 = vmatprep.subr.bf16.mxu1 %v10741_v11  ;;  %9607 = vmatpush3.bf16.xpose.msra.mxu0 %v11248_v23  ;;  %v996_v35 = vand.u32 4294901760, %v11284_v33  ;;  %v11455_v46 = vsub.f32 %v11281_v32, %v993_v34  ;;  %v1097_v32 = vand.u32 4294901760, %v1096_v55  ;;  %v11554_v55 = vsub.f32 %v11377_v43, %v1017_v45 }
  0xd8   :  { %9608 = vmatprep.subr.bf16.mxu0 %v10741_v11  ;;  %7831 = vmatprep.mubr.msk.f32.mxu0 %vm10742_vm8, %v10743_v57  ;;  %v11576_v45 = vsub.f32 %v11401_v22, %v1023_v13  ;;  %v11612_v48 = vpack.c.bf16 %v11444_v15, %v11439_v14  ;;  %v11717_v14 = vpack.c.bf16 %v1137_v16, %v1130_v51 }
  0xd9   :  { %v11302_v59 = vpack.c.bf16 %v996_v35, %v993_v34  ;;  %v11460_v53 = vsub.f32 %v11284_v33, %v996_v35  ;;  %v1102_v56 = vand.u32 4294901760, %v11455_v46  ;;  %v11483_v35 = vpack.c.bf16 %v1097_v32, %v1090_v25 }
  0xda   :  { %v11559_v25 = vsub.f32 %v11380_v44, %v1020_v47  ;;  %v1146_v32 = vand.u32 4294901760, %v1145_v39  ;;  %v11581_v47 = vsub.f32 %v11404_v52, %v1026_v3  ;;  %v12709_v17 = vand.u32 4294901760, %v11576_v45 }
  0xdb   :  { %v1109_v1 = vand.u32 4294901760, %v11460_v53  ;;  %v1103_v33 = vsub.f32 %v11455_v46, %v1102_v56  ;;  %v11618_v39 = vpack.c.bf16 %v11460_v53, %v11455_v46  ;;  %v11725_v15 = vpack.c.bf16 %v1151_v38, %v1144_v24 }
  0xdc   :  { %v12708_v50 = vand.u32 4294901760, %v11581_v47  ;;  %v1173_v22 = vsub.f32 %v11576_v45, %v12709_v17  ;;  %v12712_v46 = vand.u32 4294901760, %v11576_v45  ;;  %v906_v38 = vlaneseq }
  0xdd   :  { %v1110_v34 = vsub.f32 %v11460_v53, %v1109_v1  ;;  %v1104_v5 = vand.u32 4294901760, %v1103_v33  ;;  %v1153_v33 = vand.u32 4294901760, %v1152_v41  ;;  %v11624_v41 = vpack.c.bf16 %v11493_v58, %v11488_v31 }
  0xde   :  { %9466 = vmatpush3.bf16.xpose.msra.mxu1 %v11278_v26  ;;  %v1180_v52 = vsub.f32 %v11581_v47, %v12708_v50  ;;  %v1174_v13 = vand.u32 4294901760, %v1173_v22  ;;  %v11701_v54 = vpack.c.bf16 %v1109_v1, %v1102_v56  ;;  %v12713_v53 = vand.u32 4294901760, %v11581_v47 }
  0xdf   :  { %9467 = vmatprep.subr.bf16.mxu1 %v10741_v11  ;;  %9610 = vmatpush3.bf16.xpose.msra.mxu0 %v11278_v26  ;;  %v1111_v12 = vand.u32 4294901760, %v1110_v34  ;;  %v1158_v34 = vand.u32 4294901760, %v11554_v55 }
  0xe0   :  { %9611 = vmatprep.subr.bf16.mxu0 %v10741_v11  ;;  %v1181_v3 = vand.u32 4294901760, %v1180_v52  ;;  %v11741_v56 = vpack.c.bf16 %v12713_v53, %v12712_v46 }
  0xe1   :  { %v11499_v42 = vpack.c.bf16 %v1111_v12, %v1104_v5  ;;  %v12710_v5 = vand.u32 4294901760, %v11559_v25  ;;  %v11565_v12 = vpack.c.bf16 %v1153_v33, %v1146_v32  ;;  %v1159_v43 = vsub.f32 %v11554_v55, %v1158_v34 }
  0xe2   :  { %v11597_v29 = vpack.c.bf16 %v1181_v3, %v1174_v13  ;;  %v11630_v32 = vpack.c.bf16 %v11515_v0, %v11510_v60  ;;  %v11636_v33 = vpack.c.bf16 %v11529_v27, %v11524_v21 }
  0xe3   :  { %v1166_v44 = vsub.f32 %v11559_v25, %v12710_v5  ;;  %v1160_v7 = vand.u32 4294901760, %v1159_v43  ;;  %v11642_v43 = vpack.c.bf16 %v11559_v25, %v11554_v55  ;;  %v907_v55 = vand.u32 127, %v906_v38 }
  0xe5   :  { %v1167_v6 = vand.u32 4294901760, %v1166_v44  ;;  %v11648_v44 = vpack.c.bf16 %v11581_v47, %v11576_v45  ;;  %vm908_vm9 = vcmp.ge.s32.totalorder %v907_v55, 64  ;;  %vm909_vm10 = vcmp.lt.s32.totalorder %v907_v55, 96 }
  0xe6   :  { %9469 = vmatpush3.bf16.xpose.msra.mxu1 %v11302_v59  ;;  %vm910_vm11 = vmand %vm908_vm9, %vm909_vm10  ;;  %v10744_v47 = vmov 0.5  }
  0xe7   :  { %9470 = vmatprep.subr.bf16.mxu1 %v10741_v11  ;;  %9613 = vmatpush3.bf16.xpose.msra.mxu0 %v11302_v59  ;;  %v11587_v36 = vpack.c.bf16 %v1167_v6, %v1160_v7  ;;  %v6454_v7 = vld [vmem:[%s12706_s4] ss:$0 sm:$0xff]  ;;  %s10745_s4 = smov 64  }
  0xe8   :  { %9614 = vmatprep.subr.bf16.mxu0 %v10741_v11 }
  0xee   :  { %9472 = vmatpush3.bf16.xpose.msra.mxu1 %v11326_v20 }
  0xef   :  { %9473 = vmatprep.subr.bf16.mxu1 %v10741_v11  ;;  %9616 = vmatpush3.bf16.xpose.msra.mxu0 %v11326_v20 }
  0xf0   :  { %9617 = vmatprep.subr.bf16.mxu0 %v10741_v11 }
  0xf6   :  { %9475 = vmatpush3.bf16.xpose.msra.mxu1 %v11350_v37 }
  0xf7   :  { %9476 = vmatprep.subr.bf16.mxu1 %v10741_v11  ;;  %9619 = vmatpush3.bf16.xpose.msra.mxu0 %v11350_v37 }
  0xf8   :  { %9620 = vmatprep.subr.bf16.mxu0 %v10741_v11 }
  0xfe   :  { %9478 = vmatpush3.bf16.xpose.msra.mxu1 %v11374_v18 }
  0xff   :  { %9479 = vmatprep.subr.bf16.mxu1 %v10741_v11  ;;  %9622 = vmatpush3.bf16.xpose.msra.mxu0 %v11374_v18 }
 0x100   :  { %9623 = vmatprep.subr.bf16.mxu0 %v10741_v11 }
 0x106   :  { %9481 = vmatpush3.bf16.xpose.msra.mxu1 %v11398_v19 }
 0x107   :  { %9482 = vmatprep.subr.bf16.mxu1 %v10741_v11  ;;  %9625 = vmatpush3.bf16.xpose.msra.mxu0 %v11398_v19 }
 0x108   :  { %9626 = vmatprep.subr.bf16.mxu0 %v10741_v11 }
 0x10e   :  { %9484 = vmatpush3.bf16.xpose.msra.mxu1 %v11428_v63 }
 0x10f   :  { %9485 = vmatprep.subr.bf16.mxu1 %v10741_v11  ;;  %9628 = vmatpush3.bf16.xpose.msra.mxu0 %v11428_v63 }
 0x110   :  { %9629 = vmatprep.subr.bf16.mxu0 %v10741_v11 }
 0x115   :  { %7622 = vmatmul.mubr.f32.vlgmr.msra.gmra.mrb[2].mxu1 %v10743_v57 }
 0x116   :  { %9487 = vmatpush3.bf16.xpose.msra.mxu1 %v11462_v28  ;;  %7656 = vmatprep.mubr.msk.f32.mxu1 %vm10742_vm8, %v10743_v57 }
 0x117   :  { %9488 = vmatprep.subr.bf16.mxu1 %v10741_v11 }
 0x11e   :  { %9490 = vmatpush3.bf16.xpose.msra.mxu1 %v11483_v35 }
 0x11f   :  { %9491 = vmatprep.subr.bf16.mxu1 %v10741_v11 }
 0x126   :  { %9493 = vmatpush3.bf16.xpose.msra.mxu1 %v11499_v42 }
 0x127   :  { %9494 = vmatprep.subr.bf16.mxu1 %v10741_v11 }
 0x12e   :  { %9496 = vmatpush3.bf16.xpose.msra.mxu1 %v11531_v30 }
 0x12f   :  { %9497 = vmatprep.subr.bf16.mxu1 %v10741_v11 }
 0x136   :  { %9499 = vmatpush3.bf16.xpose.msra.mxu1 %v11549_v49 }
 0x137   :  { %9500 = vmatprep.subr.bf16.mxu1 %v10741_v11 }
 0x13e   :  { %9502 = vmatpush3.bf16.xpose.msra.mxu1 %v11565_v12 }
 0x13f   :  { %9503 = vmatprep.subr.bf16.mxu1 %v10741_v11 }
 0x146   :  { %9505 = vmatpush3.bf16.xpose.msra.mxu1 %v11587_v36 }
 0x147   :  { %9506 = vmatprep.subr.bf16.mxu1 %v10741_v11 }
 0x14e   :  { %9508 = vmatpush3.bf16.xpose.msra.mxu1 %v11597_v29 }
 0x14f   :  { %9509 = vmatprep.subr.bf16.mxu1 %v10741_v11 }
 0x155   :  { %7657 = vmatmul.mubr.f32.vlgmr.msra.gmra.mrb[4].mxu1 %v10743_v57 }
 0x156   :  { %9511 = vmatpush3.bf16.xpose.msra.mxu1 %v11603_v40  ;;  %7691 = vmatprep.mubr.msk.f32.mxu1 %vm10742_vm8, %v10743_v57 }
 0x157   :  { %9512 = vmatprep.subr.bf16.mxu1 %v10741_v11 }
 0x15e   :  { %9514 = vmatpush3.bf16.xpose.msra.mxu1 %v11612_v48 }
 0x15f   :  { %9515 = vmatprep.subr.bf16.mxu1 %v10741_v11 }
 0x166   :  { %9517 = vmatpush3.bf16.xpose.msra.mxu1 %v11618_v39 }
 0x167   :  { %9518 = vmatprep.subr.bf16.mxu1 %v10741_v11 }
 0x16e   :  { %9520 = vmatpush3.bf16.xpose.msra.mxu1 %v11624_v41 }
 0x16f   :  { %9521 = vmatprep.subr.bf16.mxu1 %v10741_v11 }
 0x176   :  { %9523 = vmatpush3.bf16.xpose.msra.mxu1 %v11630_v32 }
 0x177   :  { %9524 = vmatprep.subr.bf16.mxu1 %v10741_v11 }
 0x17e   :  { %9526 = vmatpush3.bf16.xpose.msra.mxu1 %v11636_v33 }
 0x17f   :  { %9527 = vmatprep.subr.bf16.mxu1 %v10741_v11 }
 0x186   :  { %9529 = vmatpush3.bf16.xpose.msra.mxu1 %v11642_v43 }
 0x187   :  { %9530 = vmatprep.subr.bf16.mxu1 %v10741_v11 }
 0x18e   :  { %9532 = vmatpush3.bf16.xpose.msra.mxu1 %v11648_v44 }
 0x18f   :  { %9533 = vmatprep.subr.bf16.mxu1 %v10741_v11 }
 0x195   :  { %7692 = vmatmul.mubr.f32.vlgmr.msra.gmra.mrb[6].mxu1 %v10743_v57 }
 0x196   :  { %9535 = vmatpush3.bf16.xpose.msra.mxu1 %v11248_v23  ;;  %7726 = vmatprep.mubr.msk.f32.mxu1 %vm10742_vm8, %v10743_v57 }
 0x197   :  { %9536 = vmatprep.subr.bf16.mxu1 %v10741_v11 }
 0x19e   :  { %9538 = vmatpush3.bf16.xpose.msra.mxu1 %v11278_v26 }
 0x19f   :  { %9539 = vmatprep.subr.bf16.mxu1 %v10741_v11 }
 0x1a6   :  { %9541 = vmatpush3.bf16.xpose.msra.mxu1 %v11302_v59 }
 0x1a7   :  { %9542 = vmatprep.subr.bf16.mxu1 %v10741_v11 }
 0x1a8   :  { %v7483_v6 = vpop.f32.mrb[0].mxu1  ;;  %v7588_v22 = vpop.f32.mrb[0].mxu0 }
 0x1a9   :  { %v10613_v52 = vadd.f32 %v7483_v6, %v6454_v7  ;;  %v580_v13 = vpop.f32.mrb[1].mxu1  ;;  %v896_v3 = vpop.f32.mrb[1].mxu0  ;;  %v11784_v6 = vsel %vm910_vm11, 1.0, %v10744_v47 }
 0x1aa   :  { %v10615_v50 = vadd.f32 %v6454_v7, %v580_v13  ;;  %v11693_v7 = vpack.c.bf16 %v1095_v2, %v1088_v62  ;;  %v12711_v62 = vand.u32 4294901760, %v11559_v25 }
 0x1ab   :  { %v11664_v17 = vadd.f32 %v10613_v52, %v7588_v22 }
 0x1ac   :  { %v11666_v5 = vadd.f32 %v10615_v50, %v896_v3  ;;  %v11682_v50 = vpack.c.bf16 %v1081_v61, %v1074_v4  ;;  %v11709_v61 = vpack.c.bf16 %v1123_v10, %v1116_v9  ;;  %v11733_v2 = vpack.c.bf16 %v12711_v62, %v1158_v34 }
 0x1ad   :  { %v11788_v3 = vsel %vm910_vm11, 0.0, %v10744_v47 }
 0x1ae   :  { %9544 = vmatpush3.bf16.xpose.msra.mxu1 %v11326_v20 }
 0x1af   :  { %9545 = vmatprep.subr.bf16.mxu1 %v10741_v11 }
 0x1b6   :  { %9547 = vmatpush3.bf16.xpose.msra.mxu1 %v11350_v37 }
 0x1b7   :  { %9548 = vmatprep.subr.bf16.mxu1 %v10741_v11 }
 0x1be   :  { %9550 = vmatpush3.bf16.xpose.msra.mxu1 %v11374_v18 }
 0x1bf   :  { %9551 = vmatprep.subr.bf16.mxu1 %v10741_v11 }
 0x1c6   :  { %9553 = vmatpush3.bf16.xpose.msra.mxu1 %v11398_v19 }
 0x1c7   :  { %9554 = vmatprep.subr.bf16.mxu1 %v10741_v11 }
 0x1ce   :  { %9556 = vmatpush3.bf16.xpose.msra.mxu1 %v11428_v63 }
 0x1cf   :  { %9557 = vmatprep.subr.bf16.mxu1 %v10741_v11 }
 0x1d5   :  { %7727 = vmatmul.mubr.f32.vlgmr.msra.gmra.mrb[8].mxu1 %v10743_v57 }
 0x1d6   :  { %9559 = vmatpush3.bf16.xpose.msra.mxu1 %v11682_v50  ;;  %7761 = vmatprep.mubr.msk.f32.mxu1 %vm10742_vm8, %v10743_v57 }
 0x1d7   :  { %9560 = vmatprep.subr.bf16.mxu1 %v10741_v11 }
 0x1de   :  { %9562 = vmatpush3.bf16.xpose.msra.mxu1 %v11693_v7 }
 0x1df   :  { %9563 = vmatprep.subr.bf16.mxu1 %v10741_v11 }
 0x1e6   :  { %9565 = vmatpush3.bf16.xpose.msra.mxu1 %v11701_v54 }
 0x1e7   :  { %9566 = vmatprep.subr.bf16.mxu1 %v10741_v11 }
 0x1e8   :  { %v1067_v8 = vpop.f32.mrb[2].mxu1 }
 0x1e9   :  { %v7623_v4 = vpop.f32.mrb[3].mxu1 }
 0x1ee   :  { %9568 = vmatpush3.bf16.xpose.msra.mxu1 %v11709_v61 }
 0x1ef   :  { %9569 = vmatprep.subr.bf16.mxu1 %v10741_v11 }
 0x1f6   :  { %9571 = vmatpush3.bf16.xpose.msra.mxu1 %v11717_v14 }
 0x1f7   :  { %9572 = vmatprep.subr.bf16.mxu1 %v10741_v11 }
 0x1fe   :  { %9574 = vmatpush3.bf16.xpose.msra.mxu1 %v11725_v15 }
 0x1ff   :  { %9575 = vmatprep.subr.bf16.mxu1 %v10741_v11 }
 0x206   :  { %9577 = vmatpush3.bf16.xpose.msra.mxu1 %v11733_v2 }
 0x207   :  { %9578 = vmatprep.subr.bf16.mxu1 %v10741_v11 }
 0x20e   :  { %9580 = vmatpush3.bf16.xpose.msra.mxu1 %v11741_v56 }
 0x20f   :  { %9581 = vmatprep.subr.bf16.mxu1 %v10741_v11 }
 0x215   :  { %7762 = vmatmul.mubr.f32.vlgmr.msra.gmra.mrb[10].mxu1 %v10743_v57 }
 0x216   :  { %9583 = vmatpush3.bf16.xpose.msra.mxu1 %v11248_v23  ;;  %7796 = vmatprep.mubr.msk.f32.mxu1 %vm10742_vm8, %v10743_v57 }
 0x217   :  { %9584 = vmatprep.subr.bf16.mxu1 %v10741_v11 }
 0x21e   :  { %9586 = vmatpush3.bf16.xpose.msra.mxu1 %v11278_v26 }
 0x21f   :  { %9587 = vmatprep.subr.bf16.mxu1 %v10741_v11 }
 0x226   :  { %9589 = vmatpush3.bf16.xpose.msra.mxu1 %v11302_v59 }
 0x227   :  { %9590 = vmatprep.subr.bf16.mxu1 %v10741_v11 }
 0x228   :  { %v1218_v1 = vpop.f32.mrb[4].mxu1 }
 0x229   :  { %v1219_v31 = vadd.f32 %v1218_v1, %v1067_v8  ;;  %v7658_v58 = vpop.f32.mrb[5].mxu1 }
 0x22e   :  { %9592 = vmatpush3.bf16.xpose.msra.mxu1 %v11326_v20 }
 0x22f   :  { %9593 = vmatprep.subr.bf16.mxu1 %v10741_v11 }
 0x236   :  { %9595 = vmatpush3.bf16.xpose.msra.mxu1 %v11350_v37 }
 0x237   :  { %9596 = vmatprep.subr.bf16.mxu1 %v10741_v11 }
 0x23e   :  { %9598 = vmatpush3.bf16.xpose.msra.mxu1 %v11374_v18 }
 0x23f   :  { %9599 = vmatprep.subr.bf16.mxu1 %v10741_v11 }
 0x246   :  { %9601 = vmatpush3.bf16.xpose.msra.mxu1 %v11398_v19 }
 0x247   :  { %9602 = vmatprep.subr.bf16.mxu1 %v10741_v11 }
 0x24e   :  { %9604 = vmatpush3.bf16.xpose.msra.mxu1 %v11428_v63 }
 0x24f   :  { %9749 = vmatprep.subr.bf16.mxu1 %v10741_v11 }
 0x255   :  { %7797 = vmatmul.mubr.f32.vlgmr.msra.gmra.mrb[12].mxu1 %v10743_v57 }
 0x256   :  { %9751 = vmatpush3.bf16.xpose.msra.mxu1 %v11248_v23  ;;  %8041 = vmatprep.mubr.msk.f32.mxu1 %vm10742_vm8, %v10743_v57 }
 0x257   :  { %9752 = vmatprep.subr.bf16.mxu1 %v10741_v11 }
 0x25e   :  { %9754 = vmatpush3.bf16.xpose.msra.mxu1 %v11278_v26 }
 0x25f   :  { %9755 = vmatprep.subr.bf16.mxu1 %v10741_v11 }
 0x266   :  { %9757 = vmatpush3.bf16.xpose.msra.mxu1 %v11302_v59 }
 0x267   :  { %9758 = vmatprep.subr.bf16.mxu1 %v10741_v11 }
 0x268   :  { %v1322_v9 = vpop.f32.mrb[6].mxu1 }
 0x269   :  { %v1323_v10 = vadd.f32 %v1322_v9, %v1219_v31  ;;  %v7693_v60 = vpop.f32.mrb[7].mxu1 }
 0x26e   :  { %9760 = vmatpush3.bf16.xpose.msra.mxu1 %v11326_v20 }
 0x26f   :  { %9761 = vmatprep.subr.bf16.mxu1 %v10741_v11 }
 0x276   :  { %9763 = vmatpush3.bf16.xpose.msra.mxu1 %v11350_v37 }
 0x277   :  { %9764 = vmatprep.subr.bf16.mxu1 %v10741_v11 }
 0x27e   :  { %9766 = vmatpush3.bf16.xpose.msra.mxu1 %v11374_v18 }
 0x27f   :  { %9767 = vmatprep.subr.bf16.mxu1 %v10741_v11 }
 0x286   :  { %9769 = vmatpush3.bf16.xpose.msra.mxu1 %v11398_v19 }
 0x287   :  { %9770 = vmatprep.subr.bf16.mxu1 %v10741_v11 }
 0x28e   :  { %9772 = vmatpush3.bf16.xpose.msra.mxu1 %v11428_v63 }
 0x28f   :  { %9773 = vmatprep.subr.bf16.mxu1 %v10741_v11 }
 0x2a8   :  { %v1411_v0 = vpop.f32.mrb[8].mxu1 }
 0x2a9   :  { %v1412_v51 = vadd.f32 %v1411_v0, %v1323_v10  ;;  %v7728_v16 = vpop.f32.mrb[9].mxu1 }
 0x2e8   :  { %v1530_v21 = vpop.f32.mrb[10].mxu1 }
 0x2e9   :  { %v1531_v27 = vadd.f32 %v1530_v21, %v1412_v51  ;;  %v7763_v24 = vpop.f32.mrb[11].mxu1 }
 0x328   :  { %v1617_v25 = vpop.f32.mrb[12].mxu1 }
 0x329   :  { %v1618_v34 = vadd.f32 %v1617_v25, %v1531_v27  ;;  %v7798_v45 = vpop.f32.mrb[13].mxu1 }
 0x32b   :  { %v1621_v22 = vadd.f32 %v11666_v5, %v1618_v34 }
 0x32d   :  { %v1622_v52 = vmul.f32 %v1621_v22, %v11784_v6 }
 0x32f   :  { %10694 = vtanh.f32 %v1622_v52 }
 0x339   :  { %v10695_v13 = vpop.eup %10694 }
 0x33a   :  { %v1624_v8 = vmul.f32 %v10695_v13, %v11784_v6 }
 0x33c   :  { %v1625_v4 = vadd.f32 %v1624_v8, %v11788_v3 }
 0x33e   :  { %1628 = vrot.lane.b32.xlu0 %v1625_v4, %s10745_s4  ;;  %v1626_v53 = vmul.f32 0.0, %v1625_v4 }
 0x3b0   :  { %v1629_v62 = vpop.permute.xlu0 %1628 }
 0x3b1   :  { %v1631_v46 = vmul.f32 %v1629_v62, %v1625_v4 }
 0x3b3   :  { %1633 = vrot.lane.b32.xlu0 %v1631_v46, %s10746_s18 }
 0x425   :  { %v1634_v1 = vpop.permute.xlu0 %1633 }
 0x426   :  { %v11794_v31 = vadd.f32 %v1634_v1, %v1626_v53 }
 0x428   :  { %10696 = vtanh.f32 %v11794_v31  ;;  %v2298_v62 = vrot.slane %v11794_v31, 6 }
 0x432   :  { %v10697_v58 = vpop.eup %10696 }
 0x433   :  { %1639 = vrot.lane.b32.xlu1 %v10697_v58, %s10745_s4 }
 0x4a5   :  { %v1640_v9 = vpop.permute.xlu1 %1639 }
 0x4a6   :  { %v1642_v10 = vmul.f32 %v1640_v9, %v1625_v4 }
 0x4a8   :  { %1644 = vrot.lane.b32.xlu1 %v1642_v10, %s10746_s18 }
 0x51a   :  { %v11799_v60 = vpop.permute.xlu1 %1644 }
 0x51b   :  { %v1646_v0 = vsel %vm167_vm0, %v11799_v60, 0 }
 0x51c   :  { %v11803_v51 = vand.u32 4294901760, %v1646_v0 }
 0x51e   :  { %v1730_v16 = vsub.f32 %v1646_v0, %v11803_v51 }
 0x520   :  { %v1731_v21 = vand.u32 4294901760, %v1730_v16 }
 0x522   :  { %v1732_v27 = vsub.f32 %v1730_v16, %v1731_v21 }
 0x524   :  { %v1733_v24 = vand.u32 4294901760, %v1732_v27 }
 0x526   :  { %7832 = vmatmul.mubr.f32.vlgmr.msra.gmra.mrb[2].mxu0 %v1733_v24 }
 0x527   :  { %9631 = vmatpush3.bf16.xpose.msra.mxu0 %v11462_v28  ;;  %7866 = vmatprep.mubr.msk.f32.mxu0 %vm10742_vm8, %v10743_v57 }
 0x528   :  { %9632 = vmatprep.subr.bf16.mxu0 %v10741_v11 }
 0x52f   :  { %9634 = vmatpush3.bf16.xpose.msra.mxu0 %v11483_v35 }
 0x530   :  { %9635 = vmatprep.subr.bf16.mxu0 %v10741_v11 }
 0x537   :  { %9637 = vmatpush3.bf16.xpose.msra.mxu0 %v11499_v42 }
 0x538   :  { %9638 = vmatprep.subr.bf16.mxu0 %v10741_v11 }
 0x53f   :  { %9640 = vmatpush3.bf16.xpose.msra.mxu0 %v11531_v30 }
 0x540   :  { %9641 = vmatprep.subr.bf16.mxu0 %v10741_v11 }
 0x547   :  { %9643 = vmatpush3.bf16.xpose.msra.mxu0 %v11549_v49 }
 0x548   :  { %9644 = vmatprep.subr.bf16.mxu0 %v10741_v11 }
 0x54f   :  { %9646 = vmatpush3.bf16.xpose.msra.mxu0 %v11565_v12 }
 0x550   :  { %9647 = vmatprep.subr.bf16.mxu0 %v10741_v11 }
 0x557   :  { %9649 = vmatpush3.bf16.xpose.msra.mxu0 %v11587_v36 }
 0x558   :  { %9650 = vmatprep.subr.bf16.mxu0 %v10741_v11 }
 0x55f   :  { %9652 = vmatpush3.bf16.xpose.msra.mxu0 %v11597_v29 }
 0x560   :  { %9653 = vmatprep.subr.bf16.mxu0 %v10741_v11 }
 0x566   :  { %7867 = vmatmul.mubr.f32.vlgmr.msra.gmra.mrb[2].mxu0 %v11803_v51 }
 0x567   :  { %9655 = vmatpush3.bf16.xpose.msra.mxu0 %v11603_v40  ;;  %7901 = vmatprep.mubr.msk.f32.mxu0 %vm10742_vm8, %v10743_v57 }
 0x568   :  { %9656 = vmatprep.subr.bf16.mxu0 %v10741_v11 }
 0x56f   :  { %9658 = vmatpush3.bf16.xpose.msra.mxu0 %v11612_v48 }
 0x570   :  { %9659 = vmatprep.subr.bf16.mxu0 %v10741_v11 }
 0x577   :  { %9661 = vmatpush3.bf16.xpose.msra.mxu0 %v11618_v39 }
 0x578   :  { %9662 = vmatprep.subr.bf16.mxu0 %v10741_v11 }
 0x57f   :  { %9664 = vmatpush3.bf16.xpose.msra.mxu0 %v11624_v41 }
 0x580   :  { %9665 = vmatprep.subr.bf16.mxu0 %v10741_v11 }
 0x587   :  { %9667 = vmatpush3.bf16.xpose.msra.mxu0 %v11630_v32 }
 0x588   :  { %9668 = vmatprep.subr.bf16.mxu0 %v10741_v11 }
 0x58f   :  { %9670 = vmatpush3.bf16.xpose.msra.mxu0 %v11636_v33 }
 0x590   :  { %9671 = vmatprep.subr.bf16.mxu0 %v10741_v11 }
 0x597   :  { %9673 = vmatpush3.bf16.xpose.msra.mxu0 %v11642_v43 }
 0x598   :  { %9674 = vmatprep.subr.bf16.mxu0 %v10741_v11 }
 0x59f   :  { %9676 = vmatpush3.bf16.xpose.msra.mxu0 %v11648_v44 }
 0x5a0   :  { %9677 = vmatprep.subr.bf16.mxu0 %v10741_v11 }
 0x5a6   :  { %7902 = vmatmul.mubr.f32.vlgmr.msra.gmra.mrb[2].mxu0 %v1730_v16 }
 0x5a7   :  { %9679 = vmatpush3.bf16.xpose.msra.mxu0 %v11248_v23  ;;  %7936 = vmatprep.mubr.msk.f32.mxu0 %vm10742_vm8, %v10743_v57 }
 0x5a8   :  { %9680 = vmatprep.subr.bf16.mxu0 %v10741_v11 }
 0x5af   :  { %9682 = vmatpush3.bf16.xpose.msra.mxu0 %v11278_v26 }
 0x5b0   :  { %9683 = vmatprep.subr.bf16.mxu0 %v10741_v11 }
 0x5b7   :  { %9685 = vmatpush3.bf16.xpose.msra.mxu0 %v11302_v59 }
 0x5b8   :  { %9686 = vmatprep.subr.bf16.mxu0 %v10741_v11 }
 0x5bf   :  { %9688 = vmatpush3.bf16.xpose.msra.mxu0 %v11326_v20 }
 0x5c0   :  { %9689 = vmatprep.subr.bf16.mxu0 %v10741_v11 }
 0x5c7   :  { %9691 = vmatpush3.bf16.xpose.msra.mxu0 %v11350_v37 }
 0x5c8   :  { %9692 = vmatprep.subr.bf16.mxu0 %v10741_v11 }
 0x5cf   :  { %9694 = vmatpush3.bf16.xpose.msra.mxu0 %v11374_v18 }
 0x5d0   :  { %9695 = vmatprep.subr.bf16.mxu0 %v10741_v11 }
 0x5d7   :  { %9697 = vmatpush3.bf16.xpose.msra.mxu0 %v11398_v19 }
 0x5d8   :  { %9698 = vmatprep.subr.bf16.mxu0 %v10741_v11 }
 0x5df   :  { %9700 = vmatpush3.bf16.xpose.msra.mxu0 %v11428_v63 }
 0x5e0   :  { %9701 = vmatprep.subr.bf16.mxu0 %v10741_v11 }
 0x5e6   :  { %7937 = vmatmul.mubr.f32.vlgmr.msra.gmra.mrb[2].mxu0 %v1731_v21 }
 0x5e7   :  { %9703 = vmatpush3.bf16.xpose.msra.mxu0 %v11682_v50  ;;  %7971 = vmatprep.mubr.msk.f32.mxu0 %vm10742_vm8, %v10743_v57 }
 0x5e8   :  { %9704 = vmatprep.subr.bf16.mxu0 %v10741_v11 }
 0x5ef   :  { %9706 = vmatpush3.bf16.xpose.msra.mxu0 %v11693_v7 }
 0x5f0   :  { %9707 = vmatprep.subr.bf16.mxu0 %v10741_v11 }
 0x5f7   :  { %9709 = vmatpush3.bf16.xpose.msra.mxu0 %v11701_v54 }
 0x5f8   :  { %9710 = vmatprep.subr.bf16.mxu0 %v10741_v11 }
 0x5ff   :  { %9712 = vmatpush3.bf16.xpose.msra.mxu0 %v11709_v61 }
 0x600   :  { %9713 = vmatprep.subr.bf16.mxu0 %v10741_v11 }
 0x607   :  { %9715 = vmatpush3.bf16.xpose.msra.mxu0 %v11717_v14 }
 0x608   :  { %9716 = vmatprep.subr.bf16.mxu0 %v10741_v11 }
 0x60f   :  { %9718 = vmatpush3.bf16.xpose.msra.mxu0 %v11725_v15 }
 0x610   :  { %9719 = vmatprep.subr.bf16.mxu0 %v10741_v11 }
 0x617   :  { %9721 = vmatpush3.bf16.xpose.msra.mxu0 %v11733_v2 }
 0x618   :  { %9722 = vmatprep.subr.bf16.mxu0 %v10741_v11 }
 0x61f   :  { %9724 = vmatpush3.bf16.xpose.msra.mxu0 %v11741_v56 }
 0x620   :  { %9725 = vmatprep.subr.bf16.mxu0 %v10741_v11 }
 0x626   :  { %7972 = vmatmul.mubr.f32.vlgmr.msra.gmra.mrb[2].mxu0 %v11803_v51 }
 0x627   :  { %9727 = vmatpush3.bf16.xpose.msra.mxu0 %v11248_v23  ;;  %8006 = vmatprep.mubr.msk.f32.mxu0 %vm10742_vm8, %v10743_v57 }
 0x628   :  { %9728 = vmatprep.subr.bf16.mxu0 %v10741_v11 }
 0x62f   :  { %9730 = vmatpush3.bf16.xpose.msra.mxu0 %v11278_v26 }
 0x630   :  { %9731 = vmatprep.subr.bf16.mxu0 %v10741_v11 }
 0x637   :  { %9733 = vmatpush3.bf16.xpose.msra.mxu0 %v11302_v59 }
 0x638   :  { %9734 = vmatprep.subr.bf16.mxu0 %v10741_v11 }
 0x63f   :  { %9736 = vmatpush3.bf16.xpose.msra.mxu0 %v11326_v20 }
 0x640   :  { %9737 = vmatprep.subr.bf16.mxu0 %v10741_v11 }
 0x647   :  { %9739 = vmatpush3.bf16.xpose.msra.mxu0 %v11350_v37 }
 0x648   :  { %9740 = vmatprep.subr.bf16.mxu0 %v10741_v11 }
 0x64f   :  { %9742 = vmatpush3.bf16.xpose.msra.mxu0 %v11374_v18 }
 0x650   :  { %9743 = vmatprep.subr.bf16.mxu0 %v10741_v11 }
 0x657   :  { %9745 = vmatpush3.bf16.xpose.msra.mxu0 %v11398_v19 }
 0x658   :  { %9746 = vmatprep.subr.bf16.mxu0 %v10741_v11 }
 0x65f   :  { %9748 = vmatpush3.bf16.xpose.msra.mxu0 %v11428_v63 }
 0x660   :  { %9893 = vmatprep.subr.bf16.mxu0 %v10741_v11 }
 0x666   :  { %8007 = vmatmul.mubr.f32.vlgmr.msra.gmra.mrb[2].mxu0 %v11803_v51 }
 0x667   :  { %9895 = vmatpush3.bf16.xpose.msra.mxu0 %v11248_v23  ;;  %8251 = vmatprep.mubr.msk.f32.mxu0 %vm10742_vm8, %v10743_v57 }
 0x668   :  { %9896 = vmatprep.subr.bf16.mxu0 %v10741_v11 }
 0x66f   :  { %9898 = vmatpush3.bf16.xpose.msra.mxu0 %v11278_v26 }
 0x670   :  { %9899 = vmatprep.subr.bf16.mxu0 %v10741_v11 }
 0x677   :  { %9901 = vmatpush3.bf16.xpose.msra.mxu0 %v11302_v59 }
 0x678   :  { %9902 = vmatprep.subr.bf16.mxu0 %v10741_v11 }
 0x67f   :  { %9904 = vmatpush3.bf16.xpose.msra.mxu0 %v11326_v20 }
 0x680   :  { %9905 = vmatprep.subr.bf16.mxu0 %v10741_v11 }
 0x687   :  { %9907 = vmatpush3.bf16.xpose.msra.mxu0 %v11350_v37 }
 0x688   :  { %9908 = vmatprep.subr.bf16.mxu0 %v10741_v11 }
 0x68f   :  { %9910 = vmatpush3.bf16.xpose.msra.mxu0 %v11374_v18 }
 0x690   :  { %9911 = vmatprep.subr.bf16.mxu0 %v10741_v11 }
 0x697   :  { %9913 = vmatpush3.bf16.xpose.msra.mxu0 %v11398_v19 }
 0x698   :  { %9914 = vmatprep.subr.bf16.mxu0 %v10741_v11 }
 0x69f   :  { %9916 = vmatpush3.bf16.xpose.msra.mxu0 %v11428_v63 }
 0x6a0   :  { %9917 = vmatprep.subr.bf16.mxu0 %v10741_v11 }
 0x739   :  { %v2285_v55 = vpop.f32.mrb[2].mxu0 }
 0x73a   :  { %v2290_v25 = vrot.slane %v2285_v55, 6  ;;  %v8008_v34 = vpop.f32.mrb[3].mxu0 }
 0x73c   :  { %v2292_v45 = vadd.f32 %v11666_v5, %v2290_v25 }
 0x73e   :  { %v2293_v47 = vmul.f32 %v2292_v45, %v11784_v6 }
 0x740   :  { %10698 = vtanh.f32 %v2293_v47 }
 0x74a   :  { %v10699_v22 = vpop.eup %10698 }
 0x74b   :  { %v2295_v52 = vmul.f32 %v10699_v22, %v11784_v6 }
 0x74d   :  { %v2296_v13 = vadd.f32 %v2295_v52, %v11788_v3 }
 0x74f   :  { %2302 = vrot.lane.b32.xlu0 %v2296_v13, %s10745_s4  ;;  %v2300_v46 = vmul.f32 %v2298_v62, %v2296_v13 }
 0x7c1   :  { %v2303_v8 = vpop.permute.xlu0 %2302 }
 0x7c2   :  { %v2305_v4 = vmul.f32 %v2303_v8, %v2296_v13 }
 0x7c4   :  { %2307 = vrot.lane.b32.xlu1 %v2305_v4, %s10746_s18 }
 0x836   :  { %v2308_v53 = vpop.permute.xlu1 %2307 }
 0x837   :  { %v11924_v1 = vadd.f32 %v2308_v53, %v2300_v46 }
 0x839   :  { %10700 = vtanh.f32 %v11924_v1  ;;  %v2973_v46 = vrot.slane %v11924_v1, 6 }
 0x843   :  { %v10701_v58 = vpop.eup %10700 }
 0x844   :  { %2313 = vrot.lane.b32.xlu0 %v10701_v58, %s10745_s4 }
 0x8b6   :  { %v2314_v9 = vpop.permute.xlu0 %2313 }
 0x8b7   :  { %v11928_v10 = vmul.f32 %v2314_v9, %v2296_v13 }
 0x8b9   :  { %v2318_v0 = vrot.slane %v11928_v10, 2 }
 0x8bb   :  { %2319 = vrot.lane.b32.xlu1 %v2318_v0, %s10746_s18 }
 0x92d   :  { %v2320_v51 = vpop.permute.xlu1 %2319 }
 0x92e   :  { %v2321_v31 = vsel %vm167_vm0, %v2320_v51, 0 }
 0x92f   :  { %v11935_v16 = vand.u32 4294901760, %v2321_v31 }
 0x931   :  { %v2405_v21 = vsub.f32 %v2321_v31, %v11935_v16 }
 0x933   :  { %v2406_v27 = vand.u32 4294901760, %v2405_v21 }
 0x935   :  { %v2407_v24 = vsub.f32 %v2405_v21, %v2406_v27 }
 0x937   :  { %v2408_v55 = vand.u32 4294901760, %v2407_v24 }
 0x939   :  { %8042 = vmatmul.mubr.f32.vlgmr.msra.gmra.mrb[14].mxu1 %v2408_v55 }
 0x93a   :  { %9775 = vmatpush3.bf16.xpose.msra.mxu1 %v11462_v28  ;;  %8076 = vmatprep.mubr.msk.f32.mxu1 %vm10742_vm8, %v10743_v57 }
 0x93b   :  { %9776 = vmatprep.subr.bf16.mxu1 %v10741_v11 }
 0x942   :  { %9778 = vmatpush3.bf16.xpose.msra.mxu1 %v11483_v35 }
 0x943   :  { %9779 = vmatprep.subr.bf16.mxu1 %v10741_v11 }
 0x94a   :  { %9781 = vmatpush3.bf16.xpose.msra.mxu1 %v11499_v42 }
 0x94b   :  { %9782 = vmatprep.subr.bf16.mxu1 %v10741_v11 }
 0x952   :  { %9784 = vmatpush3.bf16.xpose.msra.mxu1 %v11531_v30 }
 0x953   :  { %9785 = vmatprep.subr.bf16.mxu1 %v10741_v11 }
 0x95a   :  { %9787 = vmatpush3.bf16.xpose.msra.mxu1 %v11549_v49 }
 0x95b   :  { %9788 = vmatprep.subr.bf16.mxu1 %v10741_v11 }
 0x962   :  { %9790 = vmatpush3.bf16.xpose.msra.mxu1 %v11565_v12 }
 0x963   :  { %9791 = vmatprep.subr.bf16.mxu1 %v10741_v11 }
 0x96a   :  { %9793 = vmatpush3.bf16.xpose.msra.mxu1 %v11587_v36 }
 0x96b   :  { %9794 = vmatprep.subr.bf16.mxu1 %v10741_v11 }
 0x972   :  { %9796 = vmatpush3.bf16.xpose.msra.mxu1 %v11597_v29 }
 0x973   :  { %9797 = vmatprep.subr.bf16.mxu1 %v10741_v11 }
 0x979   :  { %8077 = vmatmul.mubr.f32.vlgmr.msra.gmra.mrb[14].mxu1 %v11935_v16 }
 0x97a   :  { %9799 = vmatpush3.bf16.xpose.msra.mxu1 %v11603_v40  ;;  %8111 = vmatprep.mubr.msk.f32.mxu1 %vm10742_vm8, %v10743_v57 }
 0x97b   :  { %9800 = vmatprep.subr.bf16.mxu1 %v10741_v11 }
 0x982   :  { %9802 = vmatpush3.bf16.xpose.msra.mxu1 %v11612_v48 }
 0x983   :  { %9803 = vmatprep.subr.bf16.mxu1 %v10741_v11 }
 0x98a   :  { %9805 = vmatpush3.bf16.xpose.msra.mxu1 %v11618_v39 }
 0x98b   :  { %9806 = vmatprep.subr.bf16.mxu1 %v10741_v11 }
 0x992   :  { %9808 = vmatpush3.bf16.xpose.msra.mxu1 %v11624_v41 }
 0x993   :  { %9809 = vmatprep.subr.bf16.mxu1 %v10741_v11 }
 0x99a   :  { %9811 = vmatpush3.bf16.xpose.msra.mxu1 %v11630_v32 }
 0x99b   :  { %9812 = vmatprep.subr.bf16.mxu1 %v10741_v11 }
 0x9a2   :  { %9814 = vmatpush3.bf16.xpose.msra.mxu1 %v11636_v33 }
 0x9a3   :  { %9815 = vmatprep.subr.bf16.mxu1 %v10741_v11 }
 0x9aa   :  { %9817 = vmatpush3.bf16.xpose.msra.mxu1 %v11642_v43 }
 0x9ab   :  { %9818 = vmatprep.subr.bf16.mxu1 %v10741_v11 }
 0x9b2   :  { %9820 = vmatpush3.bf16.xpose.msra.mxu1 %v11648_v44 }
 0x9b3   :  { %9821 = vmatprep.subr.bf16.mxu1 %v10741_v11 }
 0x9b9   :  { %8112 = vmatmul.mubr.f32.vlgmr.msra.gmra.mrb[14].mxu1 %v2405_v21 }
 0x9ba   :  { %9823 = vmatpush3.bf16.xpose.msra.mxu1 %v11248_v23  ;;  %8146 = vmatprep.mubr.msk.f32.mxu1 %vm10742_vm8, %v10743_v57 }
 0x9bb   :  { %9824 = vmatprep.subr.bf16.mxu1 %v10741_v11 }
 0x9c2   :  { %9826 = vmatpush3.bf16.xpose.msra.mxu1 %v11278_v26 }
 0x9c3   :  { %9827 = vmatprep.subr.bf16.mxu1 %v10741_v11 }
 0x9ca   :  { %9829 = vmatpush3.bf16.xpose.msra.mxu1 %v11302_v59 }
 0x9cb   :  { %9830 = vmatprep.subr.bf16.mxu1 %v10741_v11 }
 0x9d2   :  { %9832 = vmatpush3.bf16.xpose.msra.mxu1 %v11326_v20 }
 0x9d3   :  { %9833 = vmatprep.subr.bf16.mxu1 %v10741_v11 }
 0x9da   :  { %9835 = vmatpush3.bf16.xpose.msra.mxu1 %v11350_v37 }
 0x9db   :  { %9836 = vmatprep.subr.bf16.mxu1 %v10741_v11 }
 0x9e2   :  { %9838 = vmatpush3.bf16.xpose.msra.mxu1 %v11374_v18 }
 0x9e3   :  { %9839 = vmatprep.subr.bf16.mxu1 %v10741_v11 }
 0x9ea   :  { %9841 = vmatpush3.bf16.xpose.msra.mxu1 %v11398_v19 }
 0x9eb   :  { %9842 = vmatprep.subr.bf16.mxu1 %v10741_v11 }
 0x9f2   :  { %9844 = vmatpush3.bf16.xpose.msra.mxu1 %v11428_v63 }
 0x9f3   :  { %9845 = vmatprep.subr.bf16.mxu1 %v10741_v11 }
 0x9f9   :  { %8147 = vmatmul.mubr.f32.vlgmr.msra.gmra.mrb[14].mxu1 %v2406_v27 }
 0x9fa   :  { %9847 = vmatpush3.bf16.xpose.msra.mxu1 %v11682_v50  ;;  %8181 = vmatprep.mubr.msk.f32.mxu1 %vm10742_vm8, %v10743_v57 }
 0x9fb   :  { %9848 = vmatprep.subr.bf16.mxu1 %v10741_v11 }
 0xa02   :  { %9850 = vmatpush3.bf16.xpose.msra.mxu1 %v11693_v7 }
 0xa03   :  { %9851 = vmatprep.subr.bf16.mxu1 %v10741_v11 }
 0xa0a   :  { %9853 = vmatpush3.bf16.xpose.msra.mxu1 %v11701_v54 }
 0xa0b   :  { %9854 = vmatprep.subr.bf16.mxu1 %v10741_v11 }
 0xa12   :  { %9856 = vmatpush3.bf16.xpose.msra.mxu1 %v11709_v61 }
 0xa13   :  { %9857 = vmatprep.subr.bf16.mxu1 %v10741_v11 }
 0xa1a   :  { %9859 = vmatpush3.bf16.xpose.msra.mxu1 %v11717_v14 }
 0xa1b   :  { %9860 = vmatprep.subr.bf16.mxu1 %v10741_v11 }
 0xa22   :  { %9862 = vmatpush3.bf16.xpose.msra.mxu1 %v11725_v15 }
 0xa23   :  { %9863 = vmatprep.subr.bf16.mxu1 %v10741_v11 }
 0xa2a   :  { %9865 = vmatpush3.bf16.xpose.msra.mxu1 %v11733_v2 }
 0xa2b   :  { %9866 = vmatprep.subr.bf16.mxu1 %v10741_v11 }
 0xa32   :  { %9868 = vmatpush3.bf16.xpose.msra.mxu1 %v11741_v56 }
 0xa33   :  { %9869 = vmatprep.subr.bf16.mxu1 %v10741_v11 }
 0xa39   :  { %8182 = vmatmul.mubr.f32.vlgmr.msra.gmra.mrb[14].mxu1 %v11935_v16 }
 0xa3a   :  { %9871 = vmatpush3.bf16.xpose.msra.mxu1 %v11248_v23  ;;  %8216 = vmatprep.mubr.msk.f32.mxu1 %vm10742_vm8, %v10743_v57 }
 0xa3b   :  { %9872 = vmatprep.subr.bf16.mxu1 %v10741_v11 }
 0xa42   :  { %9874 = vmatpush3.bf16.xpose.msra.mxu1 %v11278_v26 }
 0xa43   :  { %9875 = vmatprep.subr.bf16.mxu1 %v10741_v11 }
 0xa4a   :  { %9877 = vmatpush3.bf16.xpose.msra.mxu1 %v11302_v59 }
 0xa4b   :  { %9878 = vmatprep.subr.bf16.mxu1 %v10741_v11 }
 0xa52   :  { %9880 = vmatpush3.bf16.xpose.msra.mxu1 %v11326_v20 }
 0xa53   :  { %9881 = vmatprep.subr.bf16.mxu1 %v10741_v11 }
 0xa5a   :  { %9883 = vmatpush3.bf16.xpose.msra.mxu1 %v11350_v37 }
 0xa5b   :  { %9884 = vmatprep.subr.bf16.mxu1 %v10741_v11 }
 0xa62   :  { %9886 = vmatpush3.bf16.xpose.msra.mxu1 %v11374_v18 }
 0xa63   :  { %9887 = vmatprep.subr.bf16.mxu1 %v10741_v11 }
 0xa6a   :  { %9889 = vmatpush3.bf16.xpose.msra.mxu1 %v11398_v19 }
 0xa6b   :  { %9890 = vmatprep.subr.bf16.mxu1 %v10741_v11 }
 0xa72   :  { %9892 = vmatpush3.bf16.xpose.msra.mxu1 %v11428_v63 }
 0xa73   :  { %10037 = vmatprep.subr.bf16.mxu1 %v10741_v11 }
 0xa79   :  { %8217 = vmatmul.mubr.f32.vlgmr.msra.gmra.mrb[14].mxu1 %v11935_v16 }
 0xa7a   :  { %10039 = vmatpush3.bf16.xpose.msra.mxu1 %v11248_v23  ;;  %8461 = vmatprep.mubr.msk.f32.mxu1 %vm10742_vm8, %v10743_v57 }
 0xa7b   :  { %10040 = vmatprep.subr.bf16.mxu1 %v10741_v11 }
 0xa82   :  { %10042 = vmatpush3.bf16.xpose.msra.mxu1 %v11278_v26 }
 0xa83   :  { %10043 = vmatprep.subr.bf16.mxu1 %v10741_v11 }
 0xa8a   :  { %10045 = vmatpush3.bf16.xpose.msra.mxu1 %v11302_v59 }
 0xa8b   :  { %10046 = vmatprep.subr.bf16.mxu1 %v10741_v11 }
 0xa92   :  { %10048 = vmatpush3.bf16.xpose.msra.mxu1 %v11326_v20 }
 0xa93   :  { %10049 = vmatprep.subr.bf16.mxu1 %v10741_v11 }
 0xa9a   :  { %10051 = vmatpush3.bf16.xpose.msra.mxu1 %v11350_v37 }
 0xa9b   :  { %10052 = vmatprep.subr.bf16.mxu1 %v10741_v11 }
 0xaa2   :  { %10054 = vmatpush3.bf16.xpose.msra.mxu1 %v11374_v18 }
 0xaa3   :  { %10055 = vmatprep.subr.bf16.mxu1 %v10741_v11 }
 0xaaa   :  { %10057 = vmatpush3.bf16.xpose.msra.mxu1 %v11398_v19 }
 0xaab   :  { %10058 = vmatprep.subr.bf16.mxu1 %v10741_v11 }
 0xab2   :  { %10060 = vmatpush3.bf16.xpose.msra.mxu1 %v11428_v63 }
 0xab3   :  { %10061 = vmatprep.subr.bf16.mxu1 %v10741_v11 }
 0xb4c   :  { %v2960_v25 = vpop.f32.mrb[14].mxu1 }
 0xb4d   :  { %v2965_v34 = vrot.slane %v2960_v25, 4  ;;  %v8218_v45 = vpop.f32.mrb[15].mxu1 }
 0xb4f   :  { %v2967_v47 = vadd.f32 %v11666_v5, %v2965_v34 }
 0xb51   :  { %v2968_v22 = vmul.f32 %v2967_v47, %v11784_v6 }
 0xb53   :  { %10702 = vtanh.f32 %v2968_v22 }
 0xb5d   :  { %v10703_v52 = vpop.eup %10702 }
 0xb5e   :  { %v2970_v13 = vmul.f32 %v10703_v52, %v11784_v6 }
 0xb60   :  { %v2971_v8 = vadd.f32 %v2970_v13, %v11788_v3 }
 0xb62   :  { %2977 = vrot.lane.b32.xlu0 %v2971_v8, %s10745_s4  ;;  %v2975_v53 = vmul.f32 %v2973_v46, %v2971_v8 }
 0xbd4   :  { %v2978_v4 = vpop.permute.xlu0 %2977 }
 0xbd5   :  { %v2980_v62 = vmul.f32 %v2978_v4, %v2971_v8 }
 0xbd7   :  { %2982 = vrot.lane.b32.xlu1 %v2980_v62, %s10746_s18 }
 0xc49   :  { %v2983_v58 = vpop.permute.xlu1 %2982 }
 0xc4a   :  { %v12056_v9 = vadd.f32 %v2983_v58, %v2975_v53 }
 0xc4c   :  { %10704 = vtanh.f32 %v12056_v9 }
 0xc56   :  { %v10705_v51 = vpop.eup %10704 }
 0xc57   :  { %2988 = vrot.lane.b32.xlu0 %v10705_v51, %s10745_s4  ;;  %v3648_v51 = vrot.slane %v12056_v9, 6 }
 0xcc9   :  { %v2989_v31 = vpop.permute.xlu0 %2988 }
 0xcca   :  { %v12060_v16 = vmul.f32 %v2989_v31, %v2971_v8 }
 0xccc   :  { %v2993_v21 = vrot.slane %v12060_v16, 4 }
 0xcce   :  { %2994 = vrot.lane.b32.xlu1 %v2993_v21, %s10746_s18 }
 0xd40   :  { %v2995_v27 = vpop.permute.xlu1 %2994 }
 0xd41   :  { %v2996_v1 = vsel %vm167_vm0, %v2995_v27, 0 }
 0xd42   :  { %v12067_v24 = vand.u32 4294901760, %v2996_v1 }
 0xd44   :  { %v3080_v55 = vsub.f32 %v2996_v1, %v12067_v24 }
 0xd46   :  { %v3081_v25 = vand.u32 4294901760, %v3080_v55 }
 0xd48   :  { %v3082_v34 = vsub.f32 %v3080_v55, %v3081_v25 }
 0xd4a   :  { %v3083_v45 = vand.u32 4294901760, %v3082_v34 }
 0xd4c   :  { %8252 = vmatmul.mubr.f32.vlgmr.msra.gmra.mrb[4].mxu0 %v3083_v45 }
 0xd4d   :  { %9919 = vmatpush3.bf16.xpose.msra.mxu0 %v11462_v28  ;;  %8286 = vmatprep.mubr.msk.f32.mxu0 %vm10742_vm8, %v10743_v57 }
 0xd4e   :  { %9920 = vmatprep.subr.bf16.mxu0 %v10741_v11 }
 0xd55   :  { %9922 = vmatpush3.bf16.xpose.msra.mxu0 %v11483_v35 }
 0xd56   :  { %9923 = vmatprep.subr.bf16.mxu0 %v10741_v11 }
 0xd5d   :  { %9925 = vmatpush3.bf16.xpose.msra.mxu0 %v11499_v42 }
 0xd5e   :  { %9926 = vmatprep.subr.bf16.mxu0 %v10741_v11 }
 0xd65   :  { %9928 = vmatpush3.bf16.xpose.msra.mxu0 %v11531_v30 }
 0xd66   :  { %9929 = vmatprep.subr.bf16.mxu0 %v10741_v11 }
 0xd6d   :  { %9931 = vmatpush3.bf16.xpose.msra.mxu0 %v11549_v49 }
 0xd6e   :  { %9932 = vmatprep.subr.bf16.mxu0 %v10741_v11 }
 0xd75   :  { %9934 = vmatpush3.bf16.xpose.msra.mxu0 %v11565_v12 }
 0xd76   :  { %9935 = vmatprep.subr.bf16.mxu0 %v10741_v11 }
 0xd7d   :  { %9937 = vmatpush3.bf16.xpose.msra.mxu0 %v11587_v36 }
 0xd7e   :  { %9938 = vmatprep.subr.bf16.mxu0 %v10741_v11 }
 0xd85   :  { %9940 = vmatpush3.bf16.xpose.msra.mxu0 %v11597_v29 }
 0xd86   :  { %9941 = vmatprep.subr.bf16.mxu0 %v10741_v11 }
 0xd8c   :  { %8287 = vmatmul.mubr.f32.vlgmr.msra.gmra.mrb[4].mxu0 %v12067_v24 }
 0xd8d   :  { %9943 = vmatpush3.bf16.xpose.msra.mxu0 %v11603_v40  ;;  %8321 = vmatprep.mubr.msk.f32.mxu0 %vm10742_vm8, %v10743_v57 }
 0xd8e   :  { %9944 = vmatprep.subr.bf16.mxu0 %v10741_v11 }
 0xd95   :  { %9946 = vmatpush3.bf16.xpose.msra.mxu0 %v11612_v48 }
 0xd96   :  { %9947 = vmatprep.subr.bf16.mxu0 %v10741_v11 }
 0xd9d   :  { %9949 = vmatpush3.bf16.xpose.msra.mxu0 %v11618_v39 }
 0xd9e   :  { %9950 = vmatprep.subr.bf16.mxu0 %v10741_v11 }
 0xda5   :  { %9952 = vmatpush3.bf16.xpose.msra.mxu0 %v11624_v41 }
 0xda6   :  { %9953 = vmatprep.subr.bf16.mxu0 %v10741_v11 }
 0xdad   :  { %9955 = vmatpush3.bf16.xpose.msra.mxu0 %v11630_v32 }
 0xdae   :  { %9956 = vmatprep.subr.bf16.mxu0 %v10741_v11 }
 0xdb5   :  { %9958 = vmatpush3.bf16.xpose.msra.mxu0 %v11636_v33 }
 0xdb6   :  { %9959 = vmatprep.subr.bf16.mxu0 %v10741_v11 }
 0xdbd   :  { %9961 = vmatpush3.bf16.xpose.msra.mxu0 %v11642_v43 }
 0xdbe   :  { %9962 = vmatprep.subr.bf16.mxu0 %v10741_v11 }
 0xdc5   :  { %9964 = vmatpush3.bf16.xpose.msra.mxu0 %v11648_v44 }
 0xdc6   :  { %9965 = vmatprep.subr.bf16.mxu0 %v10741_v11 }
 0xdcc   :  { %8322 = vmatmul.mubr.f32.vlgmr.msra.gmra.mrb[4].mxu0 %v3080_v55 }
 0xdcd   :  { %9967 = vmatpush3.bf16.xpose.msra.mxu0 %v11248_v23  ;;  %8356 = vmatprep.mubr.msk.f32.mxu0 %vm10742_vm8, %v10743_v57 }
 0xdce   :  { %9968 = vmatprep.subr.bf16.mxu0 %v10741_v11 }
 0xdd5   :  { %9970 = vmatpush3.bf16.xpose.msra.mxu0 %v11278_v26 }
 0xdd6   :  { %9971 = vmatprep.subr.bf16.mxu0 %v10741_v11 }
 0xddd   :  { %9973 = vmatpush3.bf16.xpose.msra.mxu0 %v11302_v59 }
 0xdde   :  { %9974 = vmatprep.subr.bf16.mxu0 %v10741_v11 }
 0xde5   :  { %9976 = vmatpush3.bf16.xpose.msra.mxu0 %v11326_v20 }
 0xde6   :  { %9977 = vmatprep.subr.bf16.mxu0 %v10741_v11 }
 0xded   :  { %9979 = vmatpush3.bf16.xpose.msra.mxu0 %v11350_v37 }
 0xdee   :  { %9980 = vmatprep.subr.bf16.mxu0 %v10741_v11 }
 0xdf5   :  { %9982 = vmatpush3.bf16.xpose.msra.mxu0 %v11374_v18 }
 0xdf6   :  { %9983 = vmatprep.subr.bf16.mxu0 %v10741_v11 }
 0xdfd   :  { %9985 = vmatpush3.bf16.xpose.msra.mxu0 %v11398_v19 }
 0xdfe   :  { %9986 = vmatprep.subr.bf16.mxu0 %v10741_v11 }
 0xe05   :  { %9988 = vmatpush3.bf16.xpose.msra.mxu0 %v11428_v63 }
 0xe06   :  { %9989 = vmatprep.subr.bf16.mxu0 %v10741_v11 }
 0xe0c   :  { %8357 = vmatmul.mubr.f32.vlgmr.msra.gmra.mrb[4].mxu0 %v3081_v25 }
 0xe0d   :  { %9991 = vmatpush3.bf16.xpose.msra.mxu0 %v11682_v50  ;;  %8391 = vmatprep.mubr.msk.f32.mxu0 %vm10742_vm8, %v10743_v57 }
 0xe0e   :  { %9992 = vmatprep.subr.bf16.mxu0 %v10741_v11 }
 0xe15   :  { %9994 = vmatpush3.bf16.xpose.msra.mxu0 %v11693_v7 }
 0xe16   :  { %9995 = vmatprep.subr.bf16.mxu0 %v10741_v11 }
 0xe1d   :  { %9997 = vmatpush3.bf16.xpose.msra.mxu0 %v11701_v54 }
 0xe1e   :  { %9998 = vmatprep.subr.bf16.mxu0 %v10741_v11 }
 0xe25   :  { %10000 = vmatpush3.bf16.xpose.msra.mxu0 %v11709_v61 }
 0xe26   :  { %10001 = vmatprep.subr.bf16.mxu0 %v10741_v11 }
 0xe2d   :  { %10003 = vmatpush3.bf16.xpose.msra.mxu0 %v11717_v14 }
 0xe2e   :  { %10004 = vmatprep.subr.bf16.mxu0 %v10741_v11 }
 0xe35   :  { %10006 = vmatpush3.bf16.xpose.msra.mxu0 %v11725_v15 }
 0xe36   :  { %10007 = vmatprep.subr.bf16.mxu0 %v10741_v11 }
 0xe3d   :  { %10009 = vmatpush3.bf16.xpose.msra.mxu0 %v11733_v2 }
 0xe3e   :  { %10010 = vmatprep.subr.bf16.mxu0 %v10741_v11 }
 0xe45   :  { %10012 = vmatpush3.bf16.xpose.msra.mxu0 %v11741_v56 }
 0xe46   :  { %10013 = vmatprep.subr.bf16.mxu0 %v10741_v11 }
 0xe4c   :  { %8392 = vmatmul.mubr.f32.vlgmr.msra.gmra.mrb[4].mxu0 %v12067_v24 }
 0xe4d   :  { %10015 = vmatpush3.bf16.xpose.msra.mxu0 %v11248_v23  ;;  %8426 = vmatprep.mubr.msk.f32.mxu0 %vm10742_vm8, %v10743_v57 }
 0xe4e   :  { %10016 = vmatprep.subr.bf16.mxu0 %v10741_v11 }
 0xe55   :  { %10018 = vmatpush3.bf16.xpose.msra.mxu0 %v11278_v26 }
 0xe56   :  { %10019 = vmatprep.subr.bf16.mxu0 %v10741_v11 }
 0xe5d   :  { %10021 = vmatpush3.bf16.xpose.msra.mxu0 %v11302_v59 }
 0xe5e   :  { %10022 = vmatprep.subr.bf16.mxu0 %v10741_v11 }
 0xe65   :  { %10024 = vmatpush3.bf16.xpose.msra.mxu0 %v11326_v20 }
 0xe66   :  { %10025 = vmatprep.subr.bf16.mxu0 %v10741_v11 }
 0xe6d   :  { %10027 = vmatpush3.bf16.xpose.msra.mxu0 %v11350_v37 }
 0xe6e   :  { %10028 = vmatprep.subr.bf16.mxu0 %v10741_v11 }
 0xe75   :  { %10030 = vmatpush3.bf16.xpose.msra.mxu0 %v11374_v18 }
 0xe76   :  { %10031 = vmatprep.subr.bf16.mxu0 %v10741_v11 }
 0xe7d   :  { %10033 = vmatpush3.bf16.xpose.msra.mxu0 %v11398_v19 }
 0xe7e   :  { %10034 = vmatprep.subr.bf16.mxu0 %v10741_v11 }
 0xe85   :  { %10036 = vmatpush3.bf16.xpose.msra.mxu0 %v11428_v63 }
 0xe86   :  { %10181 = vmatprep.subr.bf16.mxu0 %v10741_v11 }
 0xe8c   :  { %8427 = vmatmul.mubr.f32.vlgmr.msra.gmra.mrb[4].mxu0 %v12067_v24 }
 0xe8d   :  { %10183 = vmatpush3.bf16.xpose.msra.mxu0 %v11248_v23  ;;  %8671 = vmatprep.mubr.msk.f32.mxu0 %vm10742_vm8, %v10743_v57 }
 0xe8e   :  { %10184 = vmatprep.subr.bf16.mxu0 %v10741_v11 }
 0xe95   :  { %10186 = vmatpush3.bf16.xpose.msra.mxu0 %v11278_v26 }
 0xe96   :  { %10187 = vmatprep.subr.bf16.mxu0 %v10741_v11 }
 0xe9d   :  { %10189 = vmatpush3.bf16.xpose.msra.mxu0 %v11302_v59 }
 0xe9e   :  { %10190 = vmatprep.subr.bf16.mxu0 %v10741_v11 }
 0xea5   :  { %10192 = vmatpush3.bf16.xpose.msra.mxu0 %v11326_v20 }
 0xea6   :  { %10193 = vmatprep.subr.bf16.mxu0 %v10741_v11 }
 0xead   :  { %10195 = vmatpush3.bf16.xpose.msra.mxu0 %v11350_v37 }
 0xeae   :  { %10196 = vmatprep.subr.bf16.mxu0 %v10741_v11 }
 0xeb5   :  { %10198 = vmatpush3.bf16.xpose.msra.mxu0 %v11374_v18 }
 0xeb6   :  { %10199 = vmatprep.subr.bf16.mxu0 %v10741_v11 }
 0xebd   :  { %10201 = vmatpush3.bf16.xpose.msra.mxu0 %v11398_v19 }
 0xebe   :  { %10202 = vmatprep.subr.bf16.mxu0 %v10741_v11 }
 0xec5   :  { %10204 = vmatpush3.bf16.xpose.msra.mxu0 %v11428_v63 }
 0xec6   :  { %10205 = vmatprep.subr.bf16.mxu0 %v10741_v11 }
 0xf5f   :  { %v3635_v47 = vpop.f32.mrb[4].mxu0 }
 0xf60   :  { %v3640_v22 = vrot.slane %v3635_v47, 2  ;;  %v8428_v52 = vpop.f32.mrb[5].mxu0 }
 0xf62   :  { %v3642_v13 = vadd.f32 %v11666_v5, %v3640_v22 }
 0xf64   :  { %v3643_v8 = vmul.f32 %v3642_v13, %v11784_v6 }
 0xf66   :  { %10706 = vtanh.f32 %v3643_v8 }
 0xf70   :  { %v10707_v4 = vpop.eup %10706 }
 0xf71   :  { %v3645_v62 = vmul.f32 %v10707_v4, %v11784_v6 }
 0xf73   :  { %v3646_v46 = vadd.f32 %v3645_v62, %v11788_v3 }
 0xf75   :  { %3652 = vrot.lane.b32.xlu0 %v3646_v46, %s10745_s4  ;;  %v3650_v31 = vmul.f32 %v3648_v51, %v3646_v46 }
 0xfe7   :  { %v3653_v53 = vpop.permute.xlu0 %3652 }
 0xfe8   :  { %v3655_v58 = vmul.f32 %v3653_v53, %v3646_v46 }
 0xfea   :  { %3657 = vrot.lane.b32.xlu1 %v3655_v58, %s10746_s18 }
0x105c   :  { %v3658_v27 = vpop.permute.xlu1 %3657 }
0x105d   :  { %v12188_v1 = vadd.f32 %v3658_v27, %v3650_v31 }
0x105f   :  { %10708 = vtanh.f32 %v12188_v1 }
0x1069   :  { %v10709_v5 = vpop.eup %10708 }
0x106a   :  { %3663 = vrot.lane.b32.xlu0 %v10709_v5, %s10745_s4 }
0x10dc   :  { %v3664_v24 = vpop.permute.xlu0 %3663 }
0x10dd   :  { %v12192_v55 = vmul.f32 %v3664_v24, %v3646_v46 }
0x10df   :  { %v3668_v25 = vrot.slane %v12192_v55, 6 }
0x10e1   :  { %3669 = vrot.lane.b32.xlu1 %v3668_v25, %s10746_s18 }
0x1153   :  { %v3670_v34 = vpop.permute.xlu1 %3669 }
0x1154   :  { %v3671_v9 = vsel %vm167_vm0, %v3670_v34, 0 }
0x1155   :  { %v12199_v45 = vand.u32 4294901760, %v3671_v9 }
0x1157   :  { %v3755_v47 = vsub.f32 %v3671_v9, %v12199_v45 }
0x1159   :  { %v3756_v22 = vand.u32 4294901760, %v3755_v47 }
0x115b   :  { %v3757_v52 = vsub.f32 %v3755_v47, %v3756_v22 }
0x115d   :  { %v3758_v13 = vand.u32 4294901760, %v3757_v52 }
0x115f   :  { %8462 = vmatmul.mubr.f32.vlgmr.msra.gmra.mrb[16].mxu1 %v3758_v13 }
0x1160   :  { %10063 = vmatpush3.bf16.xpose.msra.mxu1 %v11462_v28  ;;  %8496 = vmatprep.mubr.msk.f32.mxu1 %vm10742_vm8, %v10743_v57 }
0x1161   :  { %10064 = vmatprep.subr.bf16.mxu1 %v10741_v11 }
0x1168   :  { %10066 = vmatpush3.bf16.xpose.msra.mxu1 %v11483_v35 }
0x1169   :  { %10067 = vmatprep.subr.bf16.mxu1 %v10741_v11 }
0x1170   :  { %10069 = vmatpush3.bf16.xpose.msra.mxu1 %v11499_v42 }
0x1171   :  { %10070 = vmatprep.subr.bf16.mxu1 %v10741_v11 }
0x1178   :  { %10072 = vmatpush3.bf16.xpose.msra.mxu1 %v11531_v30 }
0x1179   :  { %10073 = vmatprep.subr.bf16.mxu1 %v10741_v11 }
0x1180   :  { %10075 = vmatpush3.bf16.xpose.msra.mxu1 %v11549_v49 }
0x1181   :  { %10076 = vmatprep.subr.bf16.mxu1 %v10741_v11 }
0x1188   :  { %10078 = vmatpush3.bf16.xpose.msra.mxu1 %v11565_v12 }
0x1189   :  { %10079 = vmatprep.subr.bf16.mxu1 %v10741_v11 }
0x1190   :  { %10081 = vmatpush3.bf16.xpose.msra.mxu1 %v11587_v36 }
0x1191   :  { %10082 = vmatprep.subr.bf16.mxu1 %v10741_v11 }
0x1198   :  { %10084 = vmatpush3.bf16.xpose.msra.mxu1 %v11597_v29 }
0x1199   :  { %10085 = vmatprep.subr.bf16.mxu1 %v10741_v11 }
0x119f   :  { %8497 = vmatmul.mubr.f32.vlgmr.msra.gmra.mrb[18].mxu1 %v12199_v45 }
0x11a0   :  { %10087 = vmatpush3.bf16.xpose.msra.mxu1 %v11603_v40  ;;  %8531 = vmatprep.mubr.msk.f32.mxu1 %vm10742_vm8, %v10743_v57 }
0x11a1   :  { %10088 = vmatprep.subr.bf16.mxu1 %v10741_v11 }
0x11a8   :  { %10090 = vmatpush3.bf16.xpose.msra.mxu1 %v11612_v48 }
0x11a9   :  { %10091 = vmatprep.subr.bf16.mxu1 %v10741_v11 }
0x11b0   :  { %10093 = vmatpush3.bf16.xpose.msra.mxu1 %v11618_v39 }
0x11b1   :  { %10094 = vmatprep.subr.bf16.mxu1 %v10741_v11 }
0x11b8   :  { %10096 = vmatpush3.bf16.xpose.msra.mxu1 %v11624_v41 }
0x11b9   :  { %10097 = vmatprep.subr.bf16.mxu1 %v10741_v11 }
0x11c0   :  { %10099 = vmatpush3.bf16.xpose.msra.mxu1 %v11630_v32 }
0x11c1   :  { %10100 = vmatprep.subr.bf16.mxu1 %v10741_v11 }
0x11c8   :  { %10102 = vmatpush3.bf16.xpose.msra.mxu1 %v11636_v33 }
0x11c9   :  { %10103 = vmatprep.subr.bf16.mxu1 %v10741_v11 }
0x11d0   :  { %10105 = vmatpush3.bf16.xpose.msra.mxu1 %v11642_v43 }
0x11d1   :  { %10106 = vmatprep.subr.bf16.mxu1 %v10741_v11 }
0x11d8   :  { %10108 = vmatpush3.bf16.xpose.msra.mxu1 %v11648_v44 }
0x11d9   :  { %10109 = vmatprep.subr.bf16.mxu1 %v10741_v11 }
0x11df   :  { %8532 = vmatmul.mubr.f32.vlgmr.msra.gmra.mrb[20].mxu1 %v3755_v47 }
0x11e0   :  { %10111 = vmatpush3.bf16.xpose.msra.mxu1 %v11248_v23  ;;  %8566 = vmatprep.mubr.msk.f32.mxu1 %vm10742_vm8, %v10743_v57 }
0x11e1   :  { %10112 = vmatprep.subr.bf16.mxu1 %v10741_v11 }
0x11e8   :  { %10114 = vmatpush3.bf16.xpose.msra.mxu1 %v11278_v26 }
0x11e9   :  { %10115 = vmatprep.subr.bf16.mxu1 %v10741_v11 }
0x11f0   :  { %10117 = vmatpush3.bf16.xpose.msra.mxu1 %v11302_v59 }
0x11f1   :  { %10118 = vmatprep.subr.bf16.mxu1 %v10741_v11 }
0x11f8   :  { %10120 = vmatpush3.bf16.xpose.msra.mxu1 %v11326_v20 }
0x11f9   :  { %10121 = vmatprep.subr.bf16.mxu1 %v10741_v11 }
0x1200   :  { %10123 = vmatpush3.bf16.xpose.msra.mxu1 %v11350_v37 }
0x1201   :  { %10124 = vmatprep.subr.bf16.mxu1 %v10741_v11 }
0x1208   :  { %10126 = vmatpush3.bf16.xpose.msra.mxu1 %v11374_v18 }
0x1209   :  { %10127 = vmatprep.subr.bf16.mxu1 %v10741_v11 }
0x1210   :  { %10129 = vmatpush3.bf16.xpose.msra.mxu1 %v11398_v19 }
0x1211   :  { %10130 = vmatprep.subr.bf16.mxu1 %v10741_v11 }
0x1218   :  { %10132 = vmatpush3.bf16.xpose.msra.mxu1 %v11428_v63 }
0x1219   :  { %10133 = vmatprep.subr.bf16.mxu1 %v10741_v11 }
0x121f   :  { %8567 = vmatmul.mubr.f32.vlgmr.msra.gmra.mrb[22].mxu1 %v3756_v22 }
0x1220   :  { %10135 = vmatpush3.bf16.xpose.msra.mxu1 %v11682_v50  ;;  %8601 = vmatprep.mubr.msk.f32.mxu1 %vm10742_vm8, %v10743_v57 }
0x1221   :  { %10136 = vmatprep.subr.bf16.mxu1 %v10741_v11 }
0x1228   :  { %10138 = vmatpush3.bf16.xpose.msra.mxu1 %v11693_v7 }
0x1229   :  { %10139 = vmatprep.subr.bf16.mxu1 %v10741_v11 }
0x1230   :  { %10141 = vmatpush3.bf16.xpose.msra.mxu1 %v11701_v54 }
0x1231   :  { %10142 = vmatprep.subr.bf16.mxu1 %v10741_v11 }
0x1232   :  { %v3760_v8 = vpop.f32.mrb[16].mxu1 }
0x1233   :  { %v8463_v4 = vpop.f32.mrb[17].mxu1 }
0x1238   :  { %10144 = vmatpush3.bf16.xpose.msra.mxu1 %v11709_v61 }
0x1239   :  { %10145 = vmatprep.subr.bf16.mxu1 %v10741_v11 }
0x1240   :  { %10147 = vmatpush3.bf16.xpose.msra.mxu1 %v11717_v14 }
0x1241   :  { %10148 = vmatprep.subr.bf16.mxu1 %v10741_v11 }
0x1248   :  { %10150 = vmatpush3.bf16.xpose.msra.mxu1 %v11725_v15 }
0x1249   :  { %10151 = vmatprep.subr.bf16.mxu1 %v10741_v11 }
0x1250   :  { %10153 = vmatpush3.bf16.xpose.msra.mxu1 %v11733_v2 }
0x1251   :  { %10154 = vmatprep.subr.bf16.mxu1 %v10741_v11 }
0x1258   :  { %10156 = vmatpush3.bf16.xpose.msra.mxu1 %v11741_v56 }
0x1259   :  { %10157 = vmatprep.subr.bf16.mxu1 %v10741_v11 }
0x125f   :  { %8602 = vmatmul.mubr.f32.vlgmr.msra.gmra.mrb[24].mxu1 %v12199_v45 }
0x1260   :  { %10159 = vmatpush3.bf16.xpose.msra.mxu1 %v11248_v23  ;;  %8636 = vmatprep.mubr.msk.f32.mxu1 %vm10742_vm8, %v10743_v57 }
0x1261   :  { %10160 = vmatprep.subr.bf16.mxu1 %v10741_v11 }
0x1268   :  { %10162 = vmatpush3.bf16.xpose.msra.mxu1 %v11278_v26 }
0x1269   :  { %10163 = vmatprep.subr.bf16.mxu1 %v10741_v11 }
0x1270   :  { %10165 = vmatpush3.bf16.xpose.msra.mxu1 %v11302_v59 }
0x1271   :  { %10166 = vmatprep.subr.bf16.mxu1 %v10741_v11 }
0x1272   :  { %v3911_v62 = vpop.f32.mrb[18].mxu1 }
0x1273   :  { %v3912_v46 = vadd.f32 %v3911_v62, %v3760_v8  ;;  %v8498_v53 = vpop.f32.mrb[19].mxu1 }
0x1278   :  { %10168 = vmatpush3.bf16.xpose.msra.mxu1 %v11326_v20 }
0x1279   :  { %10169 = vmatprep.subr.bf16.mxu1 %v10741_v11 }
0x1280   :  { %10171 = vmatpush3.bf16.xpose.msra.mxu1 %v11350_v37 }
0x1281   :  { %10172 = vmatprep.subr.bf16.mxu1 %v10741_v11 }
0x1288   :  { %10174 = vmatpush3.bf16.xpose.msra.mxu1 %v11374_v18 }
0x1289   :  { %10175 = vmatprep.subr.bf16.mxu1 %v10741_v11 }
0x1290   :  { %10177 = vmatpush3.bf16.xpose.msra.mxu1 %v11398_v19 }
0x1291   :  { %10178 = vmatprep.subr.bf16.mxu1 %v10741_v11 }
0x1298   :  { %10180 = vmatpush3.bf16.xpose.msra.mxu1 %v11428_v63 }
0x1299   :  { %10325 = vmatprep.subr.bf16.mxu1 %v10741_v11 }
0x129f   :  { %8637 = vmatmul.mubr.f32.vlgmr.msra.gmra.mrb[26].mxu1 %v12199_v45 }
0x12a0   :  { %10327 = vmatpush3.bf16.xpose.msra.mxu1 %v11248_v23  ;;  %8881 = vmatprep.mubr.msk.f32.mxu1 %vm10742_vm8, %v10743_v57 }
0x12a1   :  { %10328 = vmatprep.subr.bf16.mxu1 %v10741_v11 }
0x12a8   :  { %10330 = vmatpush3.bf16.xpose.msra.mxu1 %v11278_v26 }
0x12a9   :  { %10331 = vmatprep.subr.bf16.mxu1 %v10741_v11 }
0x12b0   :  { %10333 = vmatpush3.bf16.xpose.msra.mxu1 %v11302_v59 }
0x12b1   :  { %10334 = vmatprep.subr.bf16.mxu1 %v10741_v11 }
0x12b2   :  { %v4015_v58 = vpop.f32.mrb[20].mxu1 }
0x12b3   :  { %v4016_v51 = vadd.f32 %v4015_v58, %v3912_v46  ;;  %v8533_v31 = vpop.f32.mrb[21].mxu1 }
0x12b8   :  { %10336 = vmatpush3.bf16.xpose.msra.mxu1 %v11326_v20 }
0x12b9   :  { %10337 = vmatprep.subr.bf16.mxu1 %v10741_v11 }
0x12c0   :  { %10339 = vmatpush3.bf16.xpose.msra.mxu1 %v11350_v37 }
0x12c1   :  { %10340 = vmatprep.subr.bf16.mxu1 %v10741_v11 }
0x12c8   :  { %10342 = vmatpush3.bf16.xpose.msra.mxu1 %v11374_v18 }
0x12c9   :  { %10343 = vmatprep.subr.bf16.mxu1 %v10741_v11 }
0x12d0   :  { %10345 = vmatpush3.bf16.xpose.msra.mxu1 %v11398_v19 }
0x12d1   :  { %10346 = vmatprep.subr.bf16.mxu1 %v10741_v11 }
0x12d8   :  { %10348 = vmatpush3.bf16.xpose.msra.mxu1 %v11428_v63 }
0x12d9   :  { %10349 = vmatprep.subr.bf16.mxu1 %v10741_v11 }
0x12f2   :  { %v4104_v27 = vpop.f32.mrb[22].mxu1 }
0x12f3   :  { %v4105_v5 = vadd.f32 %v4104_v27, %v4016_v51  ;;  %v8568_v24 = vpop.f32.mrb[23].mxu1  ;;  %v4320_v51 = vrot.slane %v12188_v1, 6 }
0x1332   :  { %v4223_v34 = vpop.f32.mrb[24].mxu1 }
0x1333   :  { %v4224_v9 = vadd.f32 %v4223_v34, %v4105_v5  ;;  %v8603_v45 = vpop.f32.mrb[25].mxu1 }
0x1372   :  { %v4310_v47 = vpop.f32.mrb[26].mxu1 }
0x1373   :  { %v4311_v22 = vadd.f32 %v4310_v47, %v4224_v9  ;;  %v8638_v52 = vpop.f32.mrb[27].mxu1 }
0x1375   :  { %v4314_v13 = vadd.f32 %v11664_v17, %v4311_v22 }
0x1377   :  { %v4315_v8 = vmul.f32 %v4314_v13, %v11784_v6 }
0x1379   :  { %10710 = vtanh.f32 %v4315_v8 }
0x1383   :  { %v10711_v4 = vpop.eup %10710 }
0x1384   :  { %v4317_v62 = vmul.f32 %v10711_v4, %v11784_v6 }
0x1386   :  { %v4318_v46 = vadd.f32 %v4317_v62, %v11788_v3 }
0x1388   :  { %4324 = vrot.lane.b32.xlu0 %v4318_v46, %s10745_s4  ;;  %v4322_v31 = vmul.f32 %v4320_v51, %v4318_v46 }
0x13fa   :  { %v4325_v53 = vpop.permute.xlu0 %4324 }
0x13fb   :  { %v4327_v58 = vmul.f32 %v4325_v53, %v4318_v46 }
0x13fd   :  { %4329 = vrot.lane.b32.xlu1 %v4327_v58, %s10746_s18 }
0x146f   :  { %v4330_v27 = vpop.permute.xlu1 %4329 }
0x1470   :  { %v12320_v5 = vadd.f32 %v4330_v27, %v4322_v31 }
0x1472   :  { %10712 = vtanh.f32 %v12320_v5 }
0x147c   :  { %v10713_v24 = vpop.eup %10712 }
0x147d   :  { %4335 = vrot.lane.b32.xlu0 %v10713_v24, %s10745_s4 }
0x14ef   :  { %v4336_v34 = vpop.permute.xlu0 %4335 }
0x14f0   :  { %v4338_v9 = vmul.f32 %v4336_v34, %v4318_v46 }
0x14f2   :  { %4340 = vrot.lane.b32.xlu1 %v4338_v9, %s10746_s18  ;;  %v4994_v9 = vrot.slane %v12320_v5, 6 }
0x1564   :  { %v12325_v45 = vpop.permute.xlu1 %4340 }
0x1565   :  { %v4342_v47 = vsel %vm167_vm0, %v12325_v45, 0 }
0x1566   :  { %v12329_v22 = vand.u32 4294901760, %v4342_v47 }
0x1568   :  { %v4426_v1 = vsub.f32 %v4342_v47, %v12329_v22 }
0x156a   :  { %v4427_v52 = vand.u32 4294901760, %v4426_v1 }
0x156c   :  { %v4428_v13 = vsub.f32 %v4426_v1, %v4427_v52 }
0x156e   :  { %v4429_v8 = vand.u32 4294901760, %v4428_v13 }
0x1570   :  { %8672 = vmatmul.mubr.f32.vlgmr.msra.gmra.mrb[6].mxu0 %v4429_v8 }
0x1571   :  { %10207 = vmatpush3.bf16.xpose.msra.mxu0 %v11462_v28  ;;  %8706 = vmatprep.mubr.msk.f32.mxu0 %vm10742_vm8, %v10743_v57 }
0x1572   :  { %10208 = vmatprep.subr.bf16.mxu0 %v10741_v11 }
0x1579   :  { %10210 = vmatpush3.bf16.xpose.msra.mxu0 %v11483_v35 }
0x157a   :  { %10211 = vmatprep.subr.bf16.mxu0 %v10741_v11 }
0x1581   :  { %10213 = vmatpush3.bf16.xpose.msra.mxu0 %v11499_v42 }
0x1582   :  { %10214 = vmatprep.subr.bf16.mxu0 %v10741_v11 }
0x1589   :  { %10216 = vmatpush3.bf16.xpose.msra.mxu0 %v11531_v30 }
0x158a   :  { %10217 = vmatprep.subr.bf16.mxu0 %v10741_v11 }
0x1591   :  { %10219 = vmatpush3.bf16.xpose.msra.mxu0 %v11549_v49 }
0x1592   :  { %10220 = vmatprep.subr.bf16.mxu0 %v10741_v11 }
0x1599   :  { %10222 = vmatpush3.bf16.xpose.msra.mxu0 %v11565_v12 }
0x159a   :  { %10223 = vmatprep.subr.bf16.mxu0 %v10741_v11 }
0x15a1   :  { %10225 = vmatpush3.bf16.xpose.msra.mxu0 %v11587_v36 }
0x15a2   :  { %10226 = vmatprep.subr.bf16.mxu0 %v10741_v11 }
0x15a9   :  { %10228 = vmatpush3.bf16.xpose.msra.mxu0 %v11597_v29 }
0x15aa   :  { %10229 = vmatprep.subr.bf16.mxu0 %v10741_v11 }
0x15b0   :  { %8707 = vmatmul.mubr.f32.vlgmr.msra.gmra.mrb[6].mxu0 %v12329_v22 }
0x15b1   :  { %10231 = vmatpush3.bf16.xpose.msra.mxu0 %v11603_v40  ;;  %8741 = vmatprep.mubr.msk.f32.mxu0 %vm10742_vm8, %v10743_v57 }
0x15b2   :  { %10232 = vmatprep.subr.bf16.mxu0 %v10741_v11 }
0x15b9   :  { %10234 = vmatpush3.bf16.xpose.msra.mxu0 %v11612_v48 }
0x15ba   :  { %10235 = vmatprep.subr.bf16.mxu0 %v10741_v11 }
0x15c1   :  { %10237 = vmatpush3.bf16.xpose.msra.mxu0 %v11618_v39 }
0x15c2   :  { %10238 = vmatprep.subr.bf16.mxu0 %v10741_v11 }
0x15c9   :  { %10240 = vmatpush3.bf16.xpose.msra.mxu0 %v11624_v41 }
0x15ca   :  { %10241 = vmatprep.subr.bf16.mxu0 %v10741_v11 }
0x15d1   :  { %10243 = vmatpush3.bf16.xpose.msra.mxu0 %v11630_v32 }
0x15d2   :  { %10244 = vmatprep.subr.bf16.mxu0 %v10741_v11 }
0x15d9   :  { %10246 = vmatpush3.bf16.xpose.msra.mxu0 %v11636_v33 }
0x15da   :  { %10247 = vmatprep.subr.bf16.mxu0 %v10741_v11 }
0x15e1   :  { %10249 = vmatpush3.bf16.xpose.msra.mxu0 %v11642_v43 }
0x15e2   :  { %10250 = vmatprep.subr.bf16.mxu0 %v10741_v11 }
0x15e9   :  { %10252 = vmatpush3.bf16.xpose.msra.mxu0 %v11648_v44 }
0x15ea   :  { %10253 = vmatprep.subr.bf16.mxu0 %v10741_v11 }
0x15f0   :  { %8742 = vmatmul.mubr.f32.vlgmr.msra.gmra.mrb[6].mxu0 %v4426_v1 }
0x15f1   :  { %10255 = vmatpush3.bf16.xpose.msra.mxu0 %v11248_v23  ;;  %8776 = vmatprep.mubr.msk.f32.mxu0 %vm10742_vm8, %v10743_v57 }
0x15f2   :  { %10256 = vmatprep.subr.bf16.mxu0 %v10741_v11 }
0x15f9   :  { %10258 = vmatpush3.bf16.xpose.msra.mxu0 %v11278_v26 }
0x15fa   :  { %10259 = vmatprep.subr.bf16.mxu0 %v10741_v11 }
0x1601   :  { %10261 = vmatpush3.bf16.xpose.msra.mxu0 %v11302_v59 }
0x1602   :  { %10262 = vmatprep.subr.bf16.mxu0 %v10741_v11 }
0x1609   :  { %10264 = vmatpush3.bf16.xpose.msra.mxu0 %v11326_v20 }
0x160a   :  { %10265 = vmatprep.subr.bf16.mxu0 %v10741_v11 }
0x1611   :  { %10267 = vmatpush3.bf16.xpose.msra.mxu0 %v11350_v37 }
0x1612   :  { %10268 = vmatprep.subr.bf16.mxu0 %v10741_v11 }
0x1619   :  { %10270 = vmatpush3.bf16.xpose.msra.mxu0 %v11374_v18 }
0x161a   :  { %10271 = vmatprep.subr.bf16.mxu0 %v10741_v11 }
0x1621   :  { %10273 = vmatpush3.bf16.xpose.msra.mxu0 %v11398_v19 }
0x1622   :  { %10274 = vmatprep.subr.bf16.mxu0 %v10741_v11 }
0x1629   :  { %10276 = vmatpush3.bf16.xpose.msra.mxu0 %v11428_v63 }
0x162a   :  { %10277 = vmatprep.subr.bf16.mxu0 %v10741_v11 }
0x1630   :  { %8777 = vmatmul.mubr.f32.vlgmr.msra.gmra.mrb[6].mxu0 %v4427_v52 }
0x1631   :  { %10279 = vmatpush3.bf16.xpose.msra.mxu0 %v11682_v50  ;;  %8811 = vmatprep.mubr.msk.f32.mxu0 %vm10742_vm8, %v10743_v57 }
0x1632   :  { %10280 = vmatprep.subr.bf16.mxu0 %v10741_v11 }
0x1639   :  { %10282 = vmatpush3.bf16.xpose.msra.mxu0 %v11693_v7 }
0x163a   :  { %10283 = vmatprep.subr.bf16.mxu0 %v10741_v11 }
0x1641   :  { %10285 = vmatpush3.bf16.xpose.msra.mxu0 %v11701_v54 }
0x1642   :  { %10286 = vmatprep.subr.bf16.mxu0 %v10741_v11 }
0x1649   :  { %10288 = vmatpush3.bf16.xpose.msra.mxu0 %v11709_v61 }
0x164a   :  { %10289 = vmatprep.subr.bf16.mxu0 %v10741_v11 }
0x1651   :  { %10291 = vmatpush3.bf16.xpose.msra.mxu0 %v11717_v14 }
0x1652   :  { %10292 = vmatprep.subr.bf16.mxu0 %v10741_v11 }
0x1659   :  { %10294 = vmatpush3.bf16.xpose.msra.mxu0 %v11725_v15 }
0x165a   :  { %10295 = vmatprep.subr.bf16.mxu0 %v10741_v11 }
0x1661   :  { %10297 = vmatpush3.bf16.xpose.msra.mxu0 %v11733_v2 }
0x1662   :  { %10298 = vmatprep.subr.bf16.mxu0 %v10741_v11 }
0x1669   :  { %10300 = vmatpush3.bf16.xpose.msra.mxu0 %v11741_v56 }
0x166a   :  { %10301 = vmatprep.subr.bf16.mxu0 %v10741_v11 }
0x1670   :  { %8812 = vmatmul.mubr.f32.vlgmr.msra.gmra.mrb[6].mxu0 %v12329_v22 }
0x1671   :  { %10303 = vmatpush3.bf16.xpose.msra.mxu0 %v11248_v23  ;;  %8846 = vmatprep.mubr.msk.f32.mxu0 %vm10742_vm8, %v10743_v57 }
0x1672   :  { %10304 = vmatprep.subr.bf16.mxu0 %v10741_v11 }
0x1679   :  { %10306 = vmatpush3.bf16.xpose.msra.mxu0 %v11278_v26 }
0x167a   :  { %10307 = vmatprep.subr.bf16.mxu0 %v10741_v11 }
0x1681   :  { %10309 = vmatpush3.bf16.xpose.msra.mxu0 %v11302_v59 }
0x1682   :  { %10310 = vmatprep.subr.bf16.mxu0 %v10741_v11 }
0x1689   :  { %10312 = vmatpush3.bf16.xpose.msra.mxu0 %v11326_v20 }
0x168a   :  { %10313 = vmatprep.subr.bf16.mxu0 %v10741_v11 }
0x1691   :  { %10315 = vmatpush3.bf16.xpose.msra.mxu0 %v11350_v37 }
0x1692   :  { %10316 = vmatprep.subr.bf16.mxu0 %v10741_v11 }
0x1699   :  { %10318 = vmatpush3.bf16.xpose.msra.mxu0 %v11374_v18 }
0x169a   :  { %10319 = vmatprep.subr.bf16.mxu0 %v10741_v11 }
0x16a1   :  { %10321 = vmatpush3.bf16.xpose.msra.mxu0 %v11398_v19 }
0x16a2   :  { %10322 = vmatprep.subr.bf16.mxu0 %v10741_v11 }
0x16a9   :  { %10324 = vmatpush3.bf16.xpose.msra.mxu0 %v11428_v63 }
0x16aa   :  { %10469 = vmatprep.subr.bf16.mxu0 %v10741_v11 }
0x16b0   :  { %8847 = vmatmul.mubr.f32.vlgmr.msra.gmra.mrb[6].mxu0 %v12329_v22 }
0x16b1   :  { %10471 = vmatpush3.bf16.xpose.msra.mxu0 %v11248_v23  ;;  %9091 = vmatprep.mubr.msk.f32.mxu0 %vm10742_vm8, %v10743_v57 }
0x16b2   :  { %10472 = vmatprep.subr.bf16.mxu0 %v10741_v11 }
0x16b9   :  { %10474 = vmatpush3.bf16.xpose.msra.mxu0 %v11278_v26 }
0x16ba   :  { %10475 = vmatprep.subr.bf16.mxu0 %v10741_v11 }
0x16c1   :  { %10477 = vmatpush3.bf16.xpose.msra.mxu0 %v11302_v59 }
0x16c2   :  { %10478 = vmatprep.subr.bf16.mxu0 %v10741_v11 }
0x16c9   :  { %10480 = vmatpush3.bf16.xpose.msra.mxu0 %v11326_v20 }
0x16ca   :  { %10481 = vmatprep.subr.bf16.mxu0 %v10741_v11 }
0x16d1   :  { %10483 = vmatpush3.bf16.xpose.msra.mxu0 %v11350_v37 }
0x16d2   :  { %10484 = vmatprep.subr.bf16.mxu0 %v10741_v11 }
0x16d9   :  { %10486 = vmatpush3.bf16.xpose.msra.mxu0 %v11374_v18 }
0x16da   :  { %10487 = vmatprep.subr.bf16.mxu0 %v10741_v11 }
0x16e1   :  { %10489 = vmatpush3.bf16.xpose.msra.mxu0 %v11398_v19 }
0x16e2   :  { %10490 = vmatprep.subr.bf16.mxu0 %v10741_v11 }
0x16e9   :  { %10492 = vmatpush3.bf16.xpose.msra.mxu0 %v11428_v63 }
0x16ea   :  { %10493 = vmatprep.subr.bf16.mxu0 %v10741_v11 }
0x1783   :  { %v4981_v4 = vpop.f32.mrb[6].mxu0 }
0x1784   :  { %v4986_v62 = vrot.slane %v4981_v4, 6  ;;  %v8848_v46 = vpop.f32.mrb[7].mxu0 }
0x1786   :  { %v4988_v53 = vadd.f32 %v11664_v17, %v4986_v62 }
0x1788   :  { %v4989_v58 = vmul.f32 %v4988_v53, %v11784_v6 }
0x178a   :  { %10714 = vtanh.f32 %v4989_v58 }
0x1794   :  { %v10715_v51 = vpop.eup %10714 }
0x1795   :  { %v4991_v31 = vmul.f32 %v10715_v51, %v11784_v6 }
0x1797   :  { %v4992_v27 = vadd.f32 %v4991_v31, %v11788_v3 }
0x1799   :  { %4998 = vrot.lane.b32.xlu0 %v4992_v27, %s10745_s4  ;;  %v4996_v47 = vmul.f32 %v4994_v9, %v4992_v27 }
0x180b   :  { %v4999_v24 = vpop.permute.xlu0 %4998 }
0x180c   :  { %v5001_v34 = vmul.f32 %v4999_v24, %v4992_v27 }
0x180e   :  { %5003 = vrot.lane.b32.xlu1 %v5001_v34, %s10746_s18 }
0x1880   :  { %v5004_v22 = vpop.permute.xlu1 %5003 }
0x1881   :  { %v12450_v1 = vadd.f32 %v5004_v22, %v4996_v47 }
0x1883   :  { %10716 = vtanh.f32 %v12450_v1 }
0x188d   :  { %v10717_v52 = vpop.eup %10716 }
0x188e   :  { %5009 = vrot.lane.b32.xlu0 %v10717_v52, %s10745_s4 }
0x1900   :  { %v5010_v13 = vpop.permute.xlu0 %5009 }
0x1901   :  { %v12454_v8 = vmul.f32 %v5010_v13, %v4992_v27 }
0x1903   :  { %v5014_v4 = vrot.slane %v12454_v8, 2 }
0x1905   :  { %5015 = vrot.lane.b32.xlu1 %v5014_v4, %s10746_s18 }
0x1977   :  { %v5016_v62 = vpop.permute.xlu1 %5015 }
0x1978   :  { %v5017_v5 = vsel %vm167_vm0, %v5016_v62, 0 }
0x1979   :  { %v12461_v46 = vand.u32 4294901760, %v5017_v5 }
0x197b   :  { %v5101_v53 = vsub.f32 %v5017_v5, %v12461_v46 }
0x197d   :  { %v5102_v58 = vand.u32 4294901760, %v5101_v53 }
0x197f   :  { %v5103_v51 = vsub.f32 %v5101_v53, %v5102_v58 }
0x1981   :  { %v5104_v31 = vand.u32 4294901760, %v5103_v51 }
0x1983   :  { %8882 = vmatmul.mubr.f32.vlgmr.msra.gmra.mrb[28].mxu1 %v5104_v31 }
0x1984   :  { %10351 = vmatpush3.bf16.xpose.msra.mxu1 %v11462_v28  ;;  %8916 = vmatprep.mubr.msk.f32.mxu1 %vm10742_vm8, %v10743_v57 }
0x1985   :  { %10352 = vmatprep.subr.bf16.mxu1 %v10741_v11 }
0x198c   :  { %10354 = vmatpush3.bf16.xpose.msra.mxu1 %v11483_v35 }
0x198d   :  { %10355 = vmatprep.subr.bf16.mxu1 %v10741_v11 }
0x1994   :  { %10357 = vmatpush3.bf16.xpose.msra.mxu1 %v11499_v42 }
0x1995   :  { %10358 = vmatprep.subr.bf16.mxu1 %v10741_v11 }
0x199c   :  { %10360 = vmatpush3.bf16.xpose.msra.mxu1 %v11531_v30 }
0x199d   :  { %10361 = vmatprep.subr.bf16.mxu1 %v10741_v11 }
0x19a4   :  { %10363 = vmatpush3.bf16.xpose.msra.mxu1 %v11549_v49 }
0x19a5   :  { %10364 = vmatprep.subr.bf16.mxu1 %v10741_v11 }
0x19ac   :  { %10366 = vmatpush3.bf16.xpose.msra.mxu1 %v11565_v12 }
0x19ad   :  { %10367 = vmatprep.subr.bf16.mxu1 %v10741_v11 }
0x19b4   :  { %10369 = vmatpush3.bf16.xpose.msra.mxu1 %v11587_v36 }
0x19b5   :  { %10370 = vmatprep.subr.bf16.mxu1 %v10741_v11 }
0x19bc   :  { %10372 = vmatpush3.bf16.xpose.msra.mxu1 %v11597_v29 }
0x19bd   :  { %10373 = vmatprep.subr.bf16.mxu1 %v10741_v11 }
0x19c3   :  { %8917 = vmatmul.mubr.f32.vlgmr.msra.gmra.mrb[28].mxu1 %v12461_v46 }
0x19c4   :  { %10375 = vmatpush3.bf16.xpose.msra.mxu1 %v11603_v40  ;;  %8951 = vmatprep.mubr.msk.f32.mxu1 %vm10742_vm8, %v10743_v57 }
0x19c5   :  { %10376 = vmatprep.subr.bf16.mxu1 %v10741_v11 }
0x19cc   :  { %10378 = vmatpush3.bf16.xpose.msra.mxu1 %v11612_v48 }
0x19cd   :  { %10379 = vmatprep.subr.bf16.mxu1 %v10741_v11 }
0x19d4   :  { %10381 = vmatpush3.bf16.xpose.msra.mxu1 %v11618_v39 }
0x19d5   :  { %10382 = vmatprep.subr.bf16.mxu1 %v10741_v11 }
0x19dc   :  { %10384 = vmatpush3.bf16.xpose.msra.mxu1 %v11624_v41 }
0x19dd   :  { %10385 = vmatprep.subr.bf16.mxu1 %v10741_v11 }
0x19e4   :  { %10387 = vmatpush3.bf16.xpose.msra.mxu1 %v11630_v32 }
0x19e5   :  { %10388 = vmatprep.subr.bf16.mxu1 %v10741_v11 }
0x19ec   :  { %10390 = vmatpush3.bf16.xpose.msra.mxu1 %v11636_v33 }
0x19ed   :  { %10391 = vmatprep.subr.bf16.mxu1 %v10741_v11 }
0x19f4   :  { %10393 = vmatpush3.bf16.xpose.msra.mxu1 %v11642_v43 }
0x19f5   :  { %10394 = vmatprep.subr.bf16.mxu1 %v10741_v11 }
0x19fc   :  { %10396 = vmatpush3.bf16.xpose.msra.mxu1 %v11648_v44 }
0x19fd   :  { %10397 = vmatprep.subr.bf16.mxu1 %v10741_v11 }
0x1a03   :  { %8952 = vmatmul.mubr.f32.vlgmr.msra.gmra.mrb[28].mxu1 %v5101_v53 }
0x1a04   :  { %10399 = vmatpush3.bf16.xpose.msra.mxu1 %v11248_v23  ;;  %8986 = vmatprep.mubr.msk.f32.mxu1 %vm10742_vm8, %v10743_v57 }
0x1a05   :  { %10400 = vmatprep.subr.bf16.mxu1 %v10741_v11 }
0x1a0c   :  { %10402 = vmatpush3.bf16.xpose.msra.mxu1 %v11278_v26 }
0x1a0d   :  { %10403 = vmatprep.subr.bf16.mxu1 %v10741_v11 }
0x1a14   :  { %10405 = vmatpush3.bf16.xpose.msra.mxu1 %v11302_v59 }
0x1a15   :  { %10406 = vmatprep.subr.bf16.mxu1 %v10741_v11 }
0x1a1c   :  { %10408 = vmatpush3.bf16.xpose.msra.mxu1 %v11326_v20 }
0x1a1d   :  { %10409 = vmatprep.subr.bf16.mxu1 %v10741_v11 }
0x1a24   :  { %10411 = vmatpush3.bf16.xpose.msra.mxu1 %v11350_v37 }
0x1a25   :  { %10412 = vmatprep.subr.bf16.mxu1 %v10741_v11 }
0x1a2c   :  { %10414 = vmatpush3.bf16.xpose.msra.mxu1 %v11374_v18 }
0x1a2d   :  { %10415 = vmatprep.subr.bf16.mxu1 %v10741_v11 }
0x1a34   :  { %10417 = vmatpush3.bf16.xpose.msra.mxu1 %v11398_v19 }
0x1a35   :  { %10418 = vmatprep.subr.bf16.mxu1 %v10741_v11 }
0x1a3c   :  { %10420 = vmatpush3.bf16.xpose.msra.mxu1 %v11428_v63 }
0x1a3d   :  { %10421 = vmatprep.subr.bf16.mxu1 %v10741_v11 }
0x1a43   :  { %8987 = vmatmul.mubr.f32.vlgmr.msra.gmra.mrb[28].mxu1 %v5102_v58 }
0x1a44   :  { %10423 = vmatpush3.bf16.xpose.msra.mxu1 %v11682_v50  ;;  %9021 = vmatprep.mubr.msk.f32.mxu1 %vm10742_vm8, %v10743_v57 }
0x1a45   :  { %10424 = vmatprep.subr.bf16.mxu1 %v10741_v11 }
0x1a4c   :  { %10426 = vmatpush3.bf16.xpose.msra.mxu1 %v11693_v7 }
0x1a4d   :  { %10427 = vmatprep.subr.bf16.mxu1 %v10741_v11 }
0x1a54   :  { %10429 = vmatpush3.bf16.xpose.msra.mxu1 %v11701_v54 }
0x1a55   :  { %10430 = vmatprep.subr.bf16.mxu1 %v10741_v11 }
0x1a5c   :  { %10432 = vmatpush3.bf16.xpose.msra.mxu1 %v11709_v61 }
0x1a5d   :  { %10433 = vmatprep.subr.bf16.mxu1 %v10741_v11 }
0x1a64   :  { %10435 = vmatpush3.bf16.xpose.msra.mxu1 %v11717_v14 }
0x1a65   :  { %10436 = vmatprep.subr.bf16.mxu1 %v10741_v11 }
0x1a6c   :  { %10438 = vmatpush3.bf16.xpose.msra.mxu1 %v11725_v15 }
0x1a6d   :  { %10439 = vmatprep.subr.bf16.mxu1 %v10741_v11 }
0x1a74   :  { %10441 = vmatpush3.bf16.xpose.msra.mxu1 %v11733_v2 }
0x1a75   :  { %10442 = vmatprep.subr.bf16.mxu1 %v10741_v11 }
0x1a7c   :  { %10444 = vmatpush3.bf16.xpose.msra.mxu1 %v11741_v56 }
0x1a7d   :  { %10445 = vmatprep.subr.bf16.mxu1 %v10741_v11 }
0x1a83   :  { %9022 = vmatmul.mubr.f32.vlgmr.msra.gmra.mrb[28].mxu1 %v12461_v46 }
0x1a84   :  { %10447 = vmatpush3.bf16.xpose.msra.mxu1 %v11248_v23  ;;  %9056 = vmatprep.mubr.msk.f32.mxu1 %vm10742_vm8, %v10743_v57 }
0x1a85   :  { %10448 = vmatprep.subr.bf16.mxu1 %v10741_v11 }
0x1a8c   :  { %10450 = vmatpush3.bf16.xpose.msra.mxu1 %v11278_v26 }
0x1a8d   :  { %10451 = vmatprep.subr.bf16.mxu1 %v10741_v11 }
0x1a94   :  { %10453 = vmatpush3.bf16.xpose.msra.mxu1 %v11302_v59 }
0x1a95   :  { %10454 = vmatprep.subr.bf16.mxu1 %v10741_v11 }
0x1a9c   :  { %10456 = vmatpush3.bf16.xpose.msra.mxu1 %v11326_v20 }
0x1a9d   :  { %10457 = vmatprep.subr.bf16.mxu1 %v10741_v11 }
0x1aa4   :  { %10459 = vmatpush3.bf16.xpose.msra.mxu1 %v11350_v37 }
0x1aa5   :  { %10460 = vmatprep.subr.bf16.mxu1 %v10741_v11 }
0x1aac   :  { %10462 = vmatpush3.bf16.xpose.msra.mxu1 %v11374_v18 }
0x1aad   :  { %10463 = vmatprep.subr.bf16.mxu1 %v10741_v11 }
0x1ab4   :  { %10465 = vmatpush3.bf16.xpose.msra.mxu1 %v11398_v19 }
0x1ab5   :  { %10466 = vmatprep.subr.bf16.mxu1 %v10741_v11 }
0x1abc   :  { %10468 = vmatpush3.bf16.xpose.msra.mxu1 %v11428_v63 }
0x1ac3   :  { %9057 = vmatmul.mubr.f32.vlgmr.msra.gmra.mrb[28].mxu1 %v12461_v46  ;;  %v5669_v46 = vrot.slane %v12450_v1, 6 }
0x1b96   :  { %v5656_v27 = vpop.f32.mrb[28].mxu1 }
0x1b97   :  { %v5661_v24 = vrot.slane %v5656_v27, 4  ;;  %v9058_v34 = vpop.f32.mrb[29].mxu1 }
0x1b99   :  { %v5663_v9 = vadd.f32 %v11664_v17, %v5661_v24 }
0x1b9b   :  { %v5664_v47 = vmul.f32 %v5663_v9, %v11784_v6 }
0x1b9d   :  { %10718 = vtanh.f32 %v5664_v47 }
0x1ba7   :  { %v10719_v22 = vpop.eup %10718 }
0x1ba8   :  { %v5666_v52 = vmul.f32 %v10719_v22, %v11784_v6 }
0x1baa   :  { %v5667_v13 = vadd.f32 %v5666_v52, %v11788_v3 }
0x1bac   :  { %5673 = vrot.lane.b32.xlu0 %v5667_v13, %s10745_s4  ;;  %v5671_v53 = vmul.f32 %v5669_v46, %v5667_v13 }
0x1c1e   :  { %v5674_v62 = vpop.permute.xlu0 %5673 }
0x1c1f   :  { %v5676_v5 = vmul.f32 %v5674_v62, %v5667_v13 }
0x1c21   :  { %5678 = vrot.lane.b32.xlu1 %v5676_v5, %s10746_s18 }
0x1c93   :  { %v5679_v58 = vpop.permute.xlu1 %5678 }
0x1c94   :  { %v12563_v51 = vadd.f32 %v5679_v58, %v5671_v53 }
0x1c96   :  { %10720 = vtanh.f32 %v12563_v51 }
0x1ca0   :  { %v10721_v31 = vpop.eup %10720 }
0x1ca1   :  { %5684 = vrot.lane.b32.xlu0 %v10721_v31, %s10745_s4 }
0x1d13   :  { %v5685_v27 = vpop.permute.xlu0 %5684 }
0x1d14   :  { %v12567_v24 = vmul.f32 %v5685_v27, %v5667_v13 }
0x1d16   :  { %v5689_v34 = vrot.slane %v12567_v24, 4 }
0x1d18   :  { %5690 = vrot.lane.b32.xlu1 %v5689_v34, %s10746_s18 }
0x1d8a   :  { %v5691_v9 = vpop.permute.xlu1 %5690 }
0x1d8b   :  { %v5692_v1 = vsel %vm167_vm0, %v5691_v9, 0 }
0x1d8c   :  { %v12574_v47 = vand.u32 4294901760, %v5692_v1 }
0x1d8e   :  { %v5776_v22 = vsub.f32 %v5692_v1, %v12574_v47 }
0x1d90   :  { %v5777_v52 = vand.u32 4294901760, %v5776_v22 }
0x1d92   :  { %v5778_v62 = vsub.f32 %v5776_v22, %v5777_v52 }
0x1d94   :  { %v5779_v5 = vand.u32 4294901760, %v5778_v62 }
0x1d96   :  { %9092 = vmatmul.mubr.f32.vlgmr.msra.gmra.mrb[8].mxu0 %v5779_v5 }
0x1d97   :  { %10495 = vmatpush3.bf16.xpose.msra.mxu0 %v11462_v28  ;;  %9126 = vmatprep.mubr.msk.f32.mxu0 %vm10742_vm8, %v10743_v57 }
0x1d98   :  { %10496 = vmatprep.subr.bf16.mxu0 %v10741_v11 }
0x1d9f   :  { %10498 = vmatpush3.bf16.xpose.msra.mxu0 %v11483_v35 }
0x1da0   :  { %10499 = vmatprep.subr.bf16.mxu0 %v10741_v11 }
0x1da7   :  { %10501 = vmatpush3.bf16.xpose.msra.mxu0 %v11499_v42 }
0x1da8   :  { %10502 = vmatprep.subr.bf16.mxu0 %v10741_v11 }
0x1daf   :  { %10504 = vmatpush3.bf16.xpose.msra.mxu0 %v11531_v30 }
0x1db0   :  { %10505 = vmatprep.subr.bf16.mxu0 %v10741_v11 }
0x1db7   :  { %10507 = vmatpush3.bf16.xpose.msra.mxu0 %v11549_v49 }
0x1db8   :  { %10508 = vmatprep.subr.bf16.mxu0 %v10741_v11 }
0x1dbf   :  { %10510 = vmatpush3.bf16.xpose.msra.mxu0 %v11565_v12 }
0x1dc0   :  { %10511 = vmatprep.subr.bf16.mxu0 %v10741_v11 }
0x1dc7   :  { %10513 = vmatpush3.bf16.xpose.msra.mxu0 %v11587_v36 }
0x1dc8   :  { %10514 = vmatprep.subr.bf16.mxu0 %v10741_v11 }
0x1dcf   :  { %10516 = vmatpush3.bf16.xpose.msra.mxu0 %v11597_v29 }
0x1dd0   :  { %10517 = vmatprep.subr.bf16.mxu0 %v10741_v11 }
0x1dd6   :  { %9127 = vmatmul.mubr.f32.vlgmr.msra.gmra.mrb[8].mxu0 %v12574_v47 }
0x1dd7   :  { %10519 = vmatpush3.bf16.xpose.msra.mxu0 %v11603_v40  ;;  %9161 = vmatprep.mubr.msk.f32.mxu0 %vm10742_vm8, %v10743_v57 }
0x1dd8   :  { %10520 = vmatprep.subr.bf16.mxu0 %v10741_v11 }
0x1ddf   :  { %10522 = vmatpush3.bf16.xpose.msra.mxu0 %v11612_v48 }
0x1de0   :  { %10523 = vmatprep.subr.bf16.mxu0 %v10741_v11 }
0x1de7   :  { %10525 = vmatpush3.bf16.xpose.msra.mxu0 %v11618_v39  ;;  %v10748_v39 = vmov 1983009808  }
0x1de8   :  { %10526 = vmatprep.subr.bf16.mxu0 %v10741_v11 }
0x1def   :  { %10528 = vmatpush3.bf16.xpose.msra.mxu0 %v11624_v41  ;;  %v6402_v41 = vunpack.c.l.s4 %v10748_v39 }
0x1df0   :  { %10529 = vmatprep.subr.bf16.mxu0 %v10741_v11 }
0x1df7   :  { %10531 = vmatpush3.bf16.xpose.msra.mxu0 %v11630_v32 }
0x1df8   :  { %10532 = vmatprep.subr.bf16.mxu0 %v10741_v11 }
0x1dff   :  { %10534 = vmatpush3.bf16.xpose.msra.mxu0 %v11636_v33 }
0x1e00   :  { %10535 = vmatprep.subr.bf16.mxu0 %v10741_v11 }
0x1e07   :  { %10537 = vmatpush3.bf16.xpose.msra.mxu0 %v11642_v43 }
0x1e08   :  { %10538 = vmatprep.subr.bf16.mxu0 %v10741_v11 }
0x1e0f   :  { %10540 = vmatpush3.bf16.xpose.msra.mxu0 %v11648_v44 }
0x1e10   :  { %10541 = vmatprep.subr.bf16.mxu0 %v10741_v11 }
0x1e16   :  { %9162 = vmatmul.mubr.f32.vlgmr.msra.gmra.mrb[8].mxu0 %v5776_v22 }
0x1e17   :  { %10543 = vmatpush3.bf16.xpose.msra.mxu0 %v11248_v23  ;;  %9196 = vmatprep.mubr.msk.f32.mxu0 %vm10742_vm8, %v10743_v57 }
0x1e18   :  { %10544 = vmatprep.subr.bf16.mxu0 %v10741_v11 }
0x1e1f   :  { %10546 = vmatpush3.bf16.xpose.msra.mxu0 %v11278_v26 }
0x1e20   :  { %10547 = vmatprep.subr.bf16.mxu0 %v10741_v11 }
0x1e27   :  { %10549 = vmatpush3.bf16.xpose.msra.mxu0 %v11302_v59 }
0x1e28   :  { %10550 = vmatprep.subr.bf16.mxu0 %v10741_v11 }
0x1e2f   :  { %10552 = vmatpush3.bf16.xpose.msra.mxu0 %v11326_v20 }
0x1e30   :  { %10553 = vmatprep.subr.bf16.mxu0 %v10741_v11 }
0x1e37   :  { %10555 = vmatpush3.bf16.xpose.msra.mxu0 %v11350_v37 }
0x1e38   :  { %10556 = vmatprep.subr.bf16.mxu0 %v10741_v11 }
0x1e3f   :  { %10558 = vmatpush3.bf16.xpose.msra.mxu0 %v11374_v18 }
0x1e40   :  { %10559 = vmatprep.subr.bf16.mxu0 %v10741_v11 }
0x1e47   :  { %10561 = vmatpush3.bf16.xpose.msra.mxu0 %v11398_v19 }
0x1e48   :  { %10562 = vmatprep.subr.bf16.mxu0 %v10741_v11 }
0x1e4f   :  { %10564 = vmatpush3.bf16.xpose.msra.mxu0 %v11428_v63 }
0x1e50   :  { %10565 = vmatprep.subr.bf16.mxu0 %v10741_v11 }
0x1e56   :  { %9197 = vmatmul.mubr.f32.vlgmr.msra.gmra.mrb[8].mxu0 %v5777_v52 }
0x1e57   :  { %10567 = vmatpush3.bf16.xpose.msra.mxu0 %v11682_v50  ;;  %9231 = vmatprep.mubr.msk.f32.mxu0 %vm10742_vm8, %v10743_v57 }
0x1e58   :  { %10568 = vmatprep.subr.bf16.mxu0 %v10741_v11 }
0x1e5f   :  { %10570 = vmatpush3.bf16.xpose.msra.mxu0 %v11693_v7  ;;  %v6403_v7 = vunpack.c.0.s8 %v6402_v41 }
0x1e60   :  { %10571 = vmatprep.subr.bf16.mxu0 %v10741_v11 }
0x1e67   :  { %10573 = vmatpush3.bf16.xpose.msra.mxu0 %v11701_v54  ;;  %v6405_v54 = vshrl.u32 %v906_v38, 7 }
0x1e68   :  { %10574 = vmatprep.subr.bf16.mxu0 %v10741_v11 }
0x1e6f   :  { %10576 = vmatpush3.bf16.xpose.msra.mxu0 %v11709_v61 }
0x1e70   :  { %10577 = vmatprep.subr.bf16.mxu0 %v10741_v11 }
0x1e77   :  { %10579 = vmatpush3.bf16.xpose.msra.mxu0 %v11717_v14 }
0x1e78   :  { %10580 = vmatprep.subr.bf16.mxu0 %v10741_v11 }
0x1e7f   :  { %10582 = vmatpush3.bf16.xpose.msra.mxu0 %v11725_v15 }
0x1e80   :  { %10583 = vmatprep.subr.bf16.mxu0 %v10741_v11 }
0x1e87   :  { %10585 = vmatpush3.bf16.xpose.msra.mxu0 %v11733_v2 }
0x1e88   :  { %10586 = vmatprep.subr.bf16.mxu0 %v10741_v11 }
0x1e8f   :  { %10588 = vmatpush3.bf16.xpose.msra.mxu0 %v11741_v56  ;;  %v6406_v56 = vsub.s32 %v6403_v7, %v6405_v54 }
0x1e90   :  { %10589 = vmatprep.subr.bf16.mxu0 %v10741_v11 }
0x1e96   :  { %9232 = vmatmul.mubr.f32.vlgmr.msra.gmra.mrb[8].mxu0 %v12574_v47 }
0x1e97   :  { %10591 = vmatpush3.bf16.xpose.msra.mxu0 %v11248_v23  ;;  %9266 = vmatprep.mubr.msk.f32.mxu0 %vm10742_vm8, %v10743_v57 }
0x1e98   :  { %10592 = vmatprep.subr.bf16.mxu0 %v10741_v11 }
0x1e9f   :  { %10594 = vmatpush3.bf16.xpose.msra.mxu0 %v11278_v26 }
0x1ea0   :  { %10595 = vmatprep.subr.bf16.mxu0 %v10741_v11 }
0x1ea7   :  { %10597 = vmatpush3.bf16.xpose.msra.mxu0 %v11302_v59 }
0x1ea8   :  { %10598 = vmatprep.subr.bf16.mxu0 %v10741_v11 }
0x1eaf   :  { %10600 = vmatpush3.bf16.xpose.msra.mxu0 %v11326_v20 }
0x1eb0   :  { %10601 = vmatprep.subr.bf16.mxu0 %v10741_v11 }
0x1eb7   :  { %10603 = vmatpush3.bf16.xpose.msra.mxu0 %v11350_v37 }
0x1eb8   :  { %10604 = vmatprep.subr.bf16.mxu0 %v10741_v11 }
0x1ebf   :  { %10606 = vmatpush3.bf16.xpose.msra.mxu0 %v11374_v18 }
0x1ec0   :  { %10607 = vmatprep.subr.bf16.mxu0 %v10741_v11 }
0x1ec7   :  { %10609 = vmatpush3.bf16.xpose.msra.mxu0 %v11398_v19 }
0x1ec8   :  { %10610 = vmatprep.subr.bf16.mxu0 %v10741_v11 }
0x1ecf   :  { %10612 = vmatpush3.bf16.xpose.msra.mxu0 %v11428_v63  ;;  %v6344_v63 = vrot.slane %v12563_v51, 6 }
0x1ed6   :  { %9267 = vmatmul.mubr.f32.vlgmr.msra.gmra.mrb[8].mxu0 %v12574_v47 }
0x1fa9   :  { %v6331_v23 = vpop.f32.mrb[8].mxu0 }
0x1faa   :  { %v6336_v57 = vrot.slane %v6331_v23, 2  ;;  %v9268_v26 = vpop.f32.mrb[9].mxu0 }
0x1fac   :  { %v6338_v59 = vadd.f32 %v11664_v17, %v6336_v57 }
0x1fae   :  { %v6339_v20 = vmul.f32 %v6338_v59, %v11784_v6 }
0x1fb0   :  { %10722 = vtanh.f32 %v6339_v20 }
0x1fba   :  { %v10723_v37 = vpop.eup %10722 }
0x1fbb   :  { %v6341_v18 = vmul.f32 %v10723_v37, %v11784_v6 }
0x1fbd   :  { %v6342_v28 = vadd.f32 %v6341_v18, %v11788_v3 }
0x1fbf   :  { %6348 = vrot.lane.b32.xlu0 %v6342_v28, %s10745_s4  ;;  %v6346_v35 = vmul.f32 %v6344_v63, %v6342_v28 }
0x2031   :  { %v6349_v11 = vpop.permute.xlu0 %6348 }
0x2032   :  { %v6351_v19 = vmul.f32 %v6349_v11, %v6342_v28 }
0x2034   :  { %6353 = vrot.lane.b32.xlu1 %v6351_v19, %s10746_s18 }
0x2038   :  { %6364 = vrot.lane.b32.xlu1 %v2318_v0, %s10745_s4 }
0x203c   :  { %6367 = vrot.lane.b32.xlu1 %v2993_v21, %s10747_s19 }
0x20a6   :  { %v6354_v42 = vpop.permute.xlu1 %6353 }
0x20a7   :  { %v6356_v30 = vadd.f32 %v6354_v42, %v6346_v35 }
0x20a9   :  { %10724 = vtanh.f32 %v6356_v30  ;;  %v6385_v15 = vrot.slane %v6356_v30, 6 }
0x20aa   :  { %v6365_v40 = vpop.permute.xlu1 %6364 }
0x20ab   :  { %v6387_v44 = vsel %vm167_vm0, %v11799_v60, %v6365_v40 }
0x20ae   :  { %v6368_v32 = vpop.permute.xlu1 %6367 }
0x20af   :  { %v6389_v50 = vsel %vm6388_vm12, %v6387_v44, %v6368_v32 }
0x20b0   :  { %v6391_v14 = vsel %vm6390_vm13, %v6389_v50, %v3668_v25 }
0x20b3   :  { %v10725_v49 = vpop.eup %10724 }
0x20b4   :  { %6359 = vrot.lane.b32.xlu0 %v10725_v49, %s10745_s4 }
0x20b8   :  { %6372 = vrot.lane.b32.xlu0 %v5014_v4, %s10745_s4 }
0x20bc   :  { %6375 = vrot.lane.b32.xlu0 %v5689_v34, %s10747_s19 }
0x2126   :  { %v6360_v12 = vpop.permute.xlu0 %6359 }
0x2127   :  { %v6362_v17 = vmul.f32 %v6360_v12, %v6342_v28 }
0x2129   :  { %v6379_v36 = vrot.slane %v6362_v17, 6 }
0x212a   :  { %v6373_v29 = vpop.permute.xlu0 %6372 }
0x212b   :  { %6381 = vrot.lane.b32.xlu1 %v6379_v36, %s10746_s18  ;;  %v6392_v33 = vsel %vm167_vm0, %v12325_v45, %v6373_v29 }
0x212e   :  { %v6376_v48 = vpop.permute.xlu0 %6375 }
0x212f   :  { %v6393_v43 = vsel %vm6388_vm12, %v6392_v33, %v6376_v48 }
0x2130   :  { %v6394_v61 = vsel %vm6390_vm13, %v6393_v43, %v6379_v36 }
0x2131   :  { %v6400_v2 = vcombine.low %v6391_v14, %v6394_v61 }
0x2133   :  { %v6407_v0 = vrot.slane %v6400_v2, %v6406_v56 }
0x219d   :  { %v6382_v6 = vpop.permute.xlu1 %6381 }
0x219e   :  { %v6395_v3 = vsel %vm167_vm0, %v6382_v6, %v6385_v15 }
0x219f   :  { %v6396_v10 = vsel %vm6388_vm12, %v6395_v3, 0.0 }
0x21a0   :  { %v6414_v60 = vrot.slane %v6396_v10, %v6406_v56 }
0x21a2   :  { %v6415_v16 = vcombine.low %v6407_v0, %v6414_v60 }
0x21a4   :  { %6417 = vst [vmem:[%s12707_s5] sm:$0x3f] %v6415_v16 }
0x21a5   :  { %6422 = vsyncpa [#allocation3], 1 }

</bundles_post_ra>
